<compile_context>
chip_gen: v7x
topology: tpu7x:2x2x1
jax: 0.10.0
libtpu: 0.0.40
codegen_flags: <defaults>
</compile_context>

<pallas_src>
import jax
import jax.numpy as jnp
from jax.experimental import pallas as pl
from jax.experimental.pallas import tpu as pltpu

# ---------------- configuration (small synthetic ViT) -------------------------
B = 2          # batch (packed operands bake this in)
C = 4          # input channels
IMG = 16       # spatial
PATCH = 4      # patch size
GRID = IMG // PATCH
N_PATCH = GRID * GRID          # 16 patches
SEQ = N_PATCH + 1              # +1 CLS token = 17
S_PAD = 24                     # padded per-batch sequence (multiple of 8)
BS = B * S_PAD                 # folded (batch*seq) sublane extent = 48
D = 32                         # hidden size
HEADS = 2
HD = D // HEADS                # head dim = 16
MLP = 64                       # mlp hidden
LAYERS = 2
LN_EPS = 1e-12                 # HF ViT layer_norm_eps default
PATCH_DIM = C * PATCH * PATCH  # 64
CLS_ROW = N_PATCH              # CLS token stored after the patches (row 16 of block)
SCALE = 1.0 / (HD ** 0.5)
V3D = 3 * D                    # lane width of the packed small-vector array
WF_W = 4 * D + MLP             # 192: fused weight lanes [wqkv 0:96 | wo 96:128 | w1 128:192]


def _layer_norm(x, gamma, beta):
    mu = jnp.mean(x, axis=-1, keepdims=True)
    var = jnp.mean(jnp.square(x - mu), axis=-1, keepdims=True)
    return (x - mu) * jax.lax.rsqrt(var + LN_EPS) * gamma + beta


# ---------------- the single fused kernel ------------------------------------
def fused_vit_kernel(p_ref, pw_ref, add_ref, wf_ref, w2_ref, vec_ref, lnf_ref,
                     o_ref):
    # --- patch embedding straight into the internal (BS, D) layout ------------
    # p_ref was pre-padded in the wrapper: rows b*S_PAD+[0..15] hold patches,
    # rows 16..23 of each block are zero (CLS slot + pad).  add_ref supplies
    # patch_bias + pos_emb for patch rows and cls_token + pos_emb[0] for row 16.
    emb = jnp.dot(p_ref[...].astype(jnp.bfloat16), pw_ref[...],
                  preferred_element_type=jnp.float32)               # (BS, D) f32
    x = emb + add_ref[...]

    # --- block-diagonal key mask (built once, no vector int div/mod) ----------
    row_idx = jax.lax.broadcasted_iota(jnp.int32, (BS, BS), 0)
    col_idx = jax.lax.broadcasted_iota(jnp.int32, (BS, BS), 1)
    key_mask = None
    for b in range(B):
        row_in = (row_idx >= b * S_PAD) & (row_idx < (b + 1) * S_PAD)
        col_ok = (col_idx >= b * S_PAD) & (col_idx < b * S_PAD + SEQ)
        m = row_in & col_ok
        key_mask = m if key_mask is None else (key_mask | m)

    # --- transformer encoder layers (unrolled; LAYERS=2) ----------------------
    for l in range(LAYERS):
        vec = vec_ref[l]                       # (8, 3D) packed small params, f32
        ln1_g = vec[0:1, 0:D]
        ln1_b = vec[1:2, 0:D]
        bqkv = vec[2:3, :]                     # (1, 3D)
        bo = vec[3:4, 0:D]
        ln2_g = vec[4:5, 0:D]
        ln2_b = vec[5:6, 0:D]
        b1 = vec[6:7, 0:MLP]
        b2 = vec[7:8, 0:D]
        wf = wf_ref[l]                         # (D, 192) bf16 fused weights
        wqkv = wf[:, 0:3 * D]                  # (D, 3D)
        wo = wf[:, 3 * D:4 * D]                # (D, D)
        w1 = wf[:, 4 * D:4 * D + MLP]          # (D, MLP)
        w2 = w2_ref[l]                         # (MLP, D) bf16

        # ---- multi-head self-attention (batch folded into sublanes) ---------
        h = _layer_norm(x, ln1_g, ln1_b)                               # (BS, D) f32
        qkv = jnp.dot(h.astype(jnp.bfloat16), wqkv,
                      preferred_element_type=jnp.float32) + bqkv       # (BS, 3D) f32

        head_outs = []
        for hh in range(HEADS):
            q = qkv[:, hh * HD:(hh + 1) * HD].astype(jnp.bfloat16)
            k = qkv[:, D + hh * HD:D + (hh + 1) * HD].astype(jnp.bfloat16)
            v = qkv[:, 2 * D + hh * HD:2 * D + (hh + 1) * HD].astype(jnp.bfloat16)
            s = jax.lax.dot_general(
                q, k, (((1,), (1,)), ((), ())),
                preferred_element_type=jnp.float32) * SCALE            # (BS, BS) f32
            s = jnp.where(key_mask, s, -1e30)
            s = s - jnp.max(s, axis=-1, keepdims=True)
            p = jnp.exp(s)
            # EUP-side reciprocal instead of a VALU divide.
            p = p * pl.reciprocal(jnp.sum(p, axis=-1, keepdims=True),
                                  approx=True)
            head_outs.append(jnp.dot(p.astype(jnp.bfloat16), v,
                                     preferred_element_type=jnp.float32))
        ctx = jnp.concatenate(head_outs, axis=1)                       # (BS, D), lane concat
        attn = jnp.dot(ctx.astype(jnp.bfloat16), wo,
                       preferred_element_type=jnp.float32) + bo
        x = x + attn

        # ---- MLP (full 48-row matmuls) ---------------------------------------
        h2 = _layer_norm(x, ln2_g, ln2_b)
        h2 = jnp.dot(h2.astype(jnp.bfloat16), w1,
                     preferred_element_type=jnp.float32) + b1
        # TODO(synk): HF ViT uses exact (erf) GELU; tanh approximation used here.
        h2 = jax.nn.gelu(h2, approximate=True)
        h2 = jnp.dot(h2.astype(jnp.bfloat16), w2,
                     preferred_element_type=jnp.float32) + b2
        x = x + h2

    # --- final LN + F.normalize(p=2) on the whole block -----------------------
    # (per-row ops; the CLS rows are sliced out in the wrapper — avoids 1-row
    #  sublane gathers and a masked (2,32) epilogue store)
    y = _layer_norm(x, lnf_ref[0:1, :], lnf_ref[1:2, :])
    # exact rsqrt so the final unit-norm property holds to f32 precision
    inv = jax.lax.rsqrt(jnp.maximum(jnp.sum(y * y, axis=-1, keepdims=True),
                                    1e-24))
    o_ref[...] = (y * inv).astype(o_ref.dtype)


# ---------------- wrapper -----------------------------------------------------
_VMEM = pl.BlockSpec(memory_space=pltpu.MemorySpace.VMEM)


@jax.jit
def vit_wrapper_forward(x, packed):
    """Equivalent of VitWrapper.forward: vit(x).last_hidden_state[:,0,:], L2-norm."""
    Bx, Cx, H, W = x.shape
    assert (Bx, Cx, H, W) == (B, C, IMG, IMG), "packed operands are baked for this shape"

    # patchify glue (matches Conv2d(patch) weight flattening order C,P,P),
    # pre-padded to the kernel's internal (B*S_PAD, PATCH_DIM) layout
    patches = x.reshape(Bx, Cx, GRID, PATCH, GRID, PATCH)
    patches = patches.transpose(0, 2, 4, 1, 3, 5).reshape(Bx, N_PATCH, PATCH_DIM)
    patches = jnp.pad(patches, ((0, 0), (0, S_PAD - N_PATCH), (0, 0)))
    patches = patches.reshape(Bx * S_PAD, PATCH_DIM)

    full = pl.pallas_call(
        fused_vit_kernel,
        out_shape=jax.ShapeDtypeStruct((BS, D), jnp.float32),
        in_specs=[_VMEM] * 7,
        out_specs=_VMEM,
    )(patches, packed["patch_w"], packed["add"], packed["wf"],
      packed["w2"], packed["vec"], packed["lnf"])

    # pick the CLS row of each batch block
    return full.reshape(Bx, S_PAD, D)[:, CLS_ROW, :]


# ---------------- parameter init + one-time packing ---------------------------
def init_params(key):
    def nrm(k, shape):
        return jax.random.normal(k, shape, jnp.float32) * 0.02

    keys = jax.random.split(key, 4 + LAYERS)
    params = {
        "patch_w": nrm(keys[0], (PATCH_DIM, D)),
        "patch_b": jnp.zeros((1, D), jnp.float32),
        "cls_token": nrm(keys[1], (1, D)),
        "pos_emb": nrm(keys[2], (SEQ, D)),
        "ln_f_g": jnp.ones((1, D), jnp.float32),
        "ln_f_b": jnp.zeros((1, D), jnp.float32),
        "layers": [],
    }
    for li in range(LAYERS):
        lk = jax.random.split(keys[4 + li], 4)
        params["layers"].append({
            "ln1_g": jnp.ones((1, D), jnp.float32),
            "ln1_b": jnp.zeros((1, D), jnp.float32),
            "wqkv": nrm(lk[0], (D, 3 * D)),
            "bqkv": jnp.zeros((1, 3 * D), jnp.float32),
            "wo": nrm(lk[1], (D, D)),
            "bo": jnp.zeros((1, D), jnp.float32),
            "ln2_g": jnp.ones((1, D), jnp.float32),
            "ln2_b": jnp.zeros((1, D), jnp.float32),
            "w1": nrm(lk[2], (D, MLP)),
            "b1": jnp.zeros((1, MLP), jnp.float32),
            "w2": nrm(lk[3], (MLP, D)),
            "b2": jnp.zeros((1, D), jnp.float32),
        })
    return params


def pack_params(params):
    """One-time repack of per-layer params into the fused kernel's 7 operands."""
    def padlane(v, width):
        v = v.reshape(1, -1)
        return jnp.pad(v, ((0, 0), (0, width - v.shape[1])))

    layers = params["layers"]
    # fused matmul weights, bf16, lane-concatenated: [wqkv | wo | w1] -> (L, D, 192)
    wf_all = jnp.stack([
        jnp.concatenate([lp["wqkv"], lp["wo"], lp["w1"]], axis=1)
        for lp in layers
    ]).astype(jnp.bfloat16)
    w2_all = jnp.stack([lp["w2"] for lp in layers]).astype(jnp.bfloat16)  # (L, MLP, D)
    vec_all = jnp.stack([
        jnp.concatenate([
            padlane(lp["ln1_g"], V3D), padlane(lp["ln1_b"], V3D),
            padlane(lp["bqkv"], V3D), padlane(lp["bo"], V3D),
            padlane(lp["ln2_g"], V3D), padlane(lp["ln2_b"], V3D),
            padlane(lp["b1"], V3D), padlane(lp["b2"], V3D),
        ], axis=0)
        for lp in layers
    ])                                                    # (L, 8, 3D) f32

    # additive token block (internal layout: patches first, CLS row 16, zero pad)
    add = jnp.concatenate([
        params["pos_emb"][1:] + params["patch_b"],        # patch rows 0..15
        params["cls_token"] + params["pos_emb"][0:1],     # CLS row 16
        jnp.zeros((S_PAD - SEQ, D), jnp.float32),         # pad rows 17..23
    ], axis=0)
    add = jnp.tile(add, (B, 1))                           # (B*S_PAD, D)

    lnf = jnp.concatenate([params["ln_f_g"], params["ln_f_b"]], axis=0)  # (2, D)

    return {"patch_w": params["patch_w"].astype(jnp.bfloat16),
            "add": add, "wf": wf_all, "w2": w2_all, "vec": vec_all,
            "lnf": lnf}


if __name__ == "__main__":
    root = jax.random.PRNGKey(0)
    kx, kp = jax.random.split(root)
    x = jax.random.normal(kx, (B, C, IMG, IMG), jnp.float32)
    params = init_params(kp)
    packed = jax.tree_util.tree_map(jax.block_until_ready, pack_params(params))

    out = vit_wrapper_forward(x, packed)
    out = jax.block_until_ready(out)

    assert out.shape == (B, D), out.shape
    norms = jnp.linalg.norm(out, axis=-1)
    assert bool(jnp.all(jnp.abs(norms - 1.0) < 1e-4)), norms
    assert bool(jnp.all(jnp.isfinite(out)))
    print("KERNEL_OK")
</pallas_src>

<mosaic_0001>
module attributes {stable_mosaic.version = 11 : i64} {
  func.func @fused_vit_kernel(%arg0: memref<48x64xf32, #tpu.memory_space<vmem>>, %arg1: memref<64x32xbf16, #tpu.memory_space<vmem>>, %arg2: memref<48x32xf32, #tpu.memory_space<vmem>>, %arg3: memref<2x32x192xbf16, #tpu.memory_space<vmem>>, %arg4: memref<2x64x32xbf16, #tpu.memory_space<vmem>>, %arg5: memref<2x8x96xf32, #tpu.memory_space<vmem>>, %arg6: memref<2x32xf32, #tpu.memory_space<vmem>>, %arg7: memref<48x32xf32, #tpu.memory_space<vmem>>) attributes {dimension_semantics = [], scalar_prefetch = 0 : i64, scratch_operands = 0 : i64, tpu.core_type = #tpu.core_type<tc>} {
    %c0 = arith.constant 0 : index
    %c0_0 = arith.constant 0 : index
    %0 = vector.load %arg0[%c0, %c0_0] : memref<48x64xf32, #tpu.memory_space<vmem>>, vector<48x64xf32>
    %1 = arith.truncf %0 : vector<48x64xf32> to vector<48x64xbf16>
    %c0_1 = arith.constant 0 : index
    %c0_2 = arith.constant 0 : index
    %2 = vector.load %arg1[%c0_1, %c0_2] : memref<64x32xbf16, #tpu.memory_space<vmem>>, vector<64x32xbf16>
    %cst = arith.constant dense<0.000000e+00> : vector<48x32xf32>
    %3 = tpu.matmul %1, %2, %cst {dimension_numbers = #tpu.dot_dimension_numbers<[1], [0], [0], [1], [0, 0, 1, 1], [], []>} : vector<48x64xbf16>, vector<64x32xbf16>, vector<48x32xf32> -> vector<48x32xf32>
    %c0_3 = arith.constant 0 : index
    %c0_4 = arith.constant 0 : index
    %4 = vector.load %arg2[%c0_3, %c0_4] : memref<48x32xf32, #tpu.memory_space<vmem>>, vector<48x32xf32>
    %5 = arith.addf %3, %4 : vector<48x32xf32>
    %6 = tpu.iota {dimensions = array<i32: 0>} : vector<48x48xi32>
    %7 = tpu.iota {dimensions = array<i32: 1>} : vector<48x48xi32>
    %c0_i32 = arith.constant 0 : i32
    %8 = vector.broadcast %c0_i32 : i32 to vector<48x48xi32>
    %9 = arith.cmpi sge, %6, %8 : vector<48x48xi32>
    %c24_i32 = arith.constant 24 : i32
    %10 = vector.broadcast %c24_i32 : i32 to vector<48x48xi32>
    %11 = arith.cmpi slt, %6, %10 : vector<48x48xi32>
    %12 = arith.andi %9, %11 : vector<48x48xi1>
    %c0_i32_5 = arith.constant 0 : i32
    %13 = vector.broadcast %c0_i32_5 : i32 to vector<48x48xi32>
    %14 = arith.cmpi sge, %7, %13 : vector<48x48xi32>
    %c17_i32 = arith.constant 17 : i32
    %15 = vector.broadcast %c17_i32 : i32 to vector<48x48xi32>
    %16 = arith.cmpi slt, %7, %15 : vector<48x48xi32>
    %17 = arith.andi %14, %16 : vector<48x48xi1>
    %18 = arith.andi %12, %17 : vector<48x48xi1>
    %c24_i32_6 = arith.constant 24 : i32
    %19 = vector.broadcast %c24_i32_6 : i32 to vector<48x48xi32>
    %20 = arith.cmpi sge, %6, %19 : vector<48x48xi32>
    %c48_i32 = arith.constant 48 : i32
    %21 = vector.broadcast %c48_i32 : i32 to vector<48x48xi32>
    %22 = arith.cmpi slt, %6, %21 : vector<48x48xi32>
    %23 = arith.andi %20, %22 : vector<48x48xi1>
    %c24_i32_7 = arith.constant 24 : i32
    %24 = vector.broadcast %c24_i32_7 : i32 to vector<48x48xi32>
    %25 = arith.cmpi sge, %7, %24 : vector<48x48xi32>
    %c41_i32 = arith.constant 41 : i32
    %26 = vector.broadcast %c41_i32 : i32 to vector<48x48xi32>
    %27 = arith.cmpi slt, %7, %26 : vector<48x48xi32>
    %28 = arith.andi %25, %27 : vector<48x48xi1>
    %29 = arith.andi %23, %28 : vector<48x48xi1>
    %30 = arith.ori %18, %29 : vector<48x48xi1>
    %c0_8 = arith.constant 0 : index
    %c0_9 = arith.constant 0 : index
    %c0_10 = arith.constant 0 : index
    %31 = vector.load %arg5[%c0_8, %c0_9, %c0_10] : memref<2x8x96xf32, #tpu.memory_space<vmem>>, vector<1x8x96xf32>
    %32 = vector.shape_cast %31 : vector<1x8x96xf32> to vector<8x96xf32>
    %33 = vector.extract_strided_slice %32 {offsets = [0, 0], sizes = [1, 32], strides = [1, 1]} : vector<8x96xf32> to vector<1x32xf32>
    %34 = vector.extract_strided_slice %32 {offsets = [1, 0], sizes = [1, 32], strides = [1, 1]} : vector<8x96xf32> to vector<1x32xf32>
    %35 = vector.extract_strided_slice %32 {offsets = [2, 0], sizes = [1, 96], strides = [1, 1]} : vector<8x96xf32> to vector<1x96xf32>
    %36 = vector.extract_strided_slice %32 {offsets = [3, 0], sizes = [1, 32], strides = [1, 1]} : vector<8x96xf32> to vector<1x32xf32>
    %37 = vector.extract_strided_slice %32 {offsets = [4, 0], sizes = [1, 32], strides = [1, 1]} : vector<8x96xf32> to vector<1x32xf32>
    %38 = vector.extract_strided_slice %32 {offsets = [5, 0], sizes = [1, 32], strides = [1, 1]} : vector<8x96xf32> to vector<1x32xf32>
    %39 = vector.extract_strided_slice %32 {offsets = [6, 0], sizes = [1, 64], strides = [1, 1]} : vector<8x96xf32> to vector<1x64xf32>
    %40 = vector.extract_strided_slice %32 {offsets = [7, 0], sizes = [1, 32], strides = [1, 1]} : vector<8x96xf32> to vector<1x32xf32>
    %c0_11 = arith.constant 0 : index
    %c0_12 = arith.constant 0 : index
    %c0_13 = arith.constant 0 : index
    %41 = vector.load %arg3[%c0_11, %c0_12, %c0_13] : memref<2x32x192xbf16, #tpu.memory_space<vmem>>, vector<1x32x192xbf16>
    %42 = vector.shape_cast %41 : vector<1x32x192xbf16> to vector<32x192xbf16>
    %43 = vector.extract_strided_slice %42 {offsets = [0, 0], sizes = [32, 96], strides = [1, 1]} : vector<32x192xbf16> to vector<32x96xbf16>
    %44 = vector.extract_strided_slice %42 {offsets = [0, 96], sizes = [32, 32], strides = [1, 1]} : vector<32x192xbf16> to vector<32x32xbf16>
    %45 = vector.extract_strided_slice %42 {offsets = [0, 128], sizes = [32, 64], strides = [1, 1]} : vector<32x192xbf16> to vector<32x64xbf16>
    %c0_14 = arith.constant 0 : index
    %c0_15 = arith.constant 0 : index
    %c0_16 = arith.constant 0 : index
    %46 = vector.load %arg4[%c0_14, %c0_15, %c0_16] : memref<2x64x32xbf16, #tpu.memory_space<vmem>>, vector<1x64x32xbf16>
    %47 = vector.shape_cast %46 : vector<1x64x32xbf16> to vector<64x32xbf16>
    %cst_17 = arith.constant dense<0.000000e+00> : vector<48xf32>
    %48 = vector.multi_reduction <add>, %5, %cst_17 [1] : vector<48x32xf32> to vector<48xf32>
    %49 = vector.shape_cast %48 : vector<48xf32> to vector<48x1xf32>
    %cst_18 = arith.constant 3.200000e+01 : f32
    %50 = vector.broadcast %cst_18 : f32 to vector<48x1xf32>
    %51 = arith.divf %49, %50 : vector<48x1xf32>
    %52 = vector.broadcast %51 : vector<48x1xf32> to vector<48x32xf32>
    %53 = arith.subf %5, %52 : vector<48x32xf32>
    %54 = arith.mulf %53, %53 : vector<48x32xf32>
    %cst_19 = arith.constant dense<0.000000e+00> : vector<48xf32>
    %55 = vector.multi_reduction <add>, %54, %cst_19 [1] : vector<48x32xf32> to vector<48xf32>
    %56 = vector.shape_cast %55 : vector<48xf32> to vector<48x1xf32>
    %cst_20 = arith.constant 3.200000e+01 : f32
    %57 = vector.broadcast %cst_20 : f32 to vector<48x1xf32>
    %58 = arith.divf %56, %57 : vector<48x1xf32>
    %59 = vector.broadcast %51 : vector<48x1xf32> to vector<48x32xf32>
    %60 = arith.subf %5, %59 : vector<48x32xf32>
    %cst_21 = arith.constant 9.99999996E-13 : f32
    %61 = vector.broadcast %cst_21 : f32 to vector<48x1xf32>
    %62 = arith.addf %58, %61 : vector<48x1xf32>
    %63 = math.rsqrt %62 : vector<48x1xf32>
    %64 = vector.broadcast %63 : vector<48x1xf32> to vector<48x32xf32>
    %65 = arith.mulf %60, %64 : vector<48x32xf32>
    %66 = vector.broadcast %33 : vector<1x32xf32> to vector<48x32xf32>
    %67 = arith.mulf %65, %66 : vector<48x32xf32>
    %68 = vector.broadcast %34 : vector<1x32xf32> to vector<48x32xf32>
    %69 = arith.addf %67, %68 : vector<48x32xf32>
    %70 = arith.truncf %69 : vector<48x32xf32> to vector<48x32xbf16>
    %cst_22 = arith.constant dense<0.000000e+00> : vector<48x96xf32>
    %71 = tpu.matmul %70, %43, %cst_22 {dimension_numbers = #tpu.dot_dimension_numbers<[1], [0], [0], [1], [0, 0, 1, 1], [], []>} : vector<48x32xbf16>, vector<32x96xbf16>, vector<48x96xf32> -> vector<48x96xf32>
    %72 = vector.broadcast %35 : vector<1x96xf32> to vector<48x96xf32>
    %73 = arith.addf %71, %72 : vector<48x96xf32>
    %74 = vector.extract_strided_slice %73 {offsets = [0, 0], sizes = [48, 16], strides = [1, 1]} : vector<48x96xf32> to vector<48x16xf32>
    %75 = arith.truncf %74 : vector<48x16xf32> to vector<48x16xbf16>
    %76 = vector.extract_strided_slice %73 {offsets = [0, 32], sizes = [48, 16], strides = [1, 1]} : vector<48x96xf32> to vector<48x16xf32>
    %77 = arith.truncf %76 : vector<48x16xf32> to vector<48x16xbf16>
    %78 = vector.extract_strided_slice %73 {offsets = [0, 64], sizes = [48, 16], strides = [1, 1]} : vector<48x96xf32> to vector<48x16xf32>
    %79 = arith.truncf %78 : vector<48x16xf32> to vector<48x16xbf16>
    %cst_23 = arith.constant dense<0.000000e+00> : vector<48x48xf32>
    %80 = tpu.matmul %75, %77, %cst_23 {dimension_numbers = #tpu.dot_dimension_numbers<[1], [1], [0], [0], [0, 0, 1, 0], [], []>} : vector<48x16xbf16>, vector<48x16xbf16>, vector<48x48xf32> -> vector<48x48xf32>
    %cst_24 = arith.constant 2.500000e-01 : f32
    %81 = vector.broadcast %cst_24 : f32 to vector<48x48xf32>
    %82 = arith.mulf %80, %81 : vector<48x48xf32>
    %cst_25 = arith.constant -1.000000e+30 : f32
    %83 = vector.broadcast %cst_25 : f32 to vector<48x48xf32>
    %84 = arith.select %30, %82, %83 : vector<48x48xi1>, vector<48x48xf32>
    %cst_26 = arith.constant dense<0xFF800000> : vector<48xf32>
    %85 = vector.multi_reduction <maximumf>, %84, %cst_26 [1] : vector<48x48xf32> to vector<48xf32>
    %86 = vector.shape_cast %85 : vector<48xf32> to vector<48x1xf32>
    %87 = vector.broadcast %86 : vector<48x1xf32> to vector<48x48xf32>
    %88 = arith.subf %84, %87 : vector<48x48xf32>
    %89 = math.exp %88 : vector<48x48xf32>
    %cst_27 = arith.constant dense<0.000000e+00> : vector<48xf32>
    %90 = vector.multi_reduction <add>, %89, %cst_27 [1] : vector<48x48xf32> to vector<48xf32>
    %91 = vector.shape_cast %90 : vector<48xf32> to vector<48x1xf32>
    %92 = tpu.reciprocal %91 {approx = true} : vector<48x1xf32> -> vector<48x1xf32>
    %93 = vector.broadcast %92 : vector<48x1xf32> to vector<48x48xf32>
    %94 = arith.mulf %89, %93 : vector<48x48xf32>
    %95 = arith.truncf %94 : vector<48x48xf32> to vector<48x48xbf16>
    %cst_28 = arith.constant dense<0.000000e+00> : vector<48x16xf32>
    %96 = tpu.matmul %95, %79, %cst_28 {dimension_numbers = #tpu.dot_dimension_numbers<[1], [0], [0], [1], [0, 0, 1, 1], [], []>} : vector<48x48xbf16>, vector<48x16xbf16>, vector<48x16xf32> -> vector<48x16xf32>
    %97 = vector.extract_strided_slice %73 {offsets = [0, 16], sizes = [48, 16], strides = [1, 1]} : vector<48x96xf32> to vector<48x16xf32>
    %98 = arith.truncf %97 : vector<48x16xf32> to vector<48x16xbf16>
    %99 = vector.extract_strided_slice %73 {offsets = [0, 48], sizes = [48, 16], strides = [1, 1]} : vector<48x96xf32> to vector<48x16xf32>
    %100 = arith.truncf %99 : vector<48x16xf32> to vector<48x16xbf16>
    %101 = vector.extract_strided_slice %73 {offsets = [0, 80], sizes = [48, 16], strides = [1, 1]} : vector<48x96xf32> to vector<48x16xf32>
    %102 = arith.truncf %101 : vector<48x16xf32> to vector<48x16xbf16>
    %cst_29 = arith.constant dense<0.000000e+00> : vector<48x48xf32>
    %103 = tpu.matmul %98, %100, %cst_29 {dimension_numbers = #tpu.dot_dimension_numbers<[1], [1], [0], [0], [0, 0, 1, 0], [], []>} : vector<48x16xbf16>, vector<48x16xbf16>, vector<48x48xf32> -> vector<48x48xf32>
    %cst_30 = arith.constant 2.500000e-01 : f32
    %104 = vector.broadcast %cst_30 : f32 to vector<48x48xf32>
    %105 = arith.mulf %103, %104 : vector<48x48xf32>
    %cst_31 = arith.constant -1.000000e+30 : f32
    %106 = vector.broadcast %cst_31 : f32 to vector<48x48xf32>
    %107 = arith.select %30, %105, %106 : vector<48x48xi1>, vector<48x48xf32>
    %cst_32 = arith.constant dense<0xFF800000> : vector<48xf32>
    %108 = vector.multi_reduction <maximumf>, %107, %cst_32 [1] : vector<48x48xf32> to vector<48xf32>
    %109 = vector.shape_cast %108 : vector<48xf32> to vector<48x1xf32>
    %110 = vector.broadcast %109 : vector<48x1xf32> to vector<48x48xf32>
    %111 = arith.subf %107, %110 : vector<48x48xf32>
    %112 = math.exp %111 : vector<48x48xf32>
    %cst_33 = arith.constant dense<0.000000e+00> : vector<48xf32>
    %113 = vector.multi_reduction <add>, %112, %cst_33 [1] : vector<48x48xf32> to vector<48xf32>
    %114 = vector.shape_cast %113 : vector<48xf32> to vector<48x1xf32>
    %115 = tpu.reciprocal %114 {approx = true} : vector<48x1xf32> -> vector<48x1xf32>
    %116 = vector.broadcast %115 : vector<48x1xf32> to vector<48x48xf32>
    %117 = arith.mulf %112, %116 : vector<48x48xf32>
    %118 = arith.truncf %117 : vector<48x48xf32> to vector<48x48xbf16>
    %cst_34 = arith.constant dense<0.000000e+00> : vector<48x16xf32>
    %119 = tpu.matmul %118, %102, %cst_34 {dimension_numbers = #tpu.dot_dimension_numbers<[1], [0], [0], [1], [0, 0, 1, 1], [], []>} : vector<48x48xbf16>, vector<48x16xbf16>, vector<48x16xf32> -> vector<48x16xf32>
    %120 = tpu.concatenate %96, %119 in 1 : vector<48x16xf32>, vector<48x16xf32> -> vector<48x32xf32>
    %121 = arith.truncf %120 : vector<48x32xf32> to vector<48x32xbf16>
    %cst_35 = arith.constant dense<0.000000e+00> : vector<48x32xf32>
    %122 = tpu.matmul %121, %44, %cst_35 {dimension_numbers = #tpu.dot_dimension_numbers<[1], [0], [0], [1], [0, 0, 1, 1], [], []>} : vector<48x32xbf16>, vector<32x32xbf16>, vector<48x32xf32> -> vector<48x32xf32>
    %123 = vector.broadcast %36 : vector<1x32xf32> to vector<48x32xf32>
    %124 = arith.addf %122, %123 : vector<48x32xf32>
    %125 = arith.addf %5, %124 : vector<48x32xf32>
    %cst_36 = arith.constant dense<0.000000e+00> : vector<48xf32>
    %126 = vector.multi_reduction <add>, %125, %cst_36 [1] : vector<48x32xf32> to vector<48xf32>
    %127 = vector.shape_cast %126 : vector<48xf32> to vector<48x1xf32>
    %cst_37 = arith.constant 3.200000e+01 : f32
    %128 = vector.broadcast %cst_37 : f32 to vector<48x1xf32>
    %129 = arith.divf %127, %128 : vector<48x1xf32>
    %130 = vector.broadcast %129 : vector<48x1xf32> to vector<48x32xf32>
    %131 = arith.subf %125, %130 : vector<48x32xf32>
    %132 = arith.mulf %131, %131 : vector<48x32xf32>
    %cst_38 = arith.constant dense<0.000000e+00> : vector<48xf32>
    %133 = vector.multi_reduction <add>, %132, %cst_38 [1] : vector<48x32xf32> to vector<48xf32>
    %134 = vector.shape_cast %133 : vector<48xf32> to vector<48x1xf32>
    %cst_39 = arith.constant 3.200000e+01 : f32
    %135 = vector.broadcast %cst_39 : f32 to vector<48x1xf32>
    %136 = arith.divf %134, %135 : vector<48x1xf32>
    %137 = vector.broadcast %129 : vector<48x1xf32> to vector<48x32xf32>
    %138 = arith.subf %125, %137 : vector<48x32xf32>
    %cst_40 = arith.constant 9.99999996E-13 : f32
    %139 = vector.broadcast %cst_40 : f32 to vector<48x1xf32>
    %140 = arith.addf %136, %139 : vector<48x1xf32>
    %141 = math.rsqrt %140 : vector<48x1xf32>
    %142 = vector.broadcast %141 : vector<48x1xf32> to vector<48x32xf32>
    %143 = arith.mulf %138, %142 : vector<48x32xf32>
    %144 = vector.broadcast %37 : vector<1x32xf32> to vector<48x32xf32>
    %145 = arith.mulf %143, %144 : vector<48x32xf32>
    %146 = vector.broadcast %38 : vector<1x32xf32> to vector<48x32xf32>
    %147 = arith.addf %145, %146 : vector<48x32xf32>
    %148 = arith.truncf %147 : vector<48x32xf32> to vector<48x32xbf16>
    %cst_41 = arith.constant dense<0.000000e+00> : vector<48x64xf32>
    %149 = tpu.matmul %148, %45, %cst_41 {dimension_numbers = #tpu.dot_dimension_numbers<[1], [0], [0], [1], [0, 0, 1, 1], [], []>} : vector<48x32xbf16>, vector<32x64xbf16>, vector<48x64xf32> -> vector<48x64xf32>
    %150 = vector.broadcast %39 : vector<1x64xf32> to vector<48x64xf32>
    %151 = arith.addf %149, %150 : vector<48x64xf32>
    %152 = arith.mulf %151, %151 : vector<48x64xf32>
    %153 = arith.mulf %151, %152 : vector<48x64xf32>
    %cst_42 = arith.constant 4.471500e-02 : f32
    %154 = vector.broadcast %cst_42 : f32 to vector<48x64xf32>
    %155 = arith.mulf %154, %153 : vector<48x64xf32>
    %156 = arith.addf %151, %155 : vector<48x64xf32>
    %cst_43 = arith.constant 0.797884583 : f32
    %157 = vector.broadcast %cst_43 : f32 to vector<48x64xf32>
    %158 = arith.mulf %157, %156 : vector<48x64xf32>
    %159 = math.tanh %158 : vector<48x64xf32>
    %cst_44 = arith.constant 1.000000e+00 : f32
    %160 = vector.broadcast %cst_44 : f32 to vector<48x64xf32>
    %161 = arith.addf %160, %159 : vector<48x64xf32>
    %cst_45 = arith.constant 5.000000e-01 : f32
    %162 = vector.broadcast %cst_45 : f32 to vector<48x64xf32>
    %163 = arith.mulf %162, %161 : vector<48x64xf32>
    %164 = arith.mulf %151, %163 : vector<48x64xf32>
    %165 = arith.truncf %164 : vector<48x64xf32> to vector<48x64xbf16>
    %cst_46 = arith.constant dense<0.000000e+00> : vector<48x32xf32>
    %166 = tpu.matmul %165, %47, %cst_46 {dimension_numbers = #tpu.dot_dimension_numbers<[1], [0], [0], [1], [0, 0, 1, 1], [], []>} : vector<48x64xbf16>, vector<64x32xbf16>, vector<48x32xf32> -> vector<48x32xf32>
    %167 = vector.broadcast %40 : vector<1x32xf32> to vector<48x32xf32>
    %168 = arith.addf %166, %167 : vector<48x32xf32>
    %169 = arith.addf %125, %168 : vector<48x32xf32>
    %c1 = arith.constant 1 : index
    %c0_47 = arith.constant 0 : index
    %c0_48 = arith.constant 0 : index
    %170 = vector.load %arg5[%c1, %c0_47, %c0_48] : memref<2x8x96xf32, #tpu.memory_space<vmem>>, vector<1x8x96xf32>
    %171 = vector.shape_cast %170 : vector<1x8x96xf32> to vector<8x96xf32>
    %172 = vector.extract_strided_slice %171 {offsets = [0, 0], sizes = [1, 32], strides = [1, 1]} : vector<8x96xf32> to vector<1x32xf32>
    %173 = vector.extract_strided_slice %171 {offsets = [1, 0], sizes = [1, 32], strides = [1, 1]} : vector<8x96xf32> to vector<1x32xf32>
    %174 = vector.extract_strided_slice %171 {offsets = [2, 0], sizes = [1, 96], strides = [1, 1]} : vector<8x96xf32> to vector<1x96xf32>
    %175 = vector.extract_strided_slice %171 {offsets = [3, 0], sizes = [1, 32], strides = [1, 1]} : vector<8x96xf32> to vector<1x32xf32>
    %176 = vector.extract_strided_slice %171 {offsets = [4, 0], sizes = [1, 32], strides = [1, 1]} : vector<8x96xf32> to vector<1x32xf32>
    %177 = vector.extract_strided_slice %171 {offsets = [5, 0], sizes = [1, 32], strides = [1, 1]} : vector<8x96xf32> to vector<1x32xf32>
    %178 = vector.extract_strided_slice %171 {offsets = [6, 0], sizes = [1, 64], strides = [1, 1]} : vector<8x96xf32> to vector<1x64xf32>
    %179 = vector.extract_strided_slice %171 {offsets = [7, 0], sizes = [1, 32], strides = [1, 1]} : vector<8x96xf32> to vector<1x32xf32>
    %c1_49 = arith.constant 1 : index
    %c0_50 = arith.constant 0 : index
    %c0_51 = arith.constant 0 : index
    %180 = vector.load %arg3[%c1_49, %c0_50, %c0_51] : memref<2x32x192xbf16, #tpu.memory_space<vmem>>, vector<1x32x192xbf16>
    %181 = vector.shape_cast %180 : vector<1x32x192xbf16> to vector<32x192xbf16>
    %182 = vector.extract_strided_slice %181 {offsets = [0, 0], sizes = [32, 96], strides = [1, 1]} : vector<32x192xbf16> to vector<32x96xbf16>
    %183 = vector.extract_strided_slice %181 {offsets = [0, 96], sizes = [32, 32], strides = [1, 1]} : vector<32x192xbf16> to vector<32x32xbf16>
    %184 = vector.extract_strided_slice %181 {offsets = [0, 128], sizes = [32, 64], strides = [1, 1]} : vector<32x192xbf16> to vector<32x64xbf16>
    %c1_52 = arith.constant 1 : index
    %c0_53 = arith.constant 0 : index
    %c0_54 = arith.constant 0 : index
    %185 = vector.load %arg4[%c1_52, %c0_53, %c0_54] : memref<2x64x32xbf16, #tpu.memory_space<vmem>>, vector<1x64x32xbf16>
    %186 = vector.shape_cast %185 : vector<1x64x32xbf16> to vector<64x32xbf16>
    %cst_55 = arith.constant dense<0.000000e+00> : vector<48xf32>
    %187 = vector.multi_reduction <add>, %169, %cst_55 [1] : vector<48x32xf32> to vector<48xf32>
    %188 = vector.shape_cast %187 : vector<48xf32> to vector<48x1xf32>
    %cst_56 = arith.constant 3.200000e+01 : f32
    %189 = vector.broadcast %cst_56 : f32 to vector<48x1xf32>
    %190 = arith.divf %188, %189 : vector<48x1xf32>
    %191 = vector.broadcast %190 : vector<48x1xf32> to vector<48x32xf32>
    %192 = arith.subf %169, %191 : vector<48x32xf32>
    %193 = arith.mulf %192, %192 : vector<48x32xf32>
    %cst_57 = arith.constant dense<0.000000e+00> : vector<48xf32>
    %194 = vector.multi_reduction <add>, %193, %cst_57 [1] : vector<48x32xf32> to vector<48xf32>
    %195 = vector.shape_cast %194 : vector<48xf32> to vector<48x1xf32>
    %cst_58 = arith.constant 3.200000e+01 : f32
    %196 = vector.broadcast %cst_58 : f32 to vector<48x1xf32>
    %197 = arith.divf %195, %196 : vector<48x1xf32>
    %198 = vector.broadcast %190 : vector<48x1xf32> to vector<48x32xf32>
    %199 = arith.subf %169, %198 : vector<48x32xf32>
    %cst_59 = arith.constant 9.99999996E-13 : f32
    %200 = vector.broadcast %cst_59 : f32 to vector<48x1xf32>
    %201 = arith.addf %197, %200 : vector<48x1xf32>
    %202 = math.rsqrt %201 : vector<48x1xf32>
    %203 = vector.broadcast %202 : vector<48x1xf32> to vector<48x32xf32>
    %204 = arith.mulf %199, %203 : vector<48x32xf32>
    %205 = vector.broadcast %172 : vector<1x32xf32> to vector<48x32xf32>
    %206 = arith.mulf %204, %205 : vector<48x32xf32>
    %207 = vector.broadcast %173 : vector<1x32xf32> to vector<48x32xf32>
    %208 = arith.addf %206, %207 : vector<48x32xf32>
    %209 = arith.truncf %208 : vector<48x32xf32> to vector<48x32xbf16>
    %cst_60 = arith.constant dense<0.000000e+00> : vector<48x96xf32>
    %210 = tpu.matmul %209, %182, %cst_60 {dimension_numbers = #tpu.dot_dimension_numbers<[1], [0], [0], [1], [0, 0, 1, 1], [], []>} : vector<48x32xbf16>, vector<32x96xbf16>, vector<48x96xf32> -> vector<48x96xf32>
    %211 = vector.broadcast %174 : vector<1x96xf32> to vector<48x96xf32>
    %212 = arith.addf %210, %211 : vector<48x96xf32>
    %213 = vector.extract_strided_slice %212 {offsets = [0, 0], sizes = [48, 16], strides = [1, 1]} : vector<48x96xf32> to vector<48x16xf32>
    %214 = arith.truncf %213 : vector<48x16xf32> to vector<48x16xbf16>
    %215 = vector.extract_strided_slice %212 {offsets = [0, 32], sizes = [48, 16], strides = [1, 1]} : vector<48x96xf32> to vector<48x16xf32>
    %216 = arith.truncf %215 : vector<48x16xf32> to vector<48x16xbf16>
    %217 = vector.extract_strided_slice %212 {offsets = [0, 64], sizes = [48, 16], strides = [1, 1]} : vector<48x96xf32> to vector<48x16xf32>
    %218 = arith.truncf %217 : vector<48x16xf32> to vector<48x16xbf16>
    %cst_61 = arith.constant dense<0.000000e+00> : vector<48x48xf32>
    %219 = tpu.matmul %214, %216, %cst_61 {dimension_numbers = #tpu.dot_dimension_numbers<[1], [1], [0], [0], [0, 0, 1, 0], [], []>} : vector<48x16xbf16>, vector<48x16xbf16>, vector<48x48xf32> -> vector<48x48xf32>
    %cst_62 = arith.constant 2.500000e-01 : f32
    %220 = vector.broadcast %cst_62 : f32 to vector<48x48xf32>
    %221 = arith.mulf %219, %220 : vector<48x48xf32>
    %cst_63 = arith.constant -1.000000e+30 : f32
    %222 = vector.broadcast %cst_63 : f32 to vector<48x48xf32>
    %223 = arith.select %30, %221, %222 : vector<48x48xi1>, vector<48x48xf32>
    %cst_64 = arith.constant dense<0xFF800000> : vector<48xf32>
    %224 = vector.multi_reduction <maximumf>, %223, %cst_64 [1] : vector<48x48xf32> to vector<48xf32>
    %225 = vector.shape_cast %224 : vector<48xf32> to vector<48x1xf32>
    %226 = vector.broadcast %225 : vector<48x1xf32> to vector<48x48xf32>
    %227 = arith.subf %223, %226 : vector<48x48xf32>
    %228 = math.exp %227 : vector<48x48xf32>
    %cst_65 = arith.constant dense<0.000000e+00> : vector<48xf32>
    %229 = vector.multi_reduction <add>, %228, %cst_65 [1] : vector<48x48xf32> to vector<48xf32>
    %230 = vector.shape_cast %229 : vector<48xf32> to vector<48x1xf32>
    %231 = tpu.reciprocal %230 {approx = true} : vector<48x1xf32> -> vector<48x1xf32>
    %232 = vector.broadcast %231 : vector<48x1xf32> to vector<48x48xf32>
    %233 = arith.mulf %228, %232 : vector<48x48xf32>
    %234 = arith.truncf %233 : vector<48x48xf32> to vector<48x48xbf16>
    %cst_66 = arith.constant dense<0.000000e+00> : vector<48x16xf32>
    %235 = tpu.matmul %234, %218, %cst_66 {dimension_numbers = #tpu.dot_dimension_numbers<[1], [0], [0], [1], [0, 0, 1, 1], [], []>} : vector<48x48xbf16>, vector<48x16xbf16>, vector<48x16xf32> -> vector<48x16xf32>
    %236 = vector.extract_strided_slice %212 {offsets = [0, 16], sizes = [48, 16], strides = [1, 1]} : vector<48x96xf32> to vector<48x16xf32>
    %237 = arith.truncf %236 : vector<48x16xf32> to vector<48x16xbf16>
    %238 = vector.extract_strided_slice %212 {offsets = [0, 48], sizes = [48, 16], strides = [1, 1]} : vector<48x96xf32> to vector<48x16xf32>
    %239 = arith.truncf %238 : vector<48x16xf32> to vector<48x16xbf16>
    %240 = vector.extract_strided_slice %212 {offsets = [0, 80], sizes = [48, 16], strides = [1, 1]} : vector<48x96xf32> to vector<48x16xf32>
    %241 = arith.truncf %240 : vector<48x16xf32> to vector<48x16xbf16>
    %cst_67 = arith.constant dense<0.000000e+00> : vector<48x48xf32>
    %242 = tpu.matmul %237, %239, %cst_67 {dimension_numbers = #tpu.dot_dimension_numbers<[1], [1], [0], [0], [0, 0, 1, 0], [], []>} : vector<48x16xbf16>, vector<48x16xbf16>, vector<48x48xf32> -> vector<48x48xf32>
    %cst_68 = arith.constant 2.500000e-01 : f32
    %243 = vector.broadcast %cst_68 : f32 to vector<48x48xf32>
    %244 = arith.mulf %242, %243 : vector<48x48xf32>
    %cst_69 = arith.constant -1.000000e+30 : f32
    %245 = vector.broadcast %cst_69 : f32 to vector<48x48xf32>
    %246 = arith.select %30, %244, %245 : vector<48x48xi1>, vector<48x48xf32>
    %cst_70 = arith.constant dense<0xFF800000> : vector<48xf32>
    %247 = vector.multi_reduction <maximumf>, %246, %cst_70 [1] : vector<48x48xf32> to vector<48xf32>
    %248 = vector.shape_cast %247 : vector<48xf32> to vector<48x1xf32>
    %249 = vector.broadcast %248 : vector<48x1xf32> to vector<48x48xf32>
    %250 = arith.subf %246, %249 : vector<48x48xf32>
    %251 = math.exp %250 : vector<48x48xf32>
    %cst_71 = arith.constant dense<0.000000e+00> : vector<48xf32>
    %252 = vector.multi_reduction <add>, %251, %cst_71 [1] : vector<48x48xf32> to vector<48xf32>
    %253 = vector.shape_cast %252 : vector<48xf32> to vector<48x1xf32>
    %254 = tpu.reciprocal %253 {approx = true} : vector<48x1xf32> -> vector<48x1xf32>
    %255 = vector.broadcast %254 : vector<48x1xf32> to vector<48x48xf32>
    %256 = arith.mulf %251, %255 : vector<48x48xf32>
    %257 = arith.truncf %256 : vector<48x48xf32> to vector<48x48xbf16>
    %cst_72 = arith.constant dense<0.000000e+00> : vector<48x16xf32>
    %258 = tpu.matmul %257, %241, %cst_72 {dimension_numbers = #tpu.dot_dimension_numbers<[1], [0], [0], [1], [0, 0, 1, 1], [], []>} : vector<48x48xbf16>, vector<48x16xbf16>, vector<48x16xf32> -> vector<48x16xf32>
    %259 = tpu.concatenate %235, %258 in 1 : vector<48x16xf32>, vector<48x16xf32> -> vector<48x32xf32>
    %260 = arith.truncf %259 : vector<48x32xf32> to vector<48x32xbf16>
    %cst_73 = arith.constant dense<0.000000e+00> : vector<48x32xf32>
    %261 = tpu.matmul %260, %183, %cst_73 {dimension_numbers = #tpu.dot_dimension_numbers<[1], [0], [0], [1], [0, 0, 1, 1], [], []>} : vector<48x32xbf16>, vector<32x32xbf16>, vector<48x32xf32> -> vector<48x32xf32>
    %262 = vector.broadcast %175 : vector<1x32xf32> to vector<48x32xf32>
    %263 = arith.addf %261, %262 : vector<48x32xf32>
    %264 = arith.addf %169, %263 : vector<48x32xf32>
    %cst_74 = arith.constant dense<0.000000e+00> : vector<48xf32>
    %265 = vector.multi_reduction <add>, %264, %cst_74 [1] : vector<48x32xf32> to vector<48xf32>
    %266 = vector.shape_cast %265 : vector<48xf32> to vector<48x1xf32>
    %cst_75 = arith.constant 3.200000e+01 : f32
    %267 = vector.broadcast %cst_75 : f32 to vector<48x1xf32>
    %268 = arith.divf %266, %267 : vector<48x1xf32>
    %269 = vector.broadcast %268 : vector<48x1xf32> to vector<48x32xf32>
    %270 = arith.subf %264, %269 : vector<48x32xf32>
    %271 = arith.mulf %270, %270 : vector<48x32xf32>
    %cst_76 = arith.constant dense<0.000000e+00> : vector<48xf32>
    %272 = vector.multi_reduction <add>, %271, %cst_76 [1] : vector<48x32xf32> to vector<48xf32>
    %273 = vector.shape_cast %272 : vector<48xf32> to vector<48x1xf32>
    %cst_77 = arith.constant 3.200000e+01 : f32
    %274 = vector.broadcast %cst_77 : f32 to vector<48x1xf32>
    %275 = arith.divf %273, %274 : vector<48x1xf32>
    %276 = vector.broadcast %268 : vector<48x1xf32> to vector<48x32xf32>
    %277 = arith.subf %264, %276 : vector<48x32xf32>
    %cst_78 = arith.constant 9.99999996E-13 : f32
    %278 = vector.broadcast %cst_78 : f32 to vector<48x1xf32>
    %279 = arith.addf %275, %278 : vector<48x1xf32>
    %280 = math.rsqrt %279 : vector<48x1xf32>
    %281 = vector.broadcast %280 : vector<48x1xf32> to vector<48x32xf32>
    %282 = arith.mulf %277, %281 : vector<48x32xf32>
    %283 = vector.broadcast %176 : vector<1x32xf32> to vector<48x32xf32>
    %284 = arith.mulf %282, %283 : vector<48x32xf32>
    %285 = vector.broadcast %177 : vector<1x32xf32> to vector<48x32xf32>
    %286 = arith.addf %284, %285 : vector<48x32xf32>
    %287 = arith.truncf %286 : vector<48x32xf32> to vector<48x32xbf16>
    %cst_79 = arith.constant dense<0.000000e+00> : vector<48x64xf32>
    %288 = tpu.matmul %287, %184, %cst_79 {dimension_numbers = #tpu.dot_dimension_numbers<[1], [0], [0], [1], [0, 0, 1, 1], [], []>} : vector<48x32xbf16>, vector<32x64xbf16>, vector<48x64xf32> -> vector<48x64xf32>
    %289 = vector.broadcast %178 : vector<1x64xf32> to vector<48x64xf32>
    %290 = arith.addf %288, %289 : vector<48x64xf32>
    %291 = arith.mulf %290, %290 : vector<48x64xf32>
    %292 = arith.mulf %290, %291 : vector<48x64xf32>
    %cst_80 = arith.constant 4.471500e-02 : f32
    %293 = vector.broadcast %cst_80 : f32 to vector<48x64xf32>
    %294 = arith.mulf %293, %292 : vector<48x64xf32>
    %295 = arith.addf %290, %294 : vector<48x64xf32>
    %cst_81 = arith.constant 0.797884583 : f32
    %296 = vector.broadcast %cst_81 : f32 to vector<48x64xf32>
    %297 = arith.mulf %296, %295 : vector<48x64xf32>
    %298 = math.tanh %297 : vector<48x64xf32>
    %cst_82 = arith.constant 1.000000e+00 : f32
    %299 = vector.broadcast %cst_82 : f32 to vector<48x64xf32>
    %300 = arith.addf %299, %298 : vector<48x64xf32>
    %cst_83 = arith.constant 5.000000e-01 : f32
    %301 = vector.broadcast %cst_83 : f32 to vector<48x64xf32>
    %302 = arith.mulf %301, %300 : vector<48x64xf32>
    %303 = arith.mulf %290, %302 : vector<48x64xf32>
    %304 = arith.truncf %303 : vector<48x64xf32> to vector<48x64xbf16>
    %cst_84 = arith.constant dense<0.000000e+00> : vector<48x32xf32>
    %305 = tpu.matmul %304, %186, %cst_84 {dimension_numbers = #tpu.dot_dimension_numbers<[1], [0], [0], [1], [0, 0, 1, 1], [], []>} : vector<48x64xbf16>, vector<64x32xbf16>, vector<48x32xf32> -> vector<48x32xf32>
    %306 = vector.broadcast %179 : vector<1x32xf32> to vector<48x32xf32>
    %307 = arith.addf %305, %306 : vector<48x32xf32>
    %308 = arith.addf %264, %307 : vector<48x32xf32>
    %c0_85 = arith.constant 0 : index
    %c0_86 = arith.constant 0 : index
    %309 = vector.load %arg6[%c0_85, %c0_86] : memref<2x32xf32, #tpu.memory_space<vmem>>, vector<1x32xf32>
    %c1_87 = arith.constant 1 : index
    %c0_88 = arith.constant 0 : index
    %310 = vector.load %arg6[%c1_87, %c0_88] : memref<2x32xf32, #tpu.memory_space<vmem>>, vector<1x32xf32>
    %cst_89 = arith.constant dense<0.000000e+00> : vector<48xf32>
    %311 = vector.multi_reduction <add>, %308, %cst_89 [1] : vector<48x32xf32> to vector<48xf32>
    %312 = vector.shape_cast %311 : vector<48xf32> to vector<48x1xf32>
    %cst_90 = arith.constant 3.200000e+01 : f32
    %313 = vector.broadcast %cst_90 : f32 to vector<48x1xf32>
    %314 = arith.divf %312, %313 : vector<48x1xf32>
    %315 = vector.broadcast %314 : vector<48x1xf32> to vector<48x32xf32>
    %316 = arith.subf %308, %315 : vector<48x32xf32>
    %317 = arith.mulf %316, %316 : vector<48x32xf32>
    %cst_91 = arith.constant dense<0.000000e+00> : vector<48xf32>
    %318 = vector.multi_reduction <add>, %317, %cst_91 [1] : vector<48x32xf32> to vector<48xf32>
    %319 = vector.shape_cast %318 : vector<48xf32> to vector<48x1xf32>
    %cst_92 = arith.constant 3.200000e+01 : f32
    %320 = vector.broadcast %cst_92 : f32 to vector<48x1xf32>
    %321 = arith.divf %319, %320 : vector<48x1xf32>
    %322 = vector.broadcast %314 : vector<48x1xf32> to vector<48x32xf32>
    %323 = arith.subf %308, %322 : vector<48x32xf32>
    %cst_93 = arith.constant 9.99999996E-13 : f32
    %324 = vector.broadcast %cst_93 : f32 to vector<48x1xf32>
    %325 = arith.addf %321, %324 : vector<48x1xf32>
    %326 = math.rsqrt %325 : vector<48x1xf32>
    %327 = vector.broadcast %326 : vector<48x1xf32> to vector<48x32xf32>
    %328 = arith.mulf %323, %327 : vector<48x32xf32>
    %329 = vector.broadcast %309 : vector<1x32xf32> to vector<48x32xf32>
    %330 = arith.mulf %328, %329 : vector<48x32xf32>
    %331 = vector.broadcast %310 : vector<1x32xf32> to vector<48x32xf32>
    %332 = arith.addf %330, %331 : vector<48x32xf32>
    %333 = arith.mulf %332, %332 : vector<48x32xf32>
    %cst_94 = arith.constant dense<0.000000e+00> : vector<48xf32>
    %334 = vector.multi_reduction <add>, %333, %cst_94 [1] : vector<48x32xf32> to vector<48xf32>
    %335 = vector.shape_cast %334 : vector<48xf32> to vector<48x1xf32>
    %cst_95 = arith.constant 1.000000e-24 : f32
    %336 = vector.broadcast %cst_95 : f32 to vector<48x1xf32>
    %337 = arith.maximumf %335, %336 : vector<48x1xf32>
    %338 = math.rsqrt %337 : vector<48x1xf32>
    %339 = vector.broadcast %338 : vector<48x1xf32> to vector<48x32xf32>
    %340 = arith.mulf %332, %339 : vector<48x32xf32>
    %c0_96 = arith.constant 0 : index
    %c0_97 = arith.constant 0 : index
    %341 = vector.load %arg7[%c0_96, %c0_97] : memref<48x32xf32, #tpu.memory_space<vmem>>, vector<48x32xf32>
    tpu.vector_store %arg7[%c0_96, %c0_97], %340 {strides = array<i32>} : memref<48x32xf32, #tpu.memory_space<vmem>>, vector<48x32xf32>,
    return
  }
}

</mosaic_0001>

<bundles_post_ra>
// kernel: vit_wrapper_forward.1
= control target key start
LH: loop header
LB: loop body
LE: loop exit
PB: predicated region body
PF: predicated region fallthrough
CT: control target
= control target key end

     0   :  { %v3381_v0 = vmov 0.0   ;;  %vm3382_vm0 = vmmov 0   ;;  %vm74_vm1 = vcmask 523264   ;;  %vm223_vm2 = vcmask 261120   ;;  %s3384_s13 = smov 80   ;;  %s3385_s14 = smov 112   ;;  %s4443_s1 = inlined_call_operand.vmem [shape: bf16[64,32], index: 1, kind: input, shape index: {}]   ;;  %s4444_s0 = inlined_call_operand.vmem [shape: f32[48,64], index: 0, kind: input, shape index: {}]   ;;  %s4445_s2 = inlined_call_operand.vmem [shape: f32[48,32], index: 2, kind: input, shape index: {}]   ;;  %s4446_s3 = inlined_call_operand.vmem [shape: bf16[2,32,192], index: 3, kind: input, shape index: {}]   ;;  %s4447_s5 = inlined_call_operand.vmem [shape: f32[2,8,96], index: 5, kind: input, shape index: {}]   ;;  %s4448_s4 = inlined_call_operand.vmem [shape: bf16[2,64,32], index: 4, kind: input, shape index: {}]   ;;  %s4449_s6 = inlined_call_operand.vmem [shape: f32[2,32], index: 6, kind: input, shape index: {}]   ;;  %s4450_s7 = inlined_call_operand.vmem [shape: f32[48,32], index: 7, kind: output, shape index: {}]  }
   0x1   :  { %2820 = vmatprep.subr.bf16.mxu0 %v3381_v0  ;;  %v3163_v1 = vld [vmem:[%s4443_s1] sm:$0xff]   ;;  %2828 = vmatprep.mubr.msk.bf16.mxu0 %vm3382_vm0, %v3381_v0  ;;  %v3164_v2 = vld [vmem:[%s4443_s1 + $0x8] sm:$0xff]   ;;  %v3165_v3 = vld [vmem:[%s4443_s1 + $0x10] sm:$0xff]   ;;  %s3386_s15 = smov 64   ;;  %vm420_vm3 = vcmask 130048   ;;  %vm508_vm5 = vcmask 392192  }
   0x2   :  { %2840 = vmatprep.subr.bf16.mxu1 %v3381_v0  ;;  %2844 = vmatprep.mubr.msk.bf16.mxu1 %vm3382_vm0, %v3381_v0  ;;  %v3166_v4 = vld [vmem:[%s4443_s1 + $0x18] sm:$0xff]   ;;  %v27_v5 = vld [vmem:[%s4444_s0] sm:$0xff]  ;;  %v28_v6 = vld [vmem:[%s4444_s0 + $0x8] sm:$0xff]  ;;  %s3383_s1 = smov 96   ;;  %s3387_s16 = smov 48  }
   0x3   :  { %2821 = vmatpush3.bf16.msra.mxu0 %v3163_v1  ;;  %v33_v7 = vpack.c.bf16 %v28_v6, %v27_v5  ;;  %v29_v8 = vld [vmem:[%s4444_s0 + $0x10] sm:$0xff]  ;;  %v30_v9 = vld [vmem:[%s4444_s0 + $0x18] sm:$0xff]  ;;  %v31_v11 = vld [vmem:[%s4444_s0 + $0x20] sm:$0xff]  ;;  %s3388_s17 = smov 32   ;;  %s3389_s18 = smov 16  }
   0x4   :  { %2822 = vmatprep.subr.bf16.mxu0 %v3381_v0  ;;  %v34_v10 = vpack.c.bf16 %v30_v9, %v29_v8  ;;  %v32_v12 = vld [vmem:[%s4444_s0 + $0x28] sm:$0xff]  ;;  %v44_v14 = vld [vmem:[%s4445_s2] sm:$0xff]  ;;  %v46_v23 = vld [vmem:[%s4445_s2 + $0x10] sm:$0xff] }
   0x5   :  { %v35_v13 = vpack.c.bf16 %v32_v12, %v31_v11  ;;  %v45_v16 = vld [vmem:[%s4445_s2 + $0x8] sm:$0xff]  ;;  %v47_v26 = vld [vmem:[%s4445_s2 + $0x18] sm:$0xff]  ;;  %v48_v33 = vld [vmem:[%s4445_s2 + $0x20] sm:$0xff] }
   0x6   :  { %v49_v36 = vld [vmem:[%s4445_s2 + $0x28] sm:$0xff]  ;;  %v3567_v12 = vld [vmem:[%s4446_s3 + $0x10] ss:$8 sps:$4 sm:$0xff]  }
   0x7   :  { %2823 = vmatpush3.bf16.msra.mxu0 %v3164_v2  ;;  %v3560_v11 = vld [vmem:[%s4446_s3] ss:$8 sps:$4 sm:$0xff]  }
   0x8   :  { %2824 = vmatprep.subr.bf16.mxu0 %v3381_v0  ;;  %2841 = vmatpush3.bf16.msra.mxu1 %v3560_v11 }
   0x9   :  { %2842 = vmatprep.subr.bf16.mxu1 %v3381_v0 }
   0xb   :  { %2825 = vmatpush3.bf16.msra.mxu0 %v3165_v3 }
   0xc   :  { %2826 = vmatprep.subr.bf16.mxu0 %v3381_v0  ;;  %2843 = vmatpush3.bf16.msra.mxu1 %v3567_v12 }
   0xd   :  { %2856 = vmatprep.subr.bf16.mxu1 %v3381_v0 }
   0xf   :  { %2827 = vmatpush3.bf16.msra.mxu0 %v3166_v4 }
  0x10   :  { %2874 = vmatprep.subr.bf16.mxu0 %v3381_v0 }
  0x12   :  { %2829 = vmatmul.mubr.msk.bf16.vlgmr.msra.gmra.mrb[0].mxu0 %vm74_vm1, %v33_v7 }
  0x13   :  { %2832 = vmatprep.mubr.msk.bf16.mxu0 %vm3382_vm0, %v3381_v0 }
  0x1a   :  { %2833 = vmatmul.mubr.msk.bf16.gmra.mrb[4].mxu0 %vm74_vm1, %v34_v10 }
  0x1b   :  { %2836 = vmatprep.mubr.msk.bf16.mxu0 %vm3382_vm0, %v3381_v0 }
  0x22   :  { %2837 = vmatmul.mubr.msk.bf16.gmra.mrb[8].mxu0 %vm74_vm1, %v35_v13 }
  0x23   :  { %2880 = vmatprep.mubr.msk.bf16.mxu0 %vm3382_vm0, %v3381_v0 }
  0xe5   :  { %v118_v15 = vpop.f32.mrb[0].mxu0 }
  0xe6   :  { %v3485_v17 = vadd.f32 %v118_v15, %v44_v14  ;;  %v2830_v18 = vpop.f32.mrb[1].mxu0 }
  0xe7   :  { %v121_v19 = vpop.f32.mrb[2].mxu0  ;;  %v148_v18 = vlaneseq }
  0xe8   :  { %v3487_v20 = vadd.f32 %v121_v19, %v45_v16  ;;  %v2831_v21 = vpop.f32.mrb[3].mxu0  ;;  %v224_v22 = vsel %vm223_vm2, %v3485_v17, 0.0 }
  0xe9   :  { %225 = vadd.xlane.f32.xlu0 %v224_v22 }
  0xea   :  { %v227_v24 = vsel %vm223_vm2, %v3487_v20, 0.0 }
  0xed   :  { %228 = vadd.xlane.f32.xlu0 %v227_v24  ;;  %v126_v25 = vpop.f32.mrb[4].mxu0 }
  0xee   :  { %v3499_v27 = vadd.f32 %v126_v25, %v46_v23  ;;  %v2834_v28 = vpop.f32.mrb[5].mxu0  ;;  %v3572_v23 = vshrl.u32 %v148_v18, 7 }
  0xef   :  { %v129_v29 = vpop.f32.mrb[6].mxu0 }
  0xf0   :  { %v3501_v30 = vadd.f32 %v129_v29, %v47_v26  ;;  %v2835_v31 = vpop.f32.mrb[7].mxu0  ;;  %v230_v32 = vsel %vm223_vm2, %v3499_v27, 0.0  ;;  %v305_v28 = vsub.s32 0, %v3572_v23 }
  0xf1   :  { %231 = vadd.xlane.f32.xlu1 %v230_v32  ;;  %v3578_v31 = vld [vmem:[%s4447_s5] sm:$0xff] }
  0xf2   :  { %v233_v34 = vsel %vm223_vm2, %v3501_v30, 0.0 }
  0xf5   :  { %234 = vadd.xlane.f32.xlu1 %v233_v34  ;;  %v134_v35 = vpop.f32.mrb[8].mxu0 }
  0xf6   :  { %v3513_v37 = vadd.f32 %v134_v35, %v48_v33  ;;  %v2838_v38 = vpop.f32.mrb[9].mxu0 }
  0xf7   :  { %v137_v39 = vpop.f32.mrb[10].mxu0  ;;  %v315_v38 = vsub.s32 1, %v3572_v23 }
  0xf8   :  { %v3515_v40 = vadd.f32 %v137_v39, %v49_v36  ;;  %v2839_v41 = vpop.f32.mrb[11].mxu0  ;;  %v236_v42 = vsel %vm223_vm2, %v3513_v37, 0.0  ;;  %v306_v36 = vrot.slane %v3578_v31, %v305_v28 }
  0xf9   :  { %237 = vadd.xlane.f32.xlu0 %v236_v42 }
  0xfa   :  { %v239_v43 = vsel %vm223_vm2, %v3515_v40, 0.0 }
  0xfb   :  { %240 = vadd.xlane.f32.xlu1 %v239_v43 }
 0x176   :  { %v226_v44 = vpop.xlane.xlu0 %225 }
 0x177   :  { %v243_v45 = vmul.f32 0.03125, %v226_v44 }
 0x179   :  { %v3522_v46 = vsub.f32 %v3485_v17, %v243_v45 }
 0x17a   :  { %v229_v47 = vpop.xlane.xlu0 %228 }
 0x17b   :  { %v244_v48 = vmul.f32 0.03125, %v229_v47  ;;  %v255_v49 = vmul.f32 %v3522_v46, %v3522_v46 }
 0x17d   :  { %v3527_v50 = vsub.f32 %v3487_v20, %v244_v48  ;;  %v261_v51 = vsel %vm223_vm2, %v255_v49, 0.0  ;;  %v316_v48 = vrot.slane %v3578_v31, %v315_v38 }
 0x17e   :  { %v232_v52 = vpop.xlane.xlu1 %231  ;;  %262 = vadd.xlane.f32.xlu0 %v261_v51 }
 0x17f   :  { %v245_v53 = vmul.f32 0.03125, %v232_v52  ;;  %v256_v54 = vmul.f32 %v3527_v50, %v3527_v50 }
 0x181   :  { %v3533_v55 = vsub.f32 %v3499_v27, %v245_v53  ;;  %v264_v56 = vsel %vm223_vm2, %v256_v54, 0.0 }
 0x182   :  { %v235_v57 = vpop.xlane.xlu1 %234  ;;  %265 = vadd.xlane.f32.xlu1 %v264_v56 }
 0x183   :  { %v246_v58 = vmul.f32 0.03125, %v235_v57  ;;  %v257_v59 = vmul.f32 %v3533_v55, %v3533_v55 }
 0x185   :  { %v3539_v60 = vsub.f32 %v3501_v30, %v246_v58  ;;  %v267_v61 = vsel %vm223_vm2, %v257_v59, 0.0 }
 0x186   :  { %268 = vadd.xlane.f32.xlu0 %v267_v61  ;;  %v238_v62 = vpop.xlane.xlu0 %237 }
 0x187   :  { %v247_v63 = vmul.f32 0.03125, %v238_v62  ;;  %v258_v1 = vmul.f32 %v3539_v60, %v3539_v60 }
 0x188   :  { %v241_v2 = vpop.xlane.xlu1 %240 }
 0x189   :  { %v3545_v3 = vsub.f32 %v3513_v37, %v247_v63  ;;  %v248_v4 = vmul.f32 0.03125, %v241_v2  ;;  %v270_v5 = vsel %vm223_vm2, %v258_v1, 0.0 }
 0x18a   :  { %271 = vadd.xlane.f32.xlu1 %v270_v5 }
 0x18b   :  { %v3549_v6 = vsub.f32 %v3515_v40, %v248_v4  ;;  %v259_v7 = vmul.f32 %v3545_v3, %v3545_v3 }
 0x18d   :  { %v273_v8 = vsel %vm223_vm2, %v259_v7, 0.0  ;;  %v260_v9 = vmul.f32 %v3549_v6, %v3549_v6 }
 0x18e   :  { %274 = vadd.xlane.f32.xlu0 %v273_v8 }
 0x18f   :  { %v276_v10 = vsel %vm223_vm2, %v260_v9, 0.0 }
 0x190   :  { %277 = vadd.xlane.f32.xlu1 %v276_v10 }
 0x20b   :  { %v263_v13 = vpop.xlane.xlu0 %262 }
 0x20c   :  { %v279_v14 = vmul.f32 0.03125, %v263_v13 }
 0x20e   :  { %v285_v15 = vadd.f32 1e-12, %v279_v14 }
 0x20f   :  { %v266_v16 = vpop.xlane.xlu1 %265 }
 0x210   :  { %3187 = vrsqrt.f32 %v285_v15  ;;  %v280_v19 = vmul.f32 0.03125, %v266_v16 }
 0x212   :  { %v286_v21 = vadd.f32 1e-12, %v280_v19 }
 0x213   :  { %v269_v22 = vpop.xlane.xlu0 %268 }
 0x214   :  { %3189 = vrsqrt.f32 %v286_v21  ;;  %v281_v24 = vmul.f32 0.03125, %v269_v22 }
 0x216   :  { %v287_v25 = vadd.f32 1e-12, %v281_v24 }
 0x217   :  { %v272_v26 = vpop.xlane.xlu1 %271 }
 0x218   :  { %3191 = vrsqrt.f32 %v287_v25  ;;  %v282_v29 = vmul.f32 0.03125, %v272_v26 }
 0x21a   :  { %v3188_v32 = vpop.eup %3187  ;;  %v288_v33 = vadd.f32 1e-12, %v282_v29 }
 0x21b   :  { %v275_v34 = vpop.xlane.xlu0 %274  ;;  %v297_v35 = vmul.f32 %v3188_v32, %v3522_v46 }
 0x21c   :  { %3193 = vrsqrt.f32 %v288_v33  ;;  %v283_v39 = vmul.f32 0.03125, %v275_v34 }
 0x21d   :  { %v278_v41 = vpop.xlane.xlu1 %277  ;;  %v307_v47 = vmul.f32 %v306_v36, %v297_v35 }
 0x21e   :  { %v3190_v42 = vpop.eup %3189  ;;  %v289_v43 = vadd.f32 1e-12, %v283_v39  ;;  %v284_v44 = vmul.f32 0.03125, %v278_v41 }
 0x21f   :  { %v298_v45 = vmul.f32 %v3190_v42, %v3527_v50  ;;  %v317_v52 = vadd.f32 %v316_v48, %v307_v47 }
 0x220   :  { %3195 = vrsqrt.f32 %v289_v43  ;;  %v290_v46 = vadd.f32 1e-12, %v284_v44 }
 0x221   :  { %v308_v49 = vmul.f32 %v306_v36, %v298_v45 }
 0x222   :  { %v3192_v51 = vpop.eup %3191  ;;  %3197 = vrsqrt.f32 %v290_v46 }
 0x223   :  { %v318_v53 = vadd.f32 %v316_v48, %v308_v49  ;;  %v299_v54 = vmul.f32 %v3192_v51, %v3533_v55 }
 0x225   :  { %v323_v56 = vpack.c.bf16 %v318_v53, %v317_v52  ;;  %v309_v58 = vmul.f32 %v306_v36, %v299_v54 }
 0x226   :  { %v3194_v57 = vpop.eup %3193 }
 0x227   :  { %2845 = vmatmul.mubr.msk.bf16.vlgmr.msra.gmra.mrb[0].mxu1 %vm223_vm2, %v323_v56  ;;  %v300_v50 = vmul.f32 %v3194_v57, %v3539_v60  ;;  %v319_v62 = vadd.f32 %v316_v48, %v309_v58 }
 0x228   :  { %2848 = vmatprep.mubr.msk.bf16.mxu1 %vm3382_vm0, %v3381_v0 }
 0x229   :  { %v310_v59 = vmul.f32 %v306_v36, %v300_v50 }
 0x22a   :  { %v3196_v61 = vpop.eup %3195 }
 0x22b   :  { %v320_v63 = vadd.f32 %v316_v48, %v310_v59  ;;  %v301_v1 = vmul.f32 %v3196_v61, %v3545_v3  ;;  %v328_v3 = vsub.s32 2, %v3572_v23 }
 0x22c   :  { %v3198_v2 = vpop.eup %3197 }
 0x22d   :  { %v324_v4 = vpack.c.bf16 %v320_v63, %v319_v62  ;;  %v302_v55 = vmul.f32 %v3198_v2, %v3549_v6  ;;  %v311_v5 = vmul.f32 %v306_v36, %v301_v1  ;;  %v329_v6 = vrot.slane %v3578_v31, %v328_v3 }
 0x22e   :  { %v3667_v62 = vand.u32 127, %v148_v18 }
 0x22f   :  { %2849 = vmatmul.mubr.msk.bf16.gmra.mrb[4].mxu1 %vm223_vm2, %v324_v4  ;;  %v312_v7 = vmul.f32 %v306_v36, %v302_v55  ;;  %v321_v8 = vadd.f32 %v316_v48, %v311_v5 }
 0x230   :  { %2852 = vmatprep.mubr.msk.bf16.mxu1 %vm3382_vm0, %v3381_v0  ;;  %vm169_vm4 = vcmp.lt.s32.totalorder %v3667_v62, 17  ;;  %vm195_vm6 = vcmp.ge.s32.totalorder %v3667_v62, 24  ;;  %vm196_vm7 = vcmp.lt.s32.totalorder %v3667_v62, 41 }
 0x231   :  { %v322_v60 = vadd.f32 %v316_v48, %v312_v7  ;;  %vm3684_vm8 = vmand %vm195_vm6, %vm196_vm7 }
 0x233   :  { %v325_v9 = vpack.c.bf16 %v322_v60, %v321_v8 }
 0x237   :  { %2853 = vmatmul.mubr.msk.bf16.gmra.mrb[8].mxu1 %vm223_vm2, %v325_v9 }
 0x238   :  { %2862 = vmatprep.mubr.msk.bf16.mxu1 %vm3382_vm0, %v3381_v0 }
 0x2fa   :  { %v385_v10 = vpop.f32.mrb[0].mxu1 }
 0x2fb   :  { %v2846_v13 = vpop.f32.mrb[1].mxu1  ;;  %v386_v15 = vadd.f32 %v385_v10, %v329_v6 }
 0x2fc   :  { %v388_v14 = vpop.f32.mrb[2].mxu1 }
 0x2fd   :  { %v389_v16 = vadd.f32 %v388_v14, %v329_v6  ;;  %v2847_v19 = vpop.f32.mrb[3].mxu1 }
 0x2ff   :  { %v3606_v21 = vpack.c.bf16 %v389_v16, %v386_v15 }
 0x301   :  { %414 = vrot.lane.b32.xlu0 %v3606_v21, %s3383_s1 }
 0x302   :  { %v393_v22 = vpop.f32.mrb[4].mxu1 }
 0x303   :  { %v2850_v24 = vpop.f32.mrb[5].mxu1  ;;  %v394_v26 = vadd.f32 %v393_v22, %v329_v6 }
 0x304   :  { %v396_v25 = vpop.f32.mrb[6].mxu1 }
 0x305   :  { %v397_v29 = vadd.f32 %v396_v25, %v329_v6  ;;  %v2851_v32 = vpop.f32.mrb[7].mxu1 }
 0x307   :  { %v3610_v33 = vpack.c.bf16 %v397_v29, %v394_v26 }
 0x309   :  { %661 = vrot.lane.b32.xlu0 %v3610_v33, %s3384_s13  ;;  %416 = vrot.lane.b32.xlu1 %v3610_v33, %s3383_s1 }
 0x30a   :  { %v401_v34 = vpop.f32.mrb[8].mxu1 }
 0x30b   :  { %v2854_v35 = vpop.f32.mrb[9].mxu1  ;;  %v402_v39 = vadd.f32 %v401_v34, %v329_v6 }
 0x30c   :  { %v404_v36 = vpop.f32.mrb[10].mxu1 }
 0x30d   :  { %v405_v41 = vadd.f32 %v404_v36, %v329_v6  ;;  %653 = vrot.lane.b32.xlu0 %v3606_v21, %s3385_s14  ;;  %v2855_v42 = vpop.f32.mrb[11].mxu1 }
 0x30f   :  { %v3618_v43 = vpack.c.bf16 %v405_v41, %v402_v39 }
 0x311   :  { %657 = vrot.lane.b32.xlu0 %v3618_v43, %s3385_s14  ;;  %418 = vrot.lane.b32.xlu1 %v3618_v43, %s3383_s1 }
 0x315   :  { %659 = vrot.lane.b32.xlu1 %v3606_v21, %s3384_s13 }
 0x319   :  { %663 = vrot.lane.b32.xlu1 %v3618_v43, %s3384_s13 }
 0x31d   :  { %655 = vrot.lane.b32.xlu1 %v3610_v33, %s3385_s14 }
 0x321   :  { %578 = vrot.lane.b32.xlu1 %v3606_v21, %s3386_s15 }
 0x373   :  { %v415_v44 = vpop.permute.xlu0 %414 }
 0x374   :  { %v431_v45 = vsel %vm420_vm3, %v415_v44, 0 }
 0x375   :  { %2857 = vmatpush3.bf16.xpose.msra.mxu1 %v431_v45 }
 0x376   :  { %2858 = vmatprep.subr.bf16.mxu1 %v3381_v0 }
 0x37b   :  { %v417_v47 = vpop.permute.xlu1 %416  ;;  %v662_v56 = vpop.permute.xlu0 %661 }
 0x37c   :  { %v434_v48 = vsel %vm420_vm3, %v417_v47, 0  ;;  %v678_v50 = vsel %vm420_vm3, %v662_v56, 0 }
 0x37d   :  { %2859 = vmatpush3.bf16.xpose.msra.mxu1 %v434_v48 }
 0x37e   :  { %2860 = vmatprep.subr.bf16.mxu1 %v3381_v0 }
 0x37f   :  { %v654_v59 = vpop.permute.xlu0 %653 }
 0x383   :  { %v419_v46 = vpop.permute.xlu1 %418  ;;  %v658_v61 = vpop.permute.xlu0 %657 }
 0x384   :  { %v437_v49 = vsel %vm420_vm3, %v419_v46, 0 }
 0x385   :  { %2861 = vmatpush3.bf16.xpose.msra.mxu1 %v437_v49 }
 0x386   :  { %2892 = vmatprep.subr.bf16.mxu1 %v3381_v0 }
 0x387   :  { %v660_v51 = vpop.permute.xlu1 %659 }
 0x388   :  { %v675_v53 = vsel %vm420_vm3, %v660_v51, 0 }
 0x38b   :  { %v664_v52 = vpop.permute.xlu1 %663 }
 0x38c   :  { %2863 = vmatmul.mubr.msk.bf16.vlgmr.msra.gmra.mrb[12].mxu1 %vm420_vm3, %v3606_v21  ;;  %v681_v58 = vsel %vm420_vm3, %v664_v52, 0 }
 0x38d   :  { %2893 = vmatpush3.bf16.xpose.msra.mxu1 %v675_v53  ;;  %2866 = vmatprep.mubr.msk.bf16.mxu1 %vm3382_vm0, %v3381_v0 }
 0x38e   :  { %2894 = vmatprep.subr.bf16.mxu1 %v3381_v0 }
 0x38f   :  { %v656_v54 = vpop.permute.xlu1 %655 }
 0x393   :  { %v579_v57 = vpop.permute.xlu1 %578 }
 0x394   :  { %2867 = vmatmul.mubr.msk.bf16.gmra.mrb[16].mxu1 %vm420_vm3, %v3610_v33  ;;  %2875 = vmatpush3.bf16.msra.mxu0 %v579_v57 }
 0x395   :  { %2895 = vmatpush3.bf16.xpose.msra.mxu1 %v678_v50  ;;  %2870 = vmatprep.mubr.msk.bf16.mxu1 %vm3382_vm0, %v3381_v0 }
 0x396   :  { %2896 = vmatprep.subr.bf16.mxu1 %v3381_v0  ;;  %2876 = vmatprep.subr.bf16.mxu0 %v3381_v0 }
 0x39c   :  { %2871 = vmatmul.mubr.msk.bf16.gmra.mrb[20].mxu1 %vm420_vm3, %v3618_v43 }
 0x39d   :  { %2897 = vmatpush3.bf16.xpose.msra.mxu1 %v681_v58  ;;  %2898 = vmatprep.mubr.msk.bf16.mxu1 %vm3382_vm0, %v3381_v0 }
 0x39e   :  { %3120 = vmatprep.subr.bf16.mxu1 %v3381_v0 }
 0x3a4   :  { %2899 = vmatmul.mubr.msk.bf16.vlgmr.msra.gmra.mrb[24].mxu1 %vm420_vm3, %v654_v59 }
 0x3a5   :  { %2902 = vmatprep.mubr.msk.bf16.mxu1 %vm3382_vm0, %v3381_v0 }
 0x3ac   :  { %2903 = vmatmul.mubr.msk.bf16.gmra.mrb[28].mxu1 %vm420_vm3, %v656_v54 }
 0x3ad   :  { %2906 = vmatprep.mubr.msk.bf16.mxu1 %vm3382_vm0, %v3381_v0 }
 0x3b4   :  { %2907 = vmatmul.mubr.msk.bf16.gmra.mrb[32].mxu1 %vm420_vm3, %v658_v61 }
 0x3b5   :  { %2936 = vmatprep.mubr.msk.bf16.mxu1 %vm3382_vm0, %v3381_v0 }
 0x45f   :  { %v473_v63 = vpop.f32.mrb[12].mxu1 }
 0x460   :  { %v496_v1 = vmul.f32 0.25, %v473_v63  ;;  %v2864_v2 = vpop.f32.mrb[13].mxu1 }
 0x461   :  { %v476_v4 = vpop.f32.mrb[14].mxu1 }
 0x462   :  { %v497_v55 = vmul.f32 0.25, %v476_v4  ;;  %v2865_v5 = vpop.f32.mrb[15].mxu1  ;;  %v3672_v7 = vsel %vm169_vm4, %v496_v1, -1e+30 }
 0x463   :  { %v509_v60 = vsel %vm508_vm5, %v3672_v7, -inf }
 0x464   :  { %510 = vmax.xlane.f32.xlu1 %v509_v60  ;;  %v3678_v18 = vsel %vm169_vm4, %v497_v55, -1e+30 }
 0x465   :  { %v512_v8 = vsel %vm508_vm5, %v3678_v18, -inf }
 0x466   :  { %513 = vmax.xlane.f32.xlu0 %v512_v8 }
 0x467   :  { %v481_v9 = vpop.f32.mrb[16].mxu1 }
 0x468   :  { %v498_v6 = vmul.f32 0.25, %v481_v9  ;;  %v2868_v10 = vpop.f32.mrb[17].mxu1 }
 0x469   :  { %v484_v13 = vpop.f32.mrb[18].mxu1 }
 0x46a   :  { %v499_v15 = vmul.f32 0.25, %v484_v13  ;;  %v2869_v16 = vpop.f32.mrb[19].mxu1  ;;  %v3690_v19 = vsel %vm169_vm4, %v498_v6, -1e+30 }
 0x46b   :  { %v515_v22 = vsel %vm508_vm5, %v3690_v19, -inf }
 0x46c   :  { %516 = vmax.xlane.f32.xlu0 %v515_v22  ;;  %v3696_v24 = vsel %vm3684_vm8, %v499_v15, -1e+30 }
 0x46d   :  { %v518_v26 = vsel %vm508_vm5, %v3696_v24, -inf }
 0x46f   :  { %v489_v25 = vpop.f32.mrb[20].mxu1 }
 0x470   :  { %v500_v29 = vmul.f32 0.25, %v489_v25  ;;  %519 = vmax.xlane.f32.xlu0 %v518_v26  ;;  %v2872_v32 = vpop.f32.mrb[21].mxu1 }
 0x471   :  { %v492_v34 = vpop.f32.mrb[22].mxu1 }
 0x472   :  { %v501_v35 = vmul.f32 0.25, %v492_v34  ;;  %v2873_v36 = vpop.f32.mrb[23].mxu1  ;;  %v3702_v39 = vsel %vm3684_vm8, %v500_v29, -1e+30 }
 0x473   :  { %v521_v41 = vsel %vm508_vm5, %v3702_v39, -inf }
 0x474   :  { %522 = vmax.xlane.f32.xlu1 %v521_v41  ;;  %v507_v42 = vsel %vm3684_vm8, %v501_v35, -1e+30 }
 0x475   :  { %v524_v44 = vsel %vm508_vm5, %v507_v42, -inf }
 0x476   :  { %525 = vmax.xlane.f32.xlu0 %v524_v44 }
 0x477   :  { %v717_v45 = vpop.f32.mrb[24].mxu1 }
 0x478   :  { %v740_v47 = vmul.f32 0.25, %v717_v45  ;;  %v2900_v48 = vpop.f32.mrb[25].mxu1 }
 0x479   :  { %v720_v46 = vpop.f32.mrb[26].mxu1 }
 0x47a   :  { %v741_v49 = vmul.f32 0.25, %v720_v46  ;;  %v2901_v51 = vpop.f32.mrb[27].mxu1  ;;  %v3711_v52 = vsel %vm169_vm4, %v740_v47, -1e+30 }
 0x47b   :  { %v752_v53 = vsel %vm508_vm5, %v3711_v52, -inf }
 0x47c   :  { %753 = vmax.xlane.f32.xlu1 %v752_v53  ;;  %v747_v54 = vsel %vm169_vm4, %v741_v49, -1e+30 }
 0x47d   :  { %v755_v56 = vsel %vm508_vm5, %v747_v54, -inf }
 0x47e   :  { %756 = vmax.xlane.f32.xlu0 %v755_v56 }
 0x47f   :  { %v725_v57 = vpop.f32.mrb[28].mxu1 }
 0x480   :  { %v742_v50 = vmul.f32 0.25, %v725_v57  ;;  %v2904_v58 = vpop.f32.mrb[29].mxu1 }
 0x481   :  { %v728_v59 = vpop.f32.mrb[30].mxu1 }
 0x482   :  { %v743_v61 = vmul.f32 0.25, %v728_v59  ;;  %v2905_v63 = vpop.f32.mrb[31].mxu1  ;;  %v748_v1 = vsel %vm169_vm4, %v742_v50, -1e+30 }
 0x483   :  { %v758_v2 = vsel %vm508_vm5, %v748_v1, -inf }
 0x484   :  { %759 = vmax.xlane.f32.xlu1 %v758_v2  ;;  %v749_v4 = vsel %vm3684_vm8, %v743_v61, -1e+30 }
 0x485   :  { %v761_v55 = vsel %vm508_vm5, %v749_v4, -inf }
 0x486   :  { %762 = vmax.xlane.f32.xlu0 %v761_v55 }
 0x487   :  { %v733_v5 = vpop.f32.mrb[32].mxu1 }
 0x488   :  { %v744_v60 = vmul.f32 0.25, %v733_v5  ;;  %v2908_v8 = vpop.f32.mrb[33].mxu1 }
 0x489   :  { %v736_v9 = vpop.f32.mrb[34].mxu1 }
 0x48a   :  { %v745_v6 = vmul.f32 0.25, %v736_v9  ;;  %v2909_v10 = vpop.f32.mrb[35].mxu1  ;;  %v750_v13 = vsel %vm3684_vm8, %v744_v60, -1e+30 }
 0x48b   :  { %v764_v15 = vsel %vm508_vm5, %v750_v13, -inf }
 0x48c   :  { %765 = vmax.xlane.f32.xlu1 %v764_v15  ;;  %v751_v16 = vsel %vm3684_vm8, %v745_v6, -1e+30 }
 0x48d   :  { %v767_v22 = vsel %vm508_vm5, %v751_v16, -inf }
 0x48e   :  { %768 = vmax.xlane.f32.xlu0 %v767_v22 }
 0x49d   :  { %582 = vrot.lane.b32.xlu1 %v3618_v43, %s3386_s15 }
 0x4a4   :  { %580 = vrot.lane.b32.xlu0 %v3610_v33, %s3386_s15 }
 0x4f1   :  { %v511_v25 = vpop.xlane.xlu1 %510 }
 0x4f2   :  { %v527_v26 = vsub.f32 %v3672_v7, %v511_v25 }
 0x4f3   :  { %v514_v29 = vpop.xlane.xlu0 %513 }
 0x4f4   :  { %v533_v32 = vmul.f32 1.442695, %v527_v26  ;;  %v528_v34 = vsub.f32 %v3678_v18, %v514_v29 }
 0x4f6   :  { %3199 = vpow2.f32 %v533_v32  ;;  %v535_v35 = vmul.f32 1.442695, %v528_v34 }
 0x4f8   :  { %3201 = vpow2.f32 %v535_v35 }
 0x4f9   :  { %v517_v36 = vpop.xlane.xlu0 %516 }
 0x4fd   :  { %v520_v41 = vpop.xlane.xlu0 %519 }
 0x4fe   :  { %v530_v44 = vsub.f32 %v3696_v24, %v520_v41 }
 0x500   :  { %v3737_v45 = vpop.eup %3199  ;;  %v539_v47 = vmul.f32 1.442695, %v530_v44 }
 0x501   :  { %v545_v48 = vsel %vm508_vm5, %v3737_v45, 0.0  ;;  %v523_v53 = vpop.xlane.xlu1 %522 }
 0x502   :  { %v3741_v46 = vpop.eup %3201  ;;  %3203 = vpow2.f32 %v539_v47  ;;  %546 = vadd.xlane.f32.xlu1 %v545_v48  ;;  %v531_v34 = vsub.f32 %v3702_v39, %v523_v53 }
 0x503   :  { %v526_v7 = vpop.xlane.xlu0 %525  ;;  %v548_v18 = vsel %vm508_vm5, %v3741_v46, 0.0 }
 0x504   :  { %v532_v49 = vsub.f32 %v507_v42, %v526_v7  ;;  %549 = vadd.xlane.f32.xlu0 %v548_v18 }
 0x506   :  { %v543_v51 = vmul.f32 1.442695, %v532_v49 }
 0x508   :  { %3205 = vpow2.f32 %v543_v51 }
 0x509   :  { %v754_v50 = vpop.xlane.xlu1 %753 }
 0x50a   :  { %v770_v41 = vsub.f32 %v3711_v52, %v754_v50 }
 0x50b   :  { %v757_v24 = vpop.xlane.xlu0 %756 }
 0x50c   :  { %v3745_v56 = vpop.eup %3203  ;;  %v771_v57 = vsub.f32 %v747_v54, %v757_v24  ;;  %v776_v39 = vmul.f32 1.442695, %v770_v41 }
 0x50d   :  { %v554_v58 = vsel %vm508_vm5, %v3745_v56, 0.0 }
 0x50e   :  { %v778_v59 = vmul.f32 1.442695, %v771_v57  ;;  %555 = vadd.xlane.f32.xlu0 %v554_v58 }
 0x510   :  { %3207 = vpow2.f32 %v778_v59 }
 0x511   :  { %v760_v61 = vpop.xlane.xlu1 %759 }
 0x512   :  { %v3749_v63 = vpop.eup %3205  ;;  %v772_v2 = vsub.f32 %v748_v1, %v760_v61 }
 0x513   :  { %v763_v42 = vpop.xlane.xlu0 %762  ;;  %821 = vrot.lane.b32.xlu1 %v3606_v21, %s3387_s16  ;;  %v560_v55 = vsel %vm508_vm5, %v3749_v63, 0.0 }
 0x514   :  { %v780_v54 = vmul.f32 1.442695, %v772_v2  ;;  %v773_v5 = vsub.f32 %v749_v4, %v763_v42  ;;  %561 = vadd.xlane.f32.xlu0 %v560_v55  ;;  %v529_v4 = vsub.f32 %v3690_v19, %v517_v36  ;;  %v541_v36 = vmul.f32 1.442695, %v531_v34 }
 0x516   :  { %3209 = vpow2.f32 %v780_v54  ;;  %v782_v60 = vmul.f32 1.442695, %v773_v5 }
 0x518   :  { %3211 = vpow2.f32 %v782_v60 }
 0x519   :  { %v766_v8 = vpop.xlane.xlu1 %765 }
 0x51a   :  { %v3755_v9 = vpop.eup %3207  ;;  %v774_v6 = vsub.f32 %v750_v13, %v766_v8 }
 0x51b   :  { %v769_v10 = vpop.xlane.xlu0 %768  ;;  %v791_v1 = vsel %vm508_vm5, %v3755_v9, 0.0 }
 0x51c   :  { %v784_v15 = vmul.f32 1.442695, %v774_v6  ;;  %v775_v22 = vsub.f32 %v751_v16, %v769_v10  ;;  %792 = vadd.xlane.f32.xlu0 %v791_v1  ;;  %v537_v16 = vmul.f32 1.442695, %v529_v4 }
 0x51d   :  { %v583_v32 = vpop.permute.xlu1 %582 }
 0x51e   :  { %3213 = vpow2.f32 %v784_v15  ;;  %v786_v21 = vmul.f32 1.442695, %v775_v22 }
 0x51f   :  { %v581_v25 = vpop.permute.xlu0 %580 }
 0x520   :  { %v3759_v26 = vpop.eup %3209  ;;  %3215 = vpow2.f32 %v786_v21  ;;  %2877 = vmatpush3.bf16.msra.mxu0 %v581_v25 }
 0x521   :  { %v794_v29 = vsel %vm508_vm5, %v3759_v26, 0.0  ;;  %2878 = vmatprep.subr.bf16.mxu0 %v3381_v0  ;;  %3217 = vpow2.f32 %v537_v16 }
 0x522   :  { %v3765_v13 = vpop.eup %3211  ;;  %795 = vadd.xlane.f32.xlu0 %v794_v29  ;;  %3219 = vpow2.f32 %v541_v36 }
 0x523   :  { %v797_v35 = vsel %vm508_vm5, %v3765_v13, 0.0  ;;  %3221 = vpow2.f32 %v776_v39 }
 0x524   :  { %2879 = vmatpush3.bf16.msra.mxu0 %v583_v32 }
 0x525   :  { %2910 = vmatprep.subr.bf16.mxu0 %v3381_v0 }
 0x526   :  { %798 = vadd.xlane.f32.xlu0 %v797_v35 }
 0x528   :  { %v3771_v19 = vpop.eup %3213 }
 0x529   :  { %v800_v44 = vsel %vm508_vm5, %v3771_v19, 0.0 }
 0x52a   :  { %v3776_v47 = vpop.eup %3215  ;;  %801 = vadd.xlane.f32.xlu0 %v800_v44 }
 0x52b   :  { %v803_v48 = vsel %vm508_vm5, %v3776_v47, 0.0  ;;  %v3218_v7 = vpop.eup %3217 }
 0x52c   :  { %v551_v18 = vsel %vm508_vm5, %v3218_v7, 0.0  ;;  %v3220_v49 = vpop.eup %3219 }
 0x52d   :  { %v557_v52 = vsel %vm508_vm5, %v3220_v49, 0.0  ;;  %v3222_v51 = vpop.eup %3221 }
 0x52e   :  { %804 = vadd.xlane.f32.xlu0 %v803_v48  ;;  %v788_v53 = vsel %vm508_vm5, %v3222_v51, 0.0 }
 0x537   :  { %552 = vadd.xlane.f32.xlu1 %v551_v18 }
 0x53b   :  { %558 = vadd.xlane.f32.xlu1 %v557_v52 }
 0x53f   :  { %789 = vadd.xlane.f32.xlu1 %v788_v53 }
 0x544   :  { %823 = vrot.lane.b32.xlu0 %v3610_v33, %s3387_s16 }
 0x550   :  { %825 = vrot.lane.b32.xlu1 %v3618_v43, %s3387_s16 }
 0x554   :  { %933 = vrot.lane.b32.xlu1 %v3560_v11, %s3388_s17 }
 0x58f   :  { %v547_v24 = vpop.xlane.xlu1 %546 }
 0x590   :  { %3223 = vrcp.f32 %v547_v24 }
 0x591   :  { %v550_v57 = vpop.xlane.xlu0 %549 }
 0x592   :  { %3225 = vrcp.f32 %v550_v57 }
 0x593   :  { %v822_v42 = vpop.permute.xlu1 %821 }
 0x59a   :  { %v3224_v50 = vpop.eup %3223 }
 0x59b   :  { %v569_v59 = vmul.f32 %v3224_v50, %v3737_v45  ;;  %v556_v33 = vpop.xlane.xlu0 %555 }
 0x59c   :  { %v3226_v58 = vpop.eup %3225  ;;  %3227 = vrcp.f32 %v556_v33 }
 0x59d   :  { %v570_v61 = vmul.f32 %v3226_v58, %v3741_v46 }
 0x59f   :  { %v575_v2 = vpack.c.bf16 %v570_v61, %v569_v59 }
 0x5a1   :  { %2881 = vmatmul.mubr.msk.bf16.vlgmr.msra.gmra.mrb[12].mxu0 %vm508_vm5, %v575_v2  ;;  %v562_v43 = vpop.xlane.xlu0 %561 }
 0x5a2   :  { %2911 = vmatpush3.bf16.msra.mxu0 %v822_v42  ;;  %2884 = vmatprep.mubr.msk.bf16.mxu0 %vm3382_vm0, %v3381_v0 }
 0x5a3   :  { %2912 = vmatprep.subr.bf16.mxu0 %v3381_v0 }
 0x5a6   :  { %v3228_v1 = vpop.eup %3227 }
 0x5a7   :  { %v572_v25 = vmul.f32 %v3228_v1, %v3745_v56 }
 0x5a9   :  { %v793_v55 = vpop.xlane.xlu0 %792 }
 0x5af   :  { %v796_v54 = vpop.xlane.xlu0 %795 }
 0x5b3   :  { %v799_v5 = vpop.xlane.xlu0 %798 }
 0x5b7   :  { %v802_v60 = vpop.xlane.xlu0 %801 }
 0x5bb   :  { %v805_v8 = vpop.xlane.xlu0 %804 }
 0x5bf   :  { %v824_v45 = vpop.permute.xlu0 %823 }
 0x5c0   :  { %2913 = vmatpush3.bf16.msra.mxu0 %v824_v45 }
 0x5c1   :  { %2914 = vmatprep.subr.bf16.mxu0 %v3381_v0 }
 0x5c4   :  { %v553_v46 = vpop.xlane.xlu1 %552 }
 0x5c5   :  { %3229 = vrcp.f32 %v553_v46 }
 0x5c8   :  { %v559_v6 = vpop.xlane.xlu1 %558 }
 0x5c9   :  { %3231 = vrcp.f32 %v559_v6 }
 0x5ca   :  { %3233 = vrcp.f32 %v562_v43 }
 0x5cc   :  { %v790_v10 = vpop.xlane.xlu1 %789 }
 0x5cd   :  { %3235 = vrcp.f32 %v790_v10 }
 0x5ce   :  { %3237 = vrcp.f32 %v793_v55 }
 0x5cf   :  { %v3230_v15 = vpop.eup %3229  ;;  %3239 = vrcp.f32 %v799_v5 }
 0x5d0   :  { %v826_v22 = vpop.permute.xlu1 %825  ;;  %v571_v21 = vmul.f32 %v3230_v15, %v3218_v7  ;;  %3241 = vrcp.f32 %v796_v54 }
 0x5d1   :  { %2915 = vmatpush3.bf16.msra.mxu0 %v826_v22  ;;  %3243 = vrcp.f32 %v805_v8 }
 0x5d2   :  { %v576_v4 = vpack.c.bf16 %v572_v25, %v571_v21  ;;  %2928 = vmatprep.subr.bf16.mxu0 %v3381_v0  ;;  %3245 = vrcp.f32 %v802_v60 }
 0x5d3   :  { %v3232_v29 = vpop.eup %3231 }
 0x5d4   :  { %2885 = vmatmul.mubr.msk.bf16.gmra.mrb[16].mxu0 %vm508_vm5, %v576_v4  ;;  %v3234_v32 = vpop.eup %3233  ;;  %v573_v16 = vmul.f32 %v3232_v29, %v3220_v49  ;;  %v934_v58 = vpop.permute.xlu1 %933 }
 0x5d5   :  { %2888 = vmatprep.mubr.msk.bf16.mxu0 %vm3382_vm0, %v3381_v0  ;;  %v574_v34 = vmul.f32 %v3234_v32, %v3749_v63  ;;  %3122 = vmatpush3.bf16.msra.mxu1 %v934_v58 }
 0x5d6   :  { %3121 = vmatprep.subr.bf16.mxu1 %v3381_v0 }
 0x5d7   :  { %v577_v35 = vpack.c.bf16 %v574_v34, %v573_v16  ;;  %v3236_v36 = vpop.eup %3235 }
 0x5d8   :  { %v3238_v56 = vpop.eup %3237  ;;  %v812_v41 = vmul.f32 %v3236_v36, %v3222_v51  ;;  %v3169_v36 = vld [vmem:[%s4446_s3 + $0x4] ss:$8 sps:$4 sm:$0xff]  }
 0x5d9   :  { %v813_v44 = vmul.f32 %v3238_v56, %v3755_v9  ;;  %v3240_v48 = vpop.eup %3239 }
 0x5da   :  { %v3242_v63 = vpop.eup %3241  ;;  %v815_v7 = vmul.f32 %v3240_v48, %v3765_v13 }
 0x5db   :  { %v818_v39 = vpack.c.bf16 %v813_v44, %v812_v41  ;;  %v814_v18 = vmul.f32 %v3242_v63, %v3759_v26  ;;  %v3244_v52 = vpop.eup %3243  ;;  %v3172_v41 = vld [vmem:[%s4446_s3 + $0x14] ss:$8 sps:$4 sm:$0xff]  }
 0x5dc   :  { %2889 = vmatmul.mubr.msk.bf16.gmra.mrb[20].mxu0 %vm508_vm5, %v577_v35  ;;  %v3246_v51 = vpop.eup %3245  ;;  %v817_v9 = vmul.f32 %v3244_v52, %v3776_v47 }
 0x5dd   :  { %2916 = vmatprep.mubr.msk.bf16.mxu0 %vm3382_vm0, %v3381_v0  ;;  %v819_v49 = vpack.c.bf16 %v815_v7, %v814_v18  ;;  %v816_v53 = vmul.f32 %v3246_v51, %v3771_v19 }
 0x5df   :  { %v820_v24 = vpack.c.bf16 %v817_v9, %v816_v53 }
 0x5e4   :  { %2917 = vmatmul.mubr.msk.bf16.vlgmr.msra.gmra.mrb[24].mxu0 %vm508_vm5, %v818_v39 }
 0x5e5   :  { %2920 = vmatprep.mubr.msk.bf16.mxu0 %vm3382_vm0, %v3381_v0  ;;  %2929 = vmatpush3.bf16.msra.mxu0 %v934_v58 }
 0x5e6   :  { %2930 = vmatprep.subr.bf16.mxu0 %v3381_v0 }
 0x5ec   :  { %2921 = vmatmul.mubr.msk.bf16.gmra.mrb[28].mxu0 %vm508_vm5, %v819_v49 }
 0x5ed   :  { %2924 = vmatprep.mubr.msk.bf16.mxu0 %vm3382_vm0, %v3381_v0 }
 0x5f4   :  { %2925 = vmatmul.mubr.msk.bf16.gmra.mrb[32].mxu0 %vm508_vm5, %v820_v24  ;;  %v931_v24 = vsub.s32 3, %v3572_v23 }
 0x5f5   :  { %2932 = vmatprep.mubr.msk.bf16.mxu0 %vm3382_vm0, %v3381_v0 }
 0x674   :  { %v630_v26 = vpop.f32.mrb[12].mxu0 }
 0x675   :  { %v2882_v13 = vpop.f32.mrb[13].mxu0 }
 0x676   :  { %v633_v57 = vpop.f32.mrb[14].mxu0 }
 0x677   :  { %v2883_v50 = vpop.f32.mrb[15].mxu0 }
 0x6a7   :  { %v638_v47 = vpop.f32.mrb[16].mxu0 }
 0x6a8   :  { %v2886_v19 = vpop.f32.mrb[17].mxu0 }
 0x6a9   :  { %v641_v59 = vpop.f32.mrb[18].mxu0 }
 0x6aa   :  { %v2887_v61 = vpop.f32.mrb[19].mxu0 }
 0x6af   :  { %v646_v2 = vpop.f32.mrb[20].mxu0 }
 0x6b0   :  { %v2890_v42 = vpop.f32.mrb[21].mxu0 }
 0x6b1   :  { %v649_v33 = vpop.f32.mrb[22].mxu0 }
 0x6b2   :  { %v2891_v43 = vpop.f32.mrb[23].mxu0 }
 0x6b7   :  { %v873_v11 = vpop.f32.mrb[24].mxu0 }
 0x6b8   :  { %v2918_v55 = vpop.f32.mrb[25].mxu0 }
 0x6b9   :  { %v876_v54 = vpop.f32.mrb[26].mxu0 }
 0x6ba   :  { %v3133_v5 = vpack.i.bf16 %v876_v54, %v873_v11  ;;  %v2919_v60 = vpop.f32.mrb[27].mxu0 }
 0x6bc   :  { %3134 = vrot.lane.b32.xlu1 %v3133_v5, %s3389_s18 }
 0x6bf   :  { %v881_v8 = vpop.f32.mrb[28].mxu0 }
 0x6c0   :  { %935 = vrot.lane.b32.xlu1 %v3567_v12, %s3388_s17  ;;  %v2922_v45 = vpop.f32.mrb[29].mxu0 }
 0x6c1   :  { %v884_v46 = vpop.f32.mrb[30].mxu0 }
 0x6c2   :  { %v3138_v6 = vpack.i.bf16 %v884_v46, %v881_v8  ;;  %v2923_v10 = vpop.f32.mrb[31].mxu0 }
 0x6c4   :  { %3139 = vrot.lane.b32.xlu1 %v3138_v6, %s3389_s18 }
 0x6c7   :  { %v889_v1 = vpop.f32.mrb[32].mxu0 }
 0x6c8   :  { %v2926_v15 = vpop.f32.mrb[33].mxu0 }
 0x6c9   :  { %v892_v22 = vpop.f32.mrb[34].mxu0 }
 0x6ca   :  { %v3143_v21 = vpack.i.bf16 %v892_v22, %v889_v1  ;;  %v2927_v25 = vpop.f32.mrb[35].mxu0 }
 0x6cc   :  { %3144 = vrot.lane.b32.xlu1 %v3143_v21, %s3389_s18 }
 0x72e   :  { %v3135_v4 = vpop.permute.xlu1 %3134 }
 0x72f   :  { %v3137_v29 = vunpack.i.h.bf16 %v3135_v4  ;;  %v3136_v32 = vunpack.i.l.bf16 %v3135_v4 }
 0x731   :  { %v921_v16 = vsel %vm420_vm3, %v633_v57, %v3137_v29  ;;  %v920_v12 = vsel %vm420_vm3, %v630_v26, %v3136_v32  ;;  %v932_v26 = vrot.slane %v3578_v31, %v931_v24 }
 0x732   :  { %v926_v34 = vpack.c.bf16 %v921_v16, %v920_v12  ;;  %v936_v35 = vpop.permute.xlu1 %935 }
 0x733   :  { %2931 = vmatpush3.bf16.msra.mxu0 %v936_v35  ;;  %3123 = vmatpush3.bf16.msra.mxu1 %v936_v35 }
 0x734   :  { %2944 = vmatprep.subr.bf16.mxu0 %v3381_v0  ;;  %2960 = vmatprep.subr.bf16.mxu1 %v3381_v0 }
 0x736   :  { %2933 = vmatmul.mubr.msk.bf16.vlgmr.msra.gmra.mrb[36].mxu0 %vm223_vm2, %v926_v34  ;;  %v3140_v56 = vpop.permute.xlu1 %3139 }
 0x737   :  { %v3142_v44 = vunpack.i.h.bf16 %v3140_v56  ;;  %v3141_v39 = vunpack.i.l.bf16 %v3140_v56  ;;  %2945 = vmatpush3.bf16.msra.mxu0 %v3169_v36  ;;  %2948 = vmatprep.mubr.msk.bf16.mxu0 %vm3382_vm0, %v3381_v0 }
 0x738   :  { %2946 = vmatprep.subr.bf16.mxu0 %v3381_v0 }
 0x739   :  { %v923_v48 = vsel %vm420_vm3, %v641_v59, %v3142_v44  ;;  %v922_v63 = vsel %vm420_vm3, %v638_v47, %v3141_v39 }
 0x73a   :  { %v927_v7 = vpack.c.bf16 %v923_v48, %v922_v63 }
 0x73b   :  { %2947 = vmatpush3.bf16.msra.mxu0 %v3172_v41 }
 0x73c   :  { %2937 = vmatmul.mubr.msk.bf16.vlgmr.msra.gmra.mrb[36].mxu1 %vm223_vm2, %v927_v7  ;;  %2980 = vmatprep.subr.bf16.mxu0 %v3381_v0 }
 0x73d   :  { %2940 = vmatprep.mubr.msk.bf16.mxu1 %vm3382_vm0, %v3381_v0 }
 0x73e   :  { %v3145_v18 = vpop.permute.xlu1 %3144 }
 0x73f   :  { %v3147_v49 = vunpack.i.h.bf16 %v3145_v18  ;;  %v3146_v52 = vunpack.i.l.bf16 %v3145_v18 }
 0x741   :  { %v925_v51 = vsel %vm420_vm3, %v649_v33, %v3147_v49  ;;  %v924_v9 = vsel %vm420_vm3, %v646_v2, %v3146_v52 }
 0x742   :  { %v928_v53 = vpack.c.bf16 %v925_v51, %v924_v9 }
 0x744   :  { %2941 = vmatmul.mubr.msk.bf16.gmra.mrb[40].mxu1 %vm223_vm2, %v928_v53 }
 0x745   :  { %2968 = vmatprep.mubr.msk.bf16.mxu1 %vm3382_vm0, %v3381_v0 }
 0x809   :  { %v982_v13 = vpop.f32.mrb[36].mxu0 }
 0x80a   :  { %v983_v57 = vadd.f32 %v982_v13, %v932_v26  ;;  %v2934_v50 = vpop.f32.mrb[37].mxu0 }
 0x80b   :  { %v985_v58 = vpop.f32.mrb[38].mxu0 }
 0x80c   :  { %v3856_v47 = vadd.f32 %v983_v57, %v3485_v17  ;;  %v986_v19 = vadd.f32 %v985_v58, %v932_v26  ;;  %v2935_v59 = vpop.f32.mrb[39].mxu0 }
 0x80e   :  { %v3859_v61 = vadd.f32 %v986_v19, %v3487_v20  ;;  %v1011_v2 = vsel %vm223_vm2, %v3856_v47, 0.0 }
 0x80f   :  { %v990_v42 = vpop.f32.mrb[36].mxu1  ;;  %1012 = vadd.xlane.f32.xlu0 %v1011_v2 }
 0x810   :  { %v991_v33 = vadd.f32 %v990_v42, %v932_v26  ;;  %v2938_v43 = vpop.f32.mrb[37].mxu1  ;;  %v1014_v31 = vsel %vm223_vm2, %v3859_v61, 0.0 }
 0x811   :  { %v993_v11 = vpop.f32.mrb[38].mxu1  ;;  %1015 = vadd.xlane.f32.xlu1 %v1014_v31 }
 0x812   :  { %v3866_v17 = vadd.f32 %v991_v33, %v3499_v27  ;;  %v994_v55 = vadd.f32 %v993_v11, %v932_v26  ;;  %v2939_v54 = vpop.f32.mrb[39].mxu1 }
 0x813   :  { %v1091_v54 = vsub.s32 4, %v3572_v23 }
 0x814   :  { %v3869_v20 = vadd.f32 %v994_v55, %v3501_v30  ;;  %v1017_v5 = vsel %vm223_vm2, %v3866_v17, 0.0 }
 0x815   :  { %1018 = vadd.xlane.f32.xlu0 %v1017_v5 }
 0x816   :  { %v1020_v46 = vsel %vm223_vm2, %v3869_v20, 0.0 }
 0x817   :  { %v998_v60 = vpop.f32.mrb[40].mxu1 }
 0x818   :  { %v999_v8 = vadd.f32 %v998_v60, %v932_v26  ;;  %v2942_v45 = vpop.f32.mrb[41].mxu1 }
 0x819   :  { %v1001_v6 = vpop.f32.mrb[42].mxu1  ;;  %1021 = vadd.xlane.f32.xlu0 %v1020_v46  ;;  %v3901_v45 = vld [vmem:[%s4447_s5] sm:$0xff] }
 0x81a   :  { %v3876_v27 = vadd.f32 %v999_v8, %v3513_v37  ;;  %v1002_v10 = vadd.f32 %v1001_v6, %v932_v26  ;;  %v2943_v1 = vpop.f32.mrb[43].mxu1  ;;  %v1092_v46 = vrot.slane %v3901_v45, %v1091_v54 }
 0x81c   :  { %v3879_v30 = vadd.f32 %v1002_v10, %v3515_v40  ;;  %v1023_v15 = vsel %vm223_vm2, %v3876_v27, 0.0  ;;  %v1101_v10 = vsub.s32 5, %v3572_v23 }
 0x81d   :  { %1024 = vadd.xlane.f32.xlu0 %v1023_v15 }
 0x81e   :  { %v1026_v22 = vsel %vm223_vm2, %v3879_v30, 0.0 }
 0x81f   :  { %1027 = vadd.xlane.f32.xlu1 %v1026_v22 }
 0x89c   :  { %v1013_v21 = vpop.xlane.xlu0 %1012 }
 0x89d   :  { %v1029_v25 = vmul.f32 0.03125, %v1013_v21 }
 0x89e   :  { %v1016_v4 = vpop.xlane.xlu1 %1015 }
 0x89f   :  { %v1035_v29 = vsub.f32 %v3856_v47, %v1029_v25  ;;  %v1030_v37 = vmul.f32 0.03125, %v1016_v4 }
 0x8a1   :  { %v1036_v32 = vsub.f32 %v3859_v61, %v1030_v37  ;;  %v1041_v16 = vmul.f32 %v1035_v29, %v1035_v29 }
 0x8a2   :  { %v1019_v12 = vpop.xlane.xlu0 %1018 }
 0x8a3   :  { %v1031_v40 = vmul.f32 0.03125, %v1019_v12  ;;  %v1047_v34 = vsel %vm223_vm2, %v1041_v16, 0.0  ;;  %v1042_v35 = vmul.f32 %v1036_v32, %v1036_v32 }
 0x8a4   :  { %1048 = vadd.xlane.f32.xlu0 %v1047_v34 }
 0x8a5   :  { %v1037_v36 = vsub.f32 %v3866_v17, %v1031_v40  ;;  %v1050_v56 = vsel %vm223_vm2, %v1042_v35, 0.0  ;;  %v1102_v40 = vrot.slane %v3901_v45, %v1101_v10 }
 0x8a6   :  { %v1022_v41 = vpop.xlane.xlu0 %1021  ;;  %1051 = vadd.xlane.f32.xlu1 %v1050_v56 }
 0x8a7   :  { %v1032_v44 = vmul.f32 0.03125, %v1022_v41  ;;  %v1043_v39 = vmul.f32 %v1037_v36, %v1037_v36 }
 0x8a9   :  { %v1038_v48 = vsub.f32 %v3869_v20, %v1032_v44  ;;  %v1053_v63 = vsel %vm223_vm2, %v1043_v39, 0.0 }
 0x8aa   :  { %1054 = vadd.xlane.f32.xlu0 %v1053_v63  ;;  %v1025_v7 = vpop.xlane.xlu0 %1024 }
 0x8ab   :  { %v1033_v18 = vmul.f32 0.03125, %v1025_v7  ;;  %v1044_v49 = vmul.f32 %v1038_v48, %v1038_v48 }
 0x8ac   :  { %v1028_v52 = vpop.xlane.xlu1 %1027 }
 0x8ad   :  { %v1039_v51 = vsub.f32 %v3876_v27, %v1033_v18  ;;  %v1034_v9 = vmul.f32 0.03125, %v1028_v52  ;;  %v1056_v53 = vsel %vm223_vm2, %v1044_v49, 0.0 }
 0x8ae   :  { %1057 = vadd.xlane.f32.xlu1 %v1056_v53 }
 0x8af   :  { %v1040_v26 = vsub.f32 %v3879_v30, %v1034_v9  ;;  %v1045_v13 = vmul.f32 %v1039_v51, %v1039_v51 }
 0x8b1   :  { %v1059_v57 = vsel %vm223_vm2, %v1045_v13, 0.0  ;;  %v1046_v50 = vmul.f32 %v1040_v26, %v1040_v26 }
 0x8b2   :  { %1060 = vadd.xlane.f32.xlu0 %v1059_v57 }
 0x8b3   :  { %v1062_v58 = vsel %vm223_vm2, %v1046_v50, 0.0 }
 0x8b4   :  { %1063 = vadd.xlane.f32.xlu1 %v1062_v58 }
 0x931   :  { %v1049_v19 = vpop.xlane.xlu0 %1048 }
 0x932   :  { %v1065_v59 = vmul.f32 0.03125, %v1049_v19 }
 0x933   :  { %v1052_v2 = vpop.xlane.xlu1 %1051 }
 0x934   :  { %v1071_v42 = vadd.f32 1e-12, %v1065_v59  ;;  %v1066_v33 = vmul.f32 0.03125, %v1052_v2  ;;  %v3175_v2 = vld [vmem:[%s4448_s4 + $0x10] sm:$0xff]  }
 0x936   :  { %3247 = vrsqrt.f32 %v1071_v42  ;;  %v1072_v43 = vadd.f32 1e-12, %v1066_v33  ;;  %v3176_v42 = vld [vmem:[%s4448_s4 + $0x18] sm:$0xff]   ;;  %v1114_v33 = vsub.s32 6, %v3572_v23 }
 0x937   :  { %v1055_v31 = vpop.xlane.xlu0 %1054 }
 0x938   :  { %3249 = vrsqrt.f32 %v1072_v43  ;;  %v1067_v11 = vmul.f32 0.03125, %v1055_v31  ;;  %v1115_v43 = vrot.slane %v3901_v45, %v1114_v33 }
 0x93a   :  { %v1073_v55 = vadd.f32 1e-12, %v1067_v11 }
 0x93b   :  { %v1058_v5 = vpop.xlane.xlu1 %1057 }
 0x93c   :  { %3251 = vrsqrt.f32 %v1073_v55  ;;  %v1068_v60 = vmul.f32 0.03125, %v1058_v5 }
 0x93e   :  { %v1074_v8 = vadd.f32 1e-12, %v1068_v60 }
 0x93f   :  { %v1061_v6 = vpop.xlane.xlu0 %1060 }
 0x940   :  { %v3248_v1 = vpop.eup %3247  ;;  %3253 = vrsqrt.f32 %v1074_v8  ;;  %v1069_v15 = vmul.f32 0.03125, %v1061_v6 }
 0x941   :  { %v1083_v22 = vmul.f32 %v3248_v1, %v1035_v29  ;;  %v1064_v21 = vpop.xlane.xlu1 %1063 }
 0x942   :  { %v3250_v25 = vpop.eup %3249  ;;  %v1075_v4 = vadd.f32 1e-12, %v1069_v15  ;;  %v1070_v37 = vmul.f32 0.03125, %v1064_v21 }
 0x943   :  { %v1093_v16 = vmul.f32 %v1092_v46, %v1083_v22  ;;  %v1084_v12 = vmul.f32 %v3250_v25, %v1036_v32 }
 0x944   :  { %3255 = vrsqrt.f32 %v1075_v4  ;;  %v1076_v34 = vadd.f32 1e-12, %v1070_v37 }
 0x945   :  { %v1094_v35 = vmul.f32 %v1092_v46, %v1084_v12  ;;  %v1103_v44 = vadd.f32 %v1102_v40, %v1093_v16 }
 0x946   :  { %v3252_v56 = vpop.eup %3251  ;;  %3257 = vrsqrt.f32 %v1076_v34 }
 0x947   :  { %v1085_v41 = vmul.f32 %v3252_v56, %v1037_v36  ;;  %v1104_v39 = vadd.f32 %v1102_v40, %v1094_v35 }
 0x949   :  { %v1109_v63 = vpack.c.bf16 %v1104_v39, %v1103_v44  ;;  %v1095_v18 = vmul.f32 %v1092_v46, %v1085_v41 }
 0x94a   :  { %v3254_v29 = vpop.eup %3253 }
 0x94b   :  { %v1086_v7 = vmul.f32 %v3254_v29, %v1038_v48  ;;  %2949 = vmatmul.mubr.msk.bf16.vlgmr.msra.gmra.mrb[40].mxu0 %vm223_vm2, %v1109_v63  ;;  %v1105_v9 = vadd.f32 %v1102_v40, %v1095_v18 }
 0x94c   :  { %2952 = vmatprep.mubr.msk.bf16.mxu0 %vm3382_vm0, %v3381_v0 }
 0x94d   :  { %v1096_v32 = vmul.f32 %v1092_v46, %v1086_v7 }
 0x94e   :  { %v3256_v49 = vpop.eup %3255 }
 0x94f   :  { %v1087_v52 = vmul.f32 %v3256_v49, %v1039_v51  ;;  %v1106_v53 = vadd.f32 %v1102_v40, %v1096_v32  ;;  %v3173_v51 = vld [vmem:[%s4448_s4] sm:$0xff]  }
 0x950   :  { %v3258_v13 = vpop.eup %3257  ;;  %2961 = vmatpush3.bf16.msra.mxu1 %v3173_v51 }
 0x951   :  { %v1088_v57 = vmul.f32 %v3258_v13, %v1040_v26  ;;  %v1110_v50 = vpack.c.bf16 %v1106_v53, %v1105_v9  ;;  %v1097_v36 = vmul.f32 %v1092_v46, %v1087_v52  ;;  %2962 = vmatprep.subr.bf16.mxu1 %v3381_v0  ;;  %v3174_v26 = vld [vmem:[%s4448_s4 + $0x8] sm:$0xff]  }
 0x953   :  { %2953 = vmatmul.mubr.msk.bf16.gmra.mrb[44].mxu0 %vm223_vm2, %v1110_v50  ;;  %v1098_v58 = vmul.f32 %v1092_v46, %v1088_v57  ;;  %v1107_v19 = vadd.f32 %v1102_v40, %v1097_v36 }
 0x954   :  { %2956 = vmatprep.mubr.msk.bf16.mxu0 %vm3382_vm0, %v3381_v0  ;;  %2963 = vmatpush3.bf16.msra.mxu1 %v3174_v26 }
 0x955   :  { %v1108_v48 = vadd.f32 %v1102_v40, %v1098_v58  ;;  %2964 = vmatprep.subr.bf16.mxu1 %v3381_v0 }
 0x957   :  { %v1111_v59 = vpack.c.bf16 %v1108_v48, %v1107_v19 }
 0x958   :  { %2965 = vmatpush3.bf16.msra.mxu1 %v3175_v2 }
 0x959   :  { %2966 = vmatprep.subr.bf16.mxu1 %v3381_v0 }
 0x95b   :  { %2957 = vmatmul.mubr.msk.bf16.gmra.mrb[48].mxu0 %vm223_vm2, %v1111_v59 }
 0x95c   :  { %2984 = vmatprep.mubr.msk.bf16.mxu0 %vm3382_vm0, %v3381_v0  ;;  %2967 = vmatpush3.bf16.msra.mxu1 %v3176_v42 }
 0x95d   :  { %2996 = vmatprep.subr.bf16.mxu1 %v3381_v0 }
 0xa1e   :  { %v1167_v31 = vpop.f32.mrb[40].mxu0 }
 0xa1f   :  { %v1168_v11 = vadd.f32 %v1167_v31, %v1115_v43  ;;  %v2950_v55 = vpop.f32.mrb[41].mxu0 }
 0xa20   :  { %v1170_v5 = vpop.f32.mrb[42].mxu0 }
 0xa21   :  { %v1190_v60 = vmul.f32 %v1168_v11, %v1168_v11  ;;  %v1171_v8 = vadd.f32 %v1170_v5, %v1115_v43  ;;  %v2951_v46 = vpop.f32.mrb[43].mxu0 }
 0xa23   :  { %v1196_v6 = vmul.f32 %v1190_v60, %v1168_v11  ;;  %v1191_v1 = vmul.f32 %v1171_v8, %v1171_v8 }
 0xa25   :  { %v1202_v15 = vmul.f32 0.044715, %v1196_v6  ;;  %v1197_v22 = vmul.f32 %v1191_v1, %v1171_v8 }
 0xa26   :  { %v1175_v21 = vpop.f32.mrb[44].mxu0 }
 0xa27   :  { %v1208_v25 = vadd.f32 %v1202_v15, %v1168_v11  ;;  %v1203_v4 = vmul.f32 0.044715, %v1197_v22  ;;  %v1176_v37 = vadd.f32 %v1175_v21, %v1115_v43  ;;  %v2954_v16 = vpop.f32.mrb[45].mxu0 }
 0xa28   :  { %v1178_v12 = vpop.f32.mrb[46].mxu0 }
 0xa29   :  { %v1214_v40 = vmul.f32 0.7978846, %v1208_v25  ;;  %v1209_v34 = vadd.f32 %v1203_v4, %v1171_v8  ;;  %v1192_v35 = vmul.f32 %v1176_v37, %v1176_v37  ;;  %v1179_v56 = vadd.f32 %v1178_v12, %v1115_v43  ;;  %v2955_v41 = vpop.f32.mrb[47].mxu0 }
 0xa2b   :  { %3259 = vtanh.f32 %v1214_v40  ;;  %v1215_v44 = vmul.f32 0.7978846, %v1209_v34  ;;  %v1198_v39 = vmul.f32 %v1192_v35, %v1176_v37  ;;  %v1193_v63 = vmul.f32 %v1179_v56, %v1179_v56 }
 0xa2d   :  { %3261 = vtanh.f32 %v1215_v44  ;;  %v1204_v29 = vmul.f32 0.044715, %v1198_v39  ;;  %v1199_v7 = vmul.f32 %v1193_v63, %v1179_v56 }
 0xa2e   :  { %v1183_v18 = vpop.f32.mrb[48].mxu0 }
 0xa2f   :  { %v1210_v32 = vadd.f32 %v1204_v29, %v1176_v37  ;;  %v1205_v49 = vmul.f32 0.044715, %v1199_v7  ;;  %v1184_v52 = vadd.f32 %v1183_v18, %v1115_v43  ;;  %v2958_v9 = vpop.f32.mrb[49].mxu0 }
 0xa30   :  { %v1186_v53 = vpop.f32.mrb[50].mxu0 }
 0xa31   :  { %v1216_v13 = vmul.f32 0.7978846, %v1210_v32  ;;  %v1211_v57 = vadd.f32 %v1205_v49, %v1179_v56  ;;  %v1194_v50 = vmul.f32 %v1184_v52, %v1184_v52  ;;  %v1187_v36 = vadd.f32 %v1186_v53, %v1115_v43  ;;  %v2959_v58 = vpop.f32.mrb[51].mxu0 }
 0xa33   :  { %3263 = vtanh.f32 %v1216_v13  ;;  %v1217_v48 = vmul.f32 0.7978846, %v1211_v57  ;;  %v1200_v19 = vmul.f32 %v1194_v50, %v1184_v52  ;;  %v1195_v59 = vmul.f32 %v1187_v36, %v1187_v36 }
 0xa35   :  { %v3260_v51 = vpop.eup %3259  ;;  %3265 = vtanh.f32 %v1217_v48  ;;  %v1206_v26 = vmul.f32 0.044715, %v1200_v19  ;;  %v1201_v2 = vmul.f32 %v1195_v59, %v1187_v36 }
 0xa36   :  { %v1226_v42 = vadd.f32 1.0, %v3260_v51 }
 0xa37   :  { %v3262_v31 = vpop.eup %3261  ;;  %v1212_v55 = vadd.f32 %v1206_v26, %v1184_v52  ;;  %v1207_v5 = vmul.f32 0.044715, %v1201_v2 }
 0xa38   :  { %v1232_v60 = vmul.f32 0.5, %v1226_v42  ;;  %v1227_v46 = vadd.f32 1.0, %v3262_v31 }
 0xa39   :  { %v1218_v6 = vmul.f32 0.7978846, %v1212_v55  ;;  %v1213_v1 = vadd.f32 %v1207_v5, %v1187_v36 }
 0xa3a   :  { %v1233_v15 = vmul.f32 0.5, %v1227_v46  ;;  %v1238_v22 = vmul.f32 %v1232_v60, %v1168_v11 }
 0xa3b   :  { %3267 = vtanh.f32 %v1218_v6  ;;  %v1219_v43 = vmul.f32 0.7978846, %v1213_v1 }
 0xa3c   :  { %v1239_v21 = vmul.f32 %v1233_v15, %v1171_v8 }
 0xa3d   :  { %v3264_v25 = vpop.eup %3263  ;;  %3269 = vtanh.f32 %v1219_v43 }
 0xa3e   :  { %v1244_v4 = vpack.c.bf16 %v1239_v21, %v1238_v22  ;;  %v1228_v16 = vadd.f32 1.0, %v3264_v25 }
 0xa3f   :  { %v3266_v12 = vpop.eup %3265 }
 0xa40   :  { %v1234_v40 = vmul.f32 0.5, %v1228_v16  ;;  %v1229_v34 = vadd.f32 1.0, %v3266_v12  ;;  %2969 = vmatmul.mubr.msk.bf16.vlgmr.msra.gmra.mrb[44].mxu1 %vm74_vm1, %v1244_v4 }
 0xa41   :  { %2972 = vmatprep.mubr.msk.bf16.mxu1 %vm3382_vm0, %v3381_v0 }
 0xa42   :  { %v1235_v35 = vmul.f32 0.5, %v1229_v34  ;;  %v1240_v41 = vmul.f32 %v1234_v40, %v1176_v37  ;;  %v1249_v37 = vsub.s32 7, %v3572_v23 }
 0xa44   :  { %v1241_v44 = vmul.f32 %v1235_v35, %v1179_v56  ;;  %v1250_v56 = vrot.slane %v3901_v45, %v1249_v37 }
 0xa45   :  { %v3268_v39 = vpop.eup %3267 }
 0xa46   :  { %v1230_v63 = vadd.f32 1.0, %v3268_v39  ;;  %v1245_v29 = vpack.c.bf16 %v1241_v44, %v1240_v41 }
 0xa47   :  { %v3270_v11 = vpop.eup %3269 }
 0xa48   :  { %v1236_v8 = vmul.f32 0.5, %v1230_v63  ;;  %v1231_v7 = vadd.f32 1.0, %v3270_v11  ;;  %2973 = vmatmul.mubr.msk.bf16.gmra.mrb[48].mxu1 %vm74_vm1, %v1245_v29 }
 0xa49   :  { %2976 = vmatprep.mubr.msk.bf16.mxu1 %vm3382_vm0, %v3381_v0 }
 0xa4a   :  { %v1237_v18 = vmul.f32 0.5, %v1231_v7  ;;  %v1242_v32 = vmul.f32 %v1236_v8, %v1184_v52 }
 0xa4c   :  { %v1243_v49 = vmul.f32 %v1237_v18, %v1187_v36 }
 0xa4e   :  { %v1246_v9 = vpack.c.bf16 %v1243_v49, %v1242_v32 }
 0xa50   :  { %2977 = vmatmul.mubr.msk.bf16.gmra.mrb[52].mxu1 %vm74_vm1, %v1246_v9 }
 0xa51   :  { %3002 = vmatprep.mubr.msk.bf16.mxu1 %vm3382_vm0, %v3381_v0 }
 0xb13   :  { %v1318_v53 = vpop.f32.mrb[44].mxu1 }
 0xb14   :  { %v1319_v13 = vadd.f32 %v1318_v53, %v1250_v56  ;;  %v2970_v57 = vpop.f32.mrb[45].mxu1 }
 0xb15   :  { %v1321_v50 = vpop.f32.mrb[46].mxu1 }
 0xb16   :  { %v3953_v58 = vadd.f32 %v1319_v13, %v3856_v47  ;;  %v1322_v52 = vadd.f32 %v1321_v50, %v1250_v56  ;;  %v2971_v36 = vpop.f32.mrb[47].mxu1 }
 0xb18   :  { %v3956_v48 = vadd.f32 %v1322_v52, %v3859_v61  ;;  %v1363_v19 = vsel %vm223_vm2, %v3953_v58, 0.0 }
 0xb19   :  { %1364 = vadd.xlane.f32.xlu0 %v1363_v19 }
 0xb1a   :  { %v1366_v59 = vsel %vm223_vm2, %v3956_v48, 0.0 }
 0xb1b   :  { %1367 = vadd.xlane.f32.xlu1 %v1366_v59  ;;  %v1326_v45 = vpop.f32.mrb[48].mxu1 }
 0xb1c   :  { %v1327_v51 = vadd.f32 %v1326_v45, %v1250_v56  ;;  %v2974_v26 = vpop.f32.mrb[49].mxu1  ;;  %v4009_v45 = vld [vmem:[%s4446_s3 + $0x20] ss:$8 sps:$4 sm:$0xff]  }
 0xb1d   :  { %v1329_v2 = vpop.f32.mrb[50].mxu1  ;;  %2981 = vmatpush3.bf16.msra.mxu0 %v4009_v45 }
 0xb1e   :  { %v3963_v47 = vadd.f32 %v1327_v51, %v3866_v17  ;;  %v1330_v42 = vadd.f32 %v1329_v2, %v1250_v56  ;;  %v2975_v31 = vpop.f32.mrb[51].mxu1  ;;  %2982 = vmatprep.subr.bf16.mxu0 %v3381_v0  ;;  %v4016_v51 = vld [vmem:[%s4446_s3 + $0x30] ss:$8 sps:$4 sm:$0xff]  }
 0xb20   :  { %v3966_v61 = vadd.f32 %v1330_v42, %v3869_v20  ;;  %v1369_v55 = vsel %vm223_vm2, %v3963_v47, 0.0 }
 0xb21   :  { %1370 = vadd.xlane.f32.xlu0 %v1369_v55  ;;  %2983 = vmatpush3.bf16.msra.mxu0 %v4016_v51 }
 0xb22   :  { %v1372_v5 = vsel %vm223_vm2, %v3966_v61, 0.0  ;;  %3014 = vmatprep.subr.bf16.mxu0 %v3381_v0 }
 0xb23   :  { %1373 = vadd.xlane.f32.xlu1 %v1372_v5  ;;  %v1334_v60 = vpop.f32.mrb[52].mxu1 }
 0xb24   :  { %v1335_v46 = vadd.f32 %v1334_v60, %v1250_v56  ;;  %v2978_v6 = vpop.f32.mrb[53].mxu1 }
 0xb25   :  { %v1337_v1 = vpop.f32.mrb[54].mxu1 }
 0xb26   :  { %v3973_v17 = vadd.f32 %v1335_v46, %v3876_v27  ;;  %v1338_v15 = vadd.f32 %v1337_v1, %v1250_v56  ;;  %v2979_v43 = vpop.f32.mrb[55].mxu1  ;;  %v4023_v1 = vld [vmem:[%s4447_s5 + $0x8] sm:$0xff] }
 0xb28   :  { %v3976_v20 = vadd.f32 %v1338_v15, %v3879_v30  ;;  %v1375_v22 = vsel %vm223_vm2, %v3973_v17, 0.0 }
 0xb29   :  { %1376 = vadd.xlane.f32.xlu0 %v1375_v22 }
 0xb2a   :  { %v1378_v21 = vsel %vm223_vm2, %v3976_v20, 0.0 }
 0xb2b   :  { %1379 = vadd.xlane.f32.xlu1 %v1378_v21  ;;  %v1444_v21 = vrot.slane %v4023_v1, %v305_v28 }
 0xba6   :  { %v1365_v25 = vpop.xlane.xlu0 %1364 }
 0xba7   :  { %v1381_v4 = vmul.f32 0.03125, %v1365_v25 }
 0xba8   :  { %v1368_v16 = vpop.xlane.xlu1 %1367 }
 0xba9   :  { %v1387_v12 = vsub.f32 %v3953_v58, %v1381_v4  ;;  %v1382_v27 = vmul.f32 0.03125, %v1368_v16 }
 0xbab   :  { %v1388_v40 = vsub.f32 %v3956_v48, %v1382_v27  ;;  %v1393_v34 = vmul.f32 %v1387_v12, %v1387_v12 }
 0xbad   :  { %v1399_v30 = vsel %vm223_vm2, %v1393_v34, 0.0  ;;  %v1394_v35 = vmul.f32 %v1388_v40, %v1388_v40 }
 0xbae   :  { %v1371_v41 = vpop.xlane.xlu0 %1370  ;;  %1400 = vadd.xlane.f32.xlu0 %v1399_v30  ;;  %v1454_v30 = vrot.slane %v4023_v1, %v315_v38 }
 0xbaf   :  { %v1383_v44 = vmul.f32 0.03125, %v1371_v41  ;;  %v1402_v39 = vsel %vm223_vm2, %v1394_v35, 0.0 }
 0xbb0   :  { %v1374_v63 = vpop.xlane.xlu1 %1373  ;;  %1403 = vadd.xlane.f32.xlu1 %v1402_v39 }
 0xbb1   :  { %v3987_v29 = vsub.f32 %v3963_v47, %v1383_v44  ;;  %v1384_v11 = vmul.f32 0.03125, %v1374_v63 }
 0xbb3   :  { %v3990_v8 = vsub.f32 %v3966_v61, %v1384_v11  ;;  %v1395_v7 = vmul.f32 %v3987_v29, %v3987_v29 }
 0xbb5   :  { %v1405_v18 = vsel %vm223_vm2, %v1395_v7, 0.0  ;;  %v1396_v32 = vmul.f32 %v3990_v8, %v3990_v8 }
 0xbb6   :  { %1406 = vadd.xlane.f32.xlu0 %v1405_v18  ;;  %v1377_v49 = vpop.xlane.xlu0 %1376 }
 0xbb7   :  { %v1385_v9 = vmul.f32 0.03125, %v1377_v49  ;;  %v1408_v56 = vsel %vm223_vm2, %v1396_v32, 0.0 }
 0xbb8   :  { %1409 = vadd.xlane.f32.xlu1 %v1408_v56  ;;  %v1380_v53 = vpop.xlane.xlu1 %1379 }
 0xbb9   :  { %v1391_v13 = vsub.f32 %v3973_v17, %v1385_v9  ;;  %v1386_v57 = vmul.f32 0.03125, %v1380_v53 }
 0xbbb   :  { %v4000_v50 = vsub.f32 %v3976_v20, %v1386_v57  ;;  %v1397_v52 = vmul.f32 %v1391_v13, %v1391_v13 }
 0xbbd   :  { %v1411_v36 = vsel %vm223_vm2, %v1397_v52, 0.0  ;;  %v1398_v19 = vmul.f32 %v4000_v50, %v4000_v50 }
 0xbbe   :  { %1412 = vadd.xlane.f32.xlu0 %v1411_v36 }
 0xbbf   :  { %v1414_v59 = vsel %vm223_vm2, %v1398_v19, 0.0 }
 0xbc0   :  { %1415 = vadd.xlane.f32.xlu1 %v1414_v59 }
 0xc3b   :  { %v1401_v26 = vpop.xlane.xlu0 %1400 }
 0xc3c   :  { %v1417_v2 = vmul.f32 0.03125, %v1401_v26 }
 0xc3d   :  { %v1404_v42 = vpop.xlane.xlu1 %1403 }
 0xc3e   :  { %v1423_v31 = vadd.f32 1e-12, %v1417_v2  ;;  %v1418_v55 = vmul.f32 0.03125, %v1404_v42 }
 0xc40   :  { %3271 = vrsqrt.f32 %v1423_v31  ;;  %v1424_v5 = vadd.f32 1e-12, %v1418_v55 }
 0xc42   :  { %3273 = vrsqrt.f32 %v1424_v5 }
 0xc43   :  { %v1407_v60 = vpop.xlane.xlu0 %1406 }
 0xc44   :  { %v1419_v46 = vmul.f32 0.03125, %v1407_v60 }
 0xc45   :  { %v1410_v6 = vpop.xlane.xlu1 %1409 }
 0xc46   :  { %v1425_v15 = vadd.f32 1e-12, %v1419_v46  ;;  %v1420_v43 = vmul.f32 0.03125, %v1410_v6 }
 0xc48   :  { %3275 = vrsqrt.f32 %v1425_v15  ;;  %v1426_v22 = vadd.f32 1e-12, %v1420_v43 }
 0xc4a   :  { %v3272_v25 = vpop.eup %3271  ;;  %3277 = vrsqrt.f32 %v1426_v22 }
 0xc4b   :  { %v1435_v4 = vmul.f32 %v3272_v25, %v1387_v12  ;;  %v1413_v16 = vpop.xlane.xlu0 %1412 }
 0xc4c   :  { %v3274_v27 = vpop.eup %3273  ;;  %v1421_v34 = vmul.f32 0.03125, %v1413_v16 }
 0xc4d   :  { %v1445_v35 = vmul.f32 %v1444_v21, %v1435_v4  ;;  %v1436_v41 = vmul.f32 %v3274_v27, %v1388_v40  ;;  %v1416_v44 = vpop.xlane.xlu1 %1415 }
 0xc4e   :  { %v1427_v39 = vadd.f32 1e-12, %v1421_v34  ;;  %v1422_v63 = vmul.f32 0.03125, %v1416_v44 }
 0xc4f   :  { %v1446_v11 = vmul.f32 %v1444_v21, %v1436_v41  ;;  %v1455_v18 = vadd.f32 %v1454_v30, %v1445_v35 }
 0xc50   :  { %3279 = vrsqrt.f32 %v1427_v39  ;;  %v1428_v7 = vadd.f32 1e-12, %v1422_v63 }
 0xc51   :  { %v1456_v28 = vadd.f32 %v1454_v30, %v1446_v11 }
 0xc52   :  { %v3276_v32 = vpop.eup %3275  ;;  %3281 = vrsqrt.f32 %v1428_v7 }
 0xc53   :  { %v1437_v12 = vmul.f32 %v3276_v32, %v3987_v29  ;;  %v1461_v49 = vpack.c.bf16 %v1456_v28, %v1455_v18 }
 0xc54   :  { %v3278_v9 = vpop.eup %3277 }
 0xc55   :  { %v1438_v56 = vmul.f32 %v3278_v9, %v3990_v8  ;;  %2985 = vmatmul.mubr.msk.bf16.vlgmr.msra.gmra.mrb[52].mxu0 %vm223_vm2, %v1461_v49  ;;  %v1447_v38 = vmul.f32 %v1444_v21, %v1437_v12 }
 0xc56   :  { %2988 = vmatprep.mubr.msk.bf16.mxu0 %vm3382_vm0, %v3381_v0 }
 0xc57   :  { %v1448_v40 = vmul.f32 %v1444_v21, %v1438_v56  ;;  %v1457_v53 = vadd.f32 %v1454_v30, %v1447_v38 }
 0xc59   :  { %v1458_v57 = vadd.f32 %v1454_v30, %v1448_v40 }
 0xc5a   :  { %v3280_v52 = vpop.eup %3279 }
 0xc5b   :  { %v1439_v36 = vmul.f32 %v3280_v52, %v1391_v13  ;;  %v1462_v19 = vpack.c.bf16 %v1458_v57, %v1457_v53  ;;  %v1467_v13 = vrot.slane %v4023_v1, %v328_v3 }
 0xc5c   :  { %v3282_v59 = vpop.eup %3281 }
 0xc5d   :  { %v1440_v26 = vmul.f32 %v3282_v59, %v4000_v50  ;;  %2989 = vmatmul.mubr.msk.bf16.gmra.mrb[56].mxu0 %vm223_vm2, %v1462_v19  ;;  %v1449_v29 = vmul.f32 %v1444_v21, %v1439_v36 }
 0xc5e   :  { %2992 = vmatprep.mubr.msk.bf16.mxu0 %vm3382_vm0, %v3381_v0 }
 0xc5f   :  { %v1450_v8 = vmul.f32 %v1444_v21, %v1440_v26  ;;  %v1459_v2 = vadd.f32 %v1454_v30, %v1449_v29 }
 0xc61   :  { %v1460_v42 = vadd.f32 %v1454_v30, %v1450_v8 }
 0xc63   :  { %v1463_v31 = vpack.c.bf16 %v1460_v42, %v1459_v2 }
 0xc65   :  { %2993 = vmatmul.mubr.msk.bf16.gmra.mrb[60].mxu0 %vm223_vm2, %v1463_v31 }
 0xc66   :  { %3020 = vmatprep.mubr.msk.bf16.mxu0 %vm3382_vm0, %v3381_v0 }
 0xd28   :  { %v1523_v50 = vpop.f32.mrb[52].mxu0 }
 0xd29   :  { %v2986_v55 = vpop.f32.mrb[53].mxu0  ;;  %v1524_v60 = vadd.f32 %v1523_v50, %v1467_v13 }
 0xd2a   :  { %v1526_v5 = vpop.f32.mrb[54].mxu0 }
 0xd2b   :  { %v1527_v46 = vadd.f32 %v1526_v5, %v1467_v13  ;;  %v2987_v6 = vpop.f32.mrb[55].mxu0 }
 0xd2d   :  { %v4046_v15 = vpack.c.bf16 %v1527_v46, %v1524_v60 }
 0xd2f   :  { %1552 = vrot.lane.b32.xlu0 %v4046_v15, %s3383_s1 }
 0xd30   :  { %v1531_v43 = vpop.f32.mrb[56].mxu0 }
 0xd31   :  { %v2990_v22 = vpop.f32.mrb[57].mxu0  ;;  %v1532_v25 = vadd.f32 %v1531_v43, %v1467_v13 }
 0xd32   :  { %v1534_v21 = vpop.f32.mrb[58].mxu0 }
 0xd33   :  { %v1535_v4 = vadd.f32 %v1534_v21, %v1467_v13  ;;  %v2991_v16 = vpop.f32.mrb[59].mxu0 }
 0xd35   :  { %v4050_v27 = vpack.c.bf16 %v1535_v4, %v1532_v25 }
 0xd37   :  { %1797 = vrot.lane.b32.xlu0 %v4050_v27, %s3384_s13  ;;  %1554 = vrot.lane.b32.xlu1 %v4050_v27, %s3383_s1 }
 0xd38   :  { %v1539_v3 = vpop.f32.mrb[60].mxu0 }
 0xd39   :  { %v2994_v34 = vpop.f32.mrb[61].mxu0  ;;  %v1540_v35 = vadd.f32 %v1539_v3, %v1467_v13 }
 0xd3a   :  { %v1542_v30 = vpop.f32.mrb[62].mxu0 }
 0xd3b   :  { %v1543_v41 = vadd.f32 %v1542_v30, %v1467_v13  ;;  %1789 = vrot.lane.b32.xlu0 %v4046_v15, %s3385_s14  ;;  %v2995_v44 = vpop.f32.mrb[63].mxu0 }
 0xd3d   :  { %v4058_v39 = vpack.c.bf16 %v1543_v41, %v1540_v35 }
 0xd3f   :  { %1793 = vrot.lane.b32.xlu0 %v4058_v39, %s3385_s14  ;;  %1556 = vrot.lane.b32.xlu1 %v4058_v39, %s3383_s1 }
 0xd43   :  { %1795 = vrot.lane.b32.xlu1 %v4046_v15, %s3384_s13 }
 0xd47   :  { %1799 = vrot.lane.b32.xlu1 %v4058_v39, %s3384_s13 }
 0xd4b   :  { %1791 = vrot.lane.b32.xlu1 %v4050_v27, %s3385_s14 }
 0xd4f   :  { %1714 = vrot.lane.b32.xlu1 %v4046_v15, %s3386_s15 }
 0xda1   :  { %v1553_v63 = vpop.permute.xlu0 %1552 }
 0xda2   :  { %v1568_v11 = vsel %vm420_vm3, %v1553_v63, 0 }
 0xda3   :  { %2997 = vmatpush3.bf16.xpose.msra.mxu1 %v1568_v11 }
 0xda4   :  { %2998 = vmatprep.subr.bf16.mxu1 %v3381_v0 }
 0xda9   :  { %v1555_v7 = vpop.permute.xlu1 %1554  ;;  %v1798_v38 = vpop.permute.xlu0 %1797 }
 0xdaa   :  { %v1571_v18 = vsel %vm420_vm3, %v1555_v7, 0  ;;  %v1814_v53 = vsel %vm420_vm3, %v1798_v38, 0 }
 0xdab   :  { %2999 = vmatpush3.bf16.xpose.msra.mxu1 %v1571_v18 }
 0xdac   :  { %3000 = vmatprep.subr.bf16.mxu1 %v3381_v0 }
 0xdad   :  { %v1790_v52 = vpop.permute.xlu0 %1789 }
 0xdb1   :  { %v1557_v28 = vpop.permute.xlu1 %1556  ;;  %v1794_v36 = vpop.permute.xlu0 %1793 }
 0xdb2   :  { %v1574_v32 = vsel %vm420_vm3, %v1557_v28, 0 }
 0xdb3   :  { %3001 = vmatpush3.bf16.xpose.msra.mxu1 %v1574_v32 }
 0xdb4   :  { %3032 = vmatprep.subr.bf16.mxu1 %v3381_v0 }
 0xdb5   :  { %v1796_v12 = vpop.permute.xlu1 %1795 }
 0xdb6   :  { %v1811_v9 = vsel %vm420_vm3, %v1796_v12, 0 }
 0xdb9   :  { %v1800_v49 = vpop.permute.xlu1 %1799 }
 0xdba   :  { %3003 = vmatmul.mubr.msk.bf16.vlgmr.msra.gmra.mrb[56].mxu1 %vm420_vm3, %v4046_v15  ;;  %v1817_v57 = vsel %vm420_vm3, %v1800_v49, 0 }
 0xdbb   :  { %3033 = vmatpush3.bf16.xpose.msra.mxu1 %v1811_v9  ;;  %3006 = vmatprep.mubr.msk.bf16.mxu1 %vm3382_vm0, %v3381_v0 }
 0xdbc   :  { %3034 = vmatprep.subr.bf16.mxu1 %v3381_v0 }
 0xdbd   :  { %v1792_v56 = vpop.permute.xlu1 %1791 }
 0xdc1   :  { %v1715_v40 = vpop.permute.xlu1 %1714 }
 0xdc2   :  { %3007 = vmatmul.mubr.msk.bf16.gmra.mrb[60].mxu1 %vm420_vm3, %v4050_v27  ;;  %3015 = vmatpush3.bf16.msra.mxu0 %v1715_v40 }
 0xdc3   :  { %3035 = vmatpush3.bf16.xpose.msra.mxu1 %v1814_v53  ;;  %3010 = vmatprep.mubr.msk.bf16.mxu1 %vm3382_vm0, %v3381_v0 }
 0xdc4   :  { %3036 = vmatprep.subr.bf16.mxu1 %v3381_v0  ;;  %3016 = vmatprep.subr.bf16.mxu0 %v3381_v0 }
 0xdca   :  { %3011 = vmatmul.mubr.msk.bf16.gmra.mrb[64].mxu1 %vm420_vm3, %v4058_v39 }
 0xdcb   :  { %3037 = vmatpush3.bf16.xpose.msra.mxu1 %v1817_v57  ;;  %3038 = vmatprep.mubr.msk.bf16.mxu1 %vm3382_vm0, %v3381_v0 }
 0xdcc   :  { %3068 = vmatprep.subr.bf16.mxu1 %v3381_v0 }
 0xdd2   :  { %3039 = vmatmul.mubr.msk.bf16.vlgmr.msra.gmra.mrb[68].mxu1 %vm420_vm3, %v1790_v52 }
 0xdd3   :  { %3042 = vmatprep.mubr.msk.bf16.mxu1 %vm3382_vm0, %v3381_v0 }
 0xdda   :  { %3043 = vmatmul.mubr.msk.bf16.gmra.mrb[72].mxu1 %vm420_vm3, %v1792_v56 }
 0xddb   :  { %3046 = vmatprep.mubr.msk.bf16.mxu1 %vm3382_vm0, %v3381_v0 }
 0xde2   :  { %3047 = vmatmul.mubr.msk.bf16.gmra.mrb[76].mxu1 %vm420_vm3, %v1794_v36 }
 0xde3   :  { %3072 = vmatprep.mubr.msk.bf16.mxu1 %vm3382_vm0, %v3381_v0 }
 0xe8d   :  { %v1610_v19 = vpop.f32.mrb[56].mxu1 }
 0xe8e   :  { %v1633_v59 = vmul.f32 0.25, %v1610_v19  ;;  %v3004_v26 = vpop.f32.mrb[57].mxu1 }
 0xe8f   :  { %v1613_v29 = vpop.f32.mrb[58].mxu1 }
 0xe90   :  { %v1634_v8 = vmul.f32 0.25, %v1613_v29  ;;  %v3005_v2 = vpop.f32.mrb[59].mxu1  ;;  %v4108_v42 = vsel %vm169_vm4, %v1633_v59, -1e+30 }
 0xe91   :  { %v1645_v31 = vsel %vm508_vm5, %v4108_v42, -inf }
 0xe92   :  { %1646 = vmax.xlane.f32.xlu1 %v1645_v31  ;;  %v4114_v13 = vsel %vm169_vm4, %v1634_v8, -1e+30 }
 0xe93   :  { %v1648_v50 = vsel %vm508_vm5, %v4114_v13, -inf }
 0xe94   :  { %1649 = vmax.xlane.f32.xlu0 %v1648_v50 }
 0xe95   :  { %v1618_v55 = vpop.f32.mrb[60].mxu1 }
 0xe96   :  { %v1635_v5 = vmul.f32 0.25, %v1618_v55  ;;  %v3008_v60 = vpop.f32.mrb[61].mxu1 }
 0xe97   :  { %v1621_v46 = vpop.f32.mrb[62].mxu1 }
 0xe98   :  { %v1636_v6 = vmul.f32 0.25, %v1621_v46  ;;  %v3009_v43 = vpop.f32.mrb[63].mxu1  ;;  %v4120_v22 = vsel %vm169_vm4, %v1635_v5, -1e+30 }
 0xe99   :  { %v1651_v21 = vsel %vm508_vm5, %v4120_v22, -inf }
 0xe9a   :  { %1652 = vmax.xlane.f32.xlu0 %v1651_v21  ;;  %v4126_v25 = vsel %vm3684_vm8, %v1636_v6, -1e+30 }
 0xe9b   :  { %v1654_v16 = vsel %vm508_vm5, %v4126_v25, -inf }
 0xe9d   :  { %v1626_v4 = vpop.f32.mrb[64].mxu1 }
 0xe9e   :  { %v1637_v3 = vmul.f32 0.25, %v1626_v4  ;;  %1655 = vmax.xlane.f32.xlu0 %v1654_v16  ;;  %v3012_v34 = vpop.f32.mrb[65].mxu1 }
 0xe9f   :  { %v1629_v30 = vpop.f32.mrb[66].mxu1 }
 0xea0   :  { %v1638_v35 = vmul.f32 0.25, %v1629_v30  ;;  %v3013_v41 = vpop.f32.mrb[67].mxu1  ;;  %v4132_v44 = vsel %vm3684_vm8, %v1637_v3, -1e+30 }
 0xea1   :  { %v1657_v63 = vsel %vm508_vm5, %v4132_v44, -inf }
 0xea2   :  { %1658 = vmax.xlane.f32.xlu1 %v1657_v63  ;;  %v1644_v11 = vsel %vm3684_vm8, %v1638_v35, -1e+30 }
 0xea3   :  { %v1660_v7 = vsel %vm508_vm5, %v1644_v11, -inf }
 0xea4   :  { %1661 = vmax.xlane.f32.xlu0 %v1660_v7 }
 0xea5   :  { %v1853_v18 = vpop.f32.mrb[68].mxu1 }
 0xea6   :  { %v1876_v28 = vmul.f32 0.25, %v1853_v18  ;;  %v3040_v32 = vpop.f32.mrb[69].mxu1 }
 0xea7   :  { %v1856_v12 = vpop.f32.mrb[70].mxu1 }
 0xea8   :  { %v1877_v49 = vmul.f32 0.25, %v1856_v12  ;;  %v3041_v9 = vpop.f32.mrb[71].mxu1  ;;  %v4141_v56 = vsel %vm169_vm4, %v1876_v28, -1e+30 }
 0xea9   :  { %v1888_v38 = vsel %vm508_vm5, %v4141_v56, -inf }
 0xeaa   :  { %1889 = vmax.xlane.f32.xlu1 %v1888_v38  ;;  %v1883_v40 = vsel %vm169_vm4, %v1877_v49, -1e+30 }
 0xeab   :  { %v1891_v53 = vsel %vm508_vm5, %v1883_v40, -inf }
 0xeac   :  { %1892 = vmax.xlane.f32.xlu0 %v1891_v53 }
 0xead   :  { %v1861_v57 = vpop.f32.mrb[72].mxu1 }
 0xeae   :  { %v1878_v52 = vmul.f32 0.25, %v1861_v57  ;;  %v3044_v36 = vpop.f32.mrb[73].mxu1 }
 0xeaf   :  { %v1864_v19 = vpop.f32.mrb[74].mxu1 }
 0xeb0   :  { %v1884_v59 = vsel %vm169_vm4, %v1878_v52, -1e+30  ;;  %v1879_v26 = vmul.f32 0.25, %v1864_v19  ;;  %v3045_v29 = vpop.f32.mrb[75].mxu1 }
 0xeb1   :  { %v1894_v8 = vsel %vm508_vm5, %v1884_v59, -inf }
 0xeb2   :  { %v1885_v2 = vsel %vm3684_vm8, %v1879_v26, -1e+30  ;;  %1895 = vmax.xlane.f32.xlu1 %v1894_v8 }
 0xeb3   :  { %v1897_v31 = vsel %vm508_vm5, %v1885_v2, -inf }
 0xeb4   :  { %1898 = vmax.xlane.f32.xlu0 %v1897_v31 }
 0xeb5   :  { %v1869_v50 = vpop.f32.mrb[76].mxu1 }
 0xeb6   :  { %v1880_v55 = vmul.f32 0.25, %v1869_v50  ;;  %v3048_v5 = vpop.f32.mrb[77].mxu1 }
 0xeb7   :  { %v1872_v60 = vpop.f32.mrb[78].mxu1 }
 0xeb8   :  { %v1886_v46 = vsel %vm3684_vm8, %v1880_v55, -1e+30  ;;  %v1881_v62 = vmul.f32 0.25, %v1872_v60  ;;  %v3049_v6 = vpop.f32.mrb[79].mxu1 }
 0xeb9   :  { %v1900_v43 = vsel %vm508_vm5, %v1886_v46, -inf }
 0xeba   :  { %v1887_v21 = vsel %vm3684_vm8, %v1881_v62, -1e+30  ;;  %1901 = vmax.xlane.f32.xlu1 %v1900_v43 }
 0xebb   :  { %v1903_v4 = vsel %vm508_vm5, %v1887_v21, -inf }
 0xebc   :  { %1904 = vmax.xlane.f32.xlu0 %v1903_v4 }
 0xecb   :  { %1718 = vrot.lane.b32.xlu1 %v4058_v39, %s3386_s15 }
 0xed2   :  { %1716 = vrot.lane.b32.xlu0 %v4050_v27, %s3386_s15 }
 0xf1f   :  { %v1647_v16 = vpop.xlane.xlu1 %1646 }
 0xf20   :  { %v1663_v3 = vsub.f32 %v4108_v42, %v1647_v16 }
 0xf21   :  { %v1650_v34 = vpop.xlane.xlu0 %1649 }
 0xf22   :  { %v1669_v30 = vmul.f32 1.442695, %v1663_v3  ;;  %v1664_v35 = vsub.f32 %v4114_v13, %v1650_v34 }
 0xf24   :  { %3283 = vpow2.f32 %v1669_v30  ;;  %v1671_v14 = vmul.f32 1.442695, %v1664_v35 }
 0xf26   :  { %3285 = vpow2.f32 %v1671_v14 }
 0xf27   :  { %v1653_v41 = vpop.xlane.xlu0 %1652 }
 0xf2b   :  { %v1656_v63 = vpop.xlane.xlu0 %1655 }
 0xf2c   :  { %v1666_v7 = vsub.f32 %v4126_v25, %v1656_v63 }
 0xf2e   :  { %v4167_v18 = vpop.eup %3283  ;;  %v1675_v28 = vmul.f32 1.442695, %v1666_v7 }
 0xf2f   :  { %v1681_v32 = vsel %vm508_vm5, %v4167_v18, 0.0  ;;  %v1659_v38 = vpop.xlane.xlu1 %1658 }
 0xf30   :  { %v4171_v12 = vpop.eup %3285  ;;  %3287 = vpow2.f32 %v1675_v28  ;;  %1682 = vadd.xlane.f32.xlu1 %v1681_v32  ;;  %v1667_v35 = vsub.f32 %v4132_v44, %v1659_v38 }
 0xf31   :  { %v1662_v42 = vpop.xlane.xlu0 %1661  ;;  %v1684_v13 = vsel %vm508_vm5, %v4171_v12, 0.0 }
 0xf32   :  { %v1668_v49 = vsub.f32 %v1644_v11, %v1662_v42  ;;  %1685 = vadd.xlane.f32.xlu0 %v1684_v13 }
 0xf34   :  { %v1679_v9 = vmul.f32 1.442695, %v1668_v49 }
 0xf36   :  { %3289 = vpow2.f32 %v1679_v9 }
 0xf37   :  { %v1890_v52 = vpop.xlane.xlu1 %1889 }
 0xf38   :  { %v1906_v63 = vsub.f32 %v4141_v56, %v1890_v52 }
 0xf39   :  { %v1893_v25 = vpop.xlane.xlu0 %1892 }
 0xf3a   :  { %v4175_v53 = vpop.eup %3287  ;;  %v1907_v57 = vsub.f32 %v1883_v40, %v1893_v25  ;;  %v1912_v44 = vmul.f32 1.442695, %v1906_v63 }
 0xf3b   :  { %v1690_v36 = vsel %vm508_vm5, %v4175_v53, 0.0 }
 0xf3c   :  { %v1914_v19 = vmul.f32 1.442695, %v1907_v57  ;;  %1691 = vadd.xlane.f32.xlu0 %v1690_v36 }
 0xf3e   :  { %3291 = vpow2.f32 %v1914_v19 }
 0xf3f   :  { %v1896_v26 = vpop.xlane.xlu1 %1895 }
 0xf40   :  { %v4179_v29 = vpop.eup %3289  ;;  %v1908_v8 = vsub.f32 %v1884_v59, %v1896_v26 }
 0xf41   :  { %v1899_v11 = vpop.xlane.xlu0 %1898  ;;  %1957 = vrot.lane.b32.xlu1 %v4046_v15, %s3387_s16  ;;  %v1696_v31 = vsel %vm508_vm5, %v4179_v29, 0.0 }
 0xf42   :  { %v1916_v50 = vmul.f32 1.442695, %v1908_v8  ;;  %v1909_v40 = vsub.f32 %v1885_v2, %v1899_v11  ;;  %1697 = vadd.xlane.f32.xlu0 %v1696_v31  ;;  %v1665_v2 = vsub.f32 %v4120_v22, %v1653_v41  ;;  %v1677_v41 = vmul.f32 1.442695, %v1667_v35 }
 0xf44   :  { %3293 = vpow2.f32 %v1916_v50  ;;  %v1918_v55 = vmul.f32 1.442695, %v1909_v40 }
 0xf46   :  { %3295 = vpow2.f32 %v1918_v55 }
 0xf47   :  { %v1902_v5 = vpop.xlane.xlu1 %1901 }
 0xf48   :  { %v4185_v60 = vpop.eup %3291  ;;  %v1910_v62 = vsub.f32 %v1886_v46, %v1902_v5 }
 0xf49   :  { %v1905_v6 = vpop.xlane.xlu0 %1904  ;;  %v1927_v59 = vsel %vm508_vm5, %v4185_v60, 0.0 }
 0xf4a   :  { %v1920_v43 = vmul.f32 1.442695, %v1910_v62  ;;  %v1911_v4 = vsub.f32 %v1887_v21, %v1905_v6  ;;  %1928 = vadd.xlane.f32.xlu0 %v1927_v59  ;;  %v1673_v21 = vmul.f32 1.442695, %v1665_v2 }
 0xf4b   :  { %v1719_v30 = vpop.permute.xlu1 %1718 }
 0xf4c   :  { %3297 = vpow2.f32 %v1920_v43  ;;  %v1922_v15 = vmul.f32 1.442695, %v1911_v4 }
 0xf4d   :  { %v1717_v16 = vpop.permute.xlu0 %1716 }
 0xf4e   :  { %v4189_v3 = vpop.eup %3293  ;;  %3299 = vpow2.f32 %v1922_v15  ;;  %3017 = vmatpush3.bf16.msra.mxu0 %v1717_v16 }
 0xf4f   :  { %v1930_v34 = vsel %vm508_vm5, %v4189_v3, 0.0  ;;  %3018 = vmatprep.subr.bf16.mxu0 %v3381_v0  ;;  %3301 = vpow2.f32 %v1673_v21 }
 0xf50   :  { %v4195_v46 = vpop.eup %3295  ;;  %1931 = vadd.xlane.f32.xlu0 %v1930_v34  ;;  %3303 = vpow2.f32 %v1677_v41 }
 0xf51   :  { %v1933_v14 = vsel %vm508_vm5, %v4195_v46, 0.0  ;;  %3305 = vpow2.f32 %v1912_v44 }
 0xf52   :  { %3019 = vmatpush3.bf16.msra.mxu0 %v1719_v30 }
 0xf53   :  { %3050 = vmatprep.subr.bf16.mxu0 %v3381_v0 }
 0xf54   :  { %1934 = vadd.xlane.f32.xlu0 %v1933_v14 }
 0xf56   :  { %v4201_v22 = vpop.eup %3297 }
 0xf57   :  { %v1936_v7 = vsel %vm508_vm5, %v4201_v22, 0.0 }
 0xf58   :  { %v4206_v28 = vpop.eup %3299  ;;  %1937 = vadd.xlane.f32.xlu0 %v1936_v7 }
 0xf59   :  { %v1939_v32 = vsel %vm508_vm5, %v4206_v28, 0.0  ;;  %v3302_v42 = vpop.eup %3301 }
 0xf5a   :  { %v1687_v13 = vsel %vm508_vm5, %v3302_v42, 0.0  ;;  %v3304_v49 = vpop.eup %3303 }
 0xf5b   :  { %v1693_v56 = vsel %vm508_vm5, %v3304_v49, 0.0  ;;  %v3306_v9 = vpop.eup %3305 }
 0xf5c   :  { %1940 = vadd.xlane.f32.xlu0 %v1939_v32  ;;  %v1924_v38 = vsel %vm508_vm5, %v3306_v9, 0.0 }
 0xf65   :  { %1688 = vadd.xlane.f32.xlu1 %v1687_v13 }
 0xf69   :  { %1694 = vadd.xlane.f32.xlu1 %v1693_v56 }
 0xf6d   :  { %1925 = vadd.xlane.f32.xlu1 %v1924_v38 }
 0xf72   :  { %1959 = vrot.lane.b32.xlu0 %v4050_v27, %s3387_s16 }
 0xf7e   :  { %1961 = vrot.lane.b32.xlu1 %v4058_v39, %s3387_s16 }
 0xf82   :  { %2069 = vrot.lane.b32.xlu1 %v4009_v45, %s3388_s17 }
 0xfbd   :  { %v1683_v25 = vpop.xlane.xlu1 %1682 }
 0xfbe   :  { %3307 = vrcp.f32 %v1683_v25 }
 0xfbf   :  { %v1686_v57 = vpop.xlane.xlu0 %1685 }
 0xfc0   :  { %3309 = vrcp.f32 %v1686_v57 }
 0xfc1   :  { %v1958_v11 = vpop.permute.xlu1 %1957 }
 0xfc8   :  { %v3308_v52 = vpop.eup %3307 }
 0xfc9   :  { %v1705_v19 = vmul.f32 %v3308_v52, %v4167_v18  ;;  %v1692_v27 = vpop.xlane.xlu0 %1691 }
 0xfca   :  { %v3310_v36 = vpop.eup %3309  ;;  %3311 = vrcp.f32 %v1692_v27 }
 0xfcb   :  { %v1706_v26 = vmul.f32 %v3310_v36, %v4171_v12 }
 0xfcd   :  { %v1711_v8 = vpack.c.bf16 %v1706_v26, %v1705_v19 }
 0xfcf   :  { %3021 = vmatmul.mubr.msk.bf16.vlgmr.msra.gmra.mrb[64].mxu0 %vm508_vm5, %v1711_v8  ;;  %v1698_v45 = vpop.xlane.xlu0 %1697 }
 0xfd0   :  { %3051 = vmatpush3.bf16.msra.mxu0 %v1958_v11  ;;  %3024 = vmatprep.mubr.msk.bf16.mxu0 %vm3382_vm0, %v3381_v0 }
 0xfd1   :  { %3052 = vmatprep.subr.bf16.mxu0 %v3381_v0 }
 0xfd4   :  { %v3312_v6 = vpop.eup %3311 }
 0xfd5   :  { %v1708_v15 = vmul.f32 %v3312_v6, %v4175_v53 }
 0xfd7   :  { %v1929_v39 = vpop.xlane.xlu0 %1928 }
 0xfdd   :  { %v1932_v31 = vpop.xlane.xlu0 %1931 }
 0xfe1   :  { %v1935_v50 = vpop.xlane.xlu0 %1934 }
 0xfe5   :  { %v1938_v40 = vpop.xlane.xlu0 %1937 }
 0xfe9   :  { %v1941_v55 = vpop.xlane.xlu0 %1940 }
 0xfed   :  { %v1960_v18 = vpop.permute.xlu0 %1959 }
 0xfee   :  { %3053 = vmatpush3.bf16.msra.mxu0 %v1960_v18 }
 0xfef   :  { %3054 = vmatprep.subr.bf16.mxu0 %v3381_v0 }
 0xff2   :  { %v1689_v12 = vpop.xlane.xlu1 %1688 }
 0xff3   :  { %3313 = vrcp.f32 %v1689_v12 }
 0xff6   :  { %v1695_v5 = vpop.xlane.xlu1 %1694 }
 0xff7   :  { %3315 = vrcp.f32 %v1695_v5 }
 0xff8   :  { %3317 = vrcp.f32 %v1698_v45 }
 0xffa   :  { %v1926_v62 = vpop.xlane.xlu1 %1925 }
 0xffb   :  { %3319 = vrcp.f32 %v1926_v62 }
 0xffc   :  { %3321 = vrcp.f32 %v1929_v39 }
 0xffd   :  { %v3314_v59 = vpop.eup %3313  ;;  %3323 = vrcp.f32 %v1935_v50 }
 0xffe   :  { %v1962_v43 = vpop.permute.xlu1 %1961  ;;  %v1707_v4 = vmul.f32 %v3314_v59, %v3302_v42  ;;  %3325 = vrcp.f32 %v1932_v31 }
 0xfff   :  { %3055 = vmatpush3.bf16.msra.mxu0 %v1962_v43  ;;  %3327 = vrcp.f32 %v1941_v55 }
0x1000   :  { %v1712_v16 = vpack.c.bf16 %v1708_v15, %v1707_v4  ;;  %3084 = vmatprep.subr.bf16.mxu0 %v3381_v0  ;;  %3329 = vrcp.f32 %v1938_v40 }
0x1001   :  { %v3316_v2 = vpop.eup %3315 }
0x1002   :  { %3025 = vmatmul.mubr.msk.bf16.gmra.mrb[68].mxu0 %vm508_vm5, %v1712_v16  ;;  %v3318_v34 = vpop.eup %3317  ;;  %v1709_v30 = vmul.f32 %v3316_v2, %v3304_v49 }
0x1003   :  { %3028 = vmatprep.mubr.msk.bf16.mxu0 %vm3382_vm0, %v3381_v0  ;;  %v1710_v21 = vmul.f32 %v3318_v34, %v4179_v29 }
0x1005   :  { %v1713_v35 = vpack.c.bf16 %v1710_v21, %v1709_v30  ;;  %v3320_v14 = vpop.eup %3319 }
0x1006   :  { %v3322_v53 = vpop.eup %3321  ;;  %v1948_v41 = vmul.f32 %v3320_v14, %v3306_v9 }
0x1007   :  { %v1949_v63 = vmul.f32 %v3322_v53, %v4185_v60  ;;  %v3324_v44 = vpop.eup %3323 }
0x1008   :  { %v3326_v29 = vpop.eup %3325  ;;  %v1951_v32 = vmul.f32 %v3324_v44, %v4195_v46  ;;  %v2070_v46 = vpop.permute.xlu1 %2069 }
0x1009   :  { %v1954_v7 = vpack.c.bf16 %v1949_v63, %v1948_v41  ;;  %v1950_v42 = vmul.f32 %v3326_v29, %v4189_v3  ;;  %v3328_v49 = vpop.eup %3327  ;;  %3069 = vmatpush3.bf16.msra.mxu1 %v2070_v46 }
0x100a   :  { %3029 = vmatmul.mubr.msk.bf16.gmra.mrb[72].mxu0 %vm508_vm5, %v1713_v35  ;;  %v3330_v56 = vpop.eup %3329  ;;  %v1953_v60 = vmul.f32 %v3328_v49, %v4206_v28  ;;  %3070 = vmatprep.subr.bf16.mxu1 %v3381_v0 }
0x100b   :  { %3056 = vmatprep.mubr.msk.bf16.mxu0 %vm3382_vm0, %v3381_v0  ;;  %v1955_v13 = vpack.c.bf16 %v1951_v32, %v1950_v42  ;;  %v1952_v9 = vmul.f32 %v3330_v56, %v4201_v22 }
0x100d   :  { %v1956_v38 = vpack.c.bf16 %v1953_v60, %v1952_v9  ;;  %v2068_v60 = vrot.slane %v4023_v1, %v931_v24 }
0x1012   :  { %3057 = vmatmul.mubr.msk.bf16.vlgmr.msra.gmra.mrb[76].mxu0 %vm508_vm5, %v1954_v7 }
0x1013   :  { %3060 = vmatprep.mubr.msk.bf16.mxu0 %vm3382_vm0, %v3381_v0 }
0x101a   :  { %3061 = vmatmul.mubr.msk.bf16.gmra.mrb[80].mxu0 %vm508_vm5, %v1955_v13 }
0x101b   :  { %3064 = vmatprep.mubr.msk.bf16.mxu0 %vm3382_vm0, %v3381_v0 }
0x1022   :  { %3065 = vmatmul.mubr.msk.bf16.gmra.mrb[84].mxu0 %vm508_vm5, %v1956_v38 }
0x1023   :  { %3088 = vmatprep.mubr.msk.bf16.mxu0 %vm3382_vm0, %v3381_v0 }
0x10a2   :  { %v1766_v3 = vpop.f32.mrb[64].mxu0 }
0x10a3   :  { %v3022_v25 = vpop.f32.mrb[65].mxu0 }
0x10a4   :  { %v1769_v57 = vpop.f32.mrb[66].mxu0 }
0x10a5   :  { %v3023_v52 = vpop.f32.mrb[67].mxu0 }
0x10d5   :  { %v1774_v36 = vpop.f32.mrb[68].mxu0 }
0x10d6   :  { %v3026_v19 = vpop.f32.mrb[69].mxu0 }
0x10d7   :  { %v1777_v26 = vpop.f32.mrb[70].mxu0 }
0x10d8   :  { %v3027_v28 = vpop.f32.mrb[71].mxu0 }
0x10dd   :  { %v1782_v8 = vpop.f32.mrb[72].mxu0 }
0x10de   :  { %v3030_v22 = vpop.f32.mrb[73].mxu0 }
0x10df   :  { %v1785_v11 = vpop.f32.mrb[74].mxu0 }
0x10e0   :  { %v3031_v27 = vpop.f32.mrb[75].mxu0 }
0x10e5   :  { %v2009_v45 = vpop.f32.mrb[76].mxu0 }
0x10e6   :  { %v3058_v39 = vpop.f32.mrb[77].mxu0 }
0x10e7   :  { %v2012_v31 = vpop.f32.mrb[78].mxu0 }
0x10e8   :  { %v3148_v50 = vpack.i.bf16 %v2012_v31, %v2009_v45  ;;  %v3059_v40 = vpop.f32.mrb[79].mxu0 }
0x10ea   :  { %3149 = vrot.lane.b32.xlu1 %v3148_v50, %s3389_s18 }
0x10ed   :  { %v2017_v55 = vpop.f32.mrb[80].mxu0 }
0x10ee   :  { %2071 = vrot.lane.b32.xlu1 %v4016_v51, %s3388_s17  ;;  %v3062_v18 = vpop.f32.mrb[81].mxu0 }
0x10ef   :  { %v2020_v12 = vpop.f32.mrb[82].mxu0 }
0x10f0   :  { %v3153_v5 = vpack.i.bf16 %v2020_v12, %v2017_v55  ;;  %v3063_v62 = vpop.f32.mrb[83].mxu0 }
0x10f2   :  { %3154 = vrot.lane.b32.xlu1 %v3153_v5, %s3389_s18 }
0x10f5   :  { %v2025_v6 = vpop.f32.mrb[84].mxu0 }
0x10f6   :  { %v3066_v59 = vpop.f32.mrb[85].mxu0 }
0x10f7   :  { %v2028_v43 = vpop.f32.mrb[86].mxu0 }
0x10f8   :  { %v3158_v4 = vpack.i.bf16 %v2028_v43, %v2025_v6  ;;  %v3067_v15 = vpop.f32.mrb[87].mxu0 }
0x10fa   :  { %3159 = vrot.lane.b32.xlu1 %v3158_v4, %s3389_s18 }
0x115c   :  { %v3150_v16 = vpop.permute.xlu1 %3149 }
0x115d   :  { %v3152_v2 = vunpack.i.h.bf16 %v3150_v16  ;;  %v3151_v34 = vunpack.i.l.bf16 %v3150_v16 }
0x115f   :  { %v2057_v30 = vsel %vm420_vm3, %v1769_v57, %v3152_v2  ;;  %v2056_v51 = vsel %vm420_vm3, %v1766_v3, %v3151_v34 }
0x1160   :  { %v2062_v21 = vpack.c.bf16 %v2057_v30, %v2056_v51  ;;  %v2072_v35 = vpop.permute.xlu1 %2071 }
0x1161   :  { %3071 = vmatpush3.bf16.msra.mxu1 %v2072_v35 }
0x1162   :  { %3100 = vmatprep.subr.bf16.mxu1 %v3381_v0 }
0x1164   :  { %3073 = vmatmul.mubr.msk.bf16.vlgmr.msra.gmra.mrb[80].mxu1 %vm223_vm2, %v2062_v21  ;;  %v3155_v14 = vpop.permute.xlu1 %3154 }
0x1165   :  { %v3157_v53 = vunpack.i.h.bf16 %v3155_v14  ;;  %v3156_v41 = vunpack.i.l.bf16 %v3155_v14  ;;  %3076 = vmatprep.mubr.msk.bf16.mxu1 %vm3382_vm0, %v3381_v0 }
0x1167   :  { %v2059_v63 = vsel %vm420_vm3, %v1777_v26, %v3157_v53  ;;  %v2058_v7 = vsel %vm420_vm3, %v1774_v36, %v3156_v41 }
0x1168   :  { %v2063_v44 = vpack.c.bf16 %v2059_v63, %v2058_v7 }
0x116c   :  { %3077 = vmatmul.mubr.msk.bf16.gmra.mrb[84].mxu1 %vm223_vm2, %v2063_v44  ;;  %v3160_v29 = vpop.permute.xlu1 %3159 }
0x116d   :  { %v3162_v32 = vunpack.i.h.bf16 %v3160_v29  ;;  %v3161_v42 = vunpack.i.l.bf16 %v3160_v29  ;;  %3080 = vmatprep.mubr.msk.bf16.mxu1 %vm3382_vm0, %v3381_v0 }
0x116f   :  { %v2061_v13 = vsel %vm420_vm3, %v1785_v11, %v3162_v32  ;;  %v2060_v49 = vsel %vm420_vm3, %v1782_v8, %v3161_v42 }
0x1170   :  { %v2064_v56 = vpack.c.bf16 %v2061_v13, %v2060_v49 }
0x1174   :  { %3081 = vmatmul.mubr.msk.bf16.gmra.mrb[88].mxu1 %vm223_vm2, %v2064_v56 }
0x1175   :  { %3108 = vmatprep.mubr.msk.bf16.mxu1 %vm3382_vm0, %v3381_v0 }
0x1237   :  { %v2118_v9 = vpop.f32.mrb[80].mxu1 }
0x1238   :  { %v2119_v38 = vadd.f32 %v2118_v9, %v2068_v60  ;;  %v3074_v46 = vpop.f32.mrb[81].mxu1 }
0x1239   :  { %v2121_v3 = vpop.f32.mrb[82].mxu1  ;;  %v3181_v46 = vld [vmem:[%s4446_s3 + $0x24] ss:$8 sps:$4 sm:$0xff]  }
0x123a   :  { %v4275_v25 = vadd.f32 %v2119_v38, %v3953_v58  ;;  %v2122_v57 = vadd.f32 %v2121_v3, %v2068_v60  ;;  %v3075_v52 = vpop.f32.mrb[83].mxu1  ;;  %3085 = vmatpush3.bf16.msra.mxu0 %v3181_v46  ;;  %v3182_v3 = vld [vmem:[%s4446_s3 + $0x34] ss:$8 sps:$4 sm:$0xff]  }
0x123b   :  { %3086 = vmatprep.subr.bf16.mxu0 %v3381_v0 }
0x123c   :  { %v4278_v36 = vadd.f32 %v2122_v57, %v3956_v48  ;;  %v2147_v19 = vsel %vm223_vm2, %v4275_v25, 0.0 }
0x123d   :  { %2148 = vadd.xlane.f32.xlu0 %v2147_v19 }
0x123e   :  { %v2150_v26 = vsel %vm223_vm2, %v4278_v36, 0.0  ;;  %3087 = vmatpush3.bf16.msra.mxu0 %v3182_v3 }
0x123f   :  { %v2126_v24 = vpop.f32.mrb[84].mxu1  ;;  %2151 = vadd.xlane.f32.xlu1 %v2150_v26 }
0x1240   :  { %v2127_v1 = vadd.f32 %v2126_v24, %v2068_v60  ;;  %v3078_v28 = vpop.f32.mrb[85].mxu1 }
0x1241   :  { %v2129_v8 = vpop.f32.mrb[86].mxu1 }
0x1242   :  { %v4285_v58 = vadd.f32 %v2127_v1, %v3963_v47  ;;  %v2130_v22 = vadd.f32 %v2129_v8, %v2068_v60  ;;  %v3079_v11 = vpop.f32.mrb[87].mxu1 }
0x1244   :  { %v4288_v48 = vadd.f32 %v2130_v22, %v3966_v61  ;;  %v2153_v27 = vsel %vm223_vm2, %v4285_v58, 0.0 }
0x1245   :  { %2154 = vadd.xlane.f32.xlu0 %v2153_v27 }
0x1246   :  { %v2156_v50 = vsel %vm223_vm2, %v4288_v48, 0.0 }
0x1247   :  { %v2134_v45 = vpop.f32.mrb[88].mxu1 }
0x1248   :  { %v2135_v39 = vadd.f32 %v2134_v45, %v2068_v60  ;;  %v3082_v31 = vpop.f32.mrb[89].mxu1  ;;  %v4334_v45 = vld [vmem:[%s4447_s5 + $0x8] sm:$0xff] }
0x1249   :  { %2157 = vadd.xlane.f32.xlu0 %v2156_v50  ;;  %v2137_v40 = vpop.f32.mrb[90].mxu1  ;;  %v2251_v46 = vrot.slane %v4334_v45, %v1114_v33 }
0x124a   :  { %v4295_v47 = vadd.f32 %v2135_v39, %v3973_v17  ;;  %v2138_v55 = vadd.f32 %v2137_v40, %v2068_v60  ;;  %v3083_v18 = vpop.f32.mrb[91].mxu1  ;;  %v2228_v39 = vrot.slane %v4334_v45, %v1091_v54 }
0x124c   :  { %v4298_v61 = vadd.f32 %v2138_v55, %v3976_v20  ;;  %v2159_v12 = vsel %vm223_vm2, %v4295_v47, 0.0 }
0x124d   :  { %2160 = vadd.xlane.f32.xlu0 %v2159_v12 }
0x124e   :  { %v2162_v5 = vsel %vm223_vm2, %v4298_v61, 0.0 }
0x124f   :  { %2163 = vadd.xlane.f32.xlu1 %v2162_v5  ;;  %v2238_v5 = vrot.slane %v4334_v45, %v1101_v10 }
0x12ca   :  { %v2149_v62 = vpop.xlane.xlu0 %2148 }
0x12cb   :  { %v2165_v6 = vmul.f32 0.03125, %v2149_v62 }
0x12cc   :  { %v2152_v59 = vpop.xlane.xlu1 %2151 }
0x12cd   :  { %v2171_v43 = vsub.f32 %v4275_v25, %v2165_v6  ;;  %v2166_v17 = vmul.f32 0.03125, %v2152_v59 }
0x12cf   :  { %v2172_v4 = vsub.f32 %v4278_v36, %v2166_v17  ;;  %v2177_v15 = vmul.f32 %v2171_v43, %v2171_v43 }
0x12d1   :  { %v2183_v20 = vsel %vm223_vm2, %v2177_v15, 0.0  ;;  %v2178_v16 = vmul.f32 %v2172_v4, %v2172_v4 }
0x12d2   :  { %v2155_v2 = vpop.xlane.xlu0 %2154  ;;  %2184 = vadd.xlane.f32.xlu0 %v2183_v20 }
0x12d3   :  { %v2167_v34 = vmul.f32 0.03125, %v2155_v2  ;;  %v2186_v30 = vsel %vm223_vm2, %v2178_v16, 0.0 }
0x12d4   :  { %2187 = vadd.xlane.f32.xlu1 %v2186_v30 }
0x12d5   :  { %v4309_v51 = vsub.f32 %v4285_v58, %v2167_v34 }
0x12d6   :  { %v2158_v21 = vpop.xlane.xlu0 %2157 }
0x12d7   :  { %v2168_v35 = vmul.f32 0.03125, %v2158_v21  ;;  %v2179_v14 = vmul.f32 %v4309_v51, %v4309_v51 }
0x12d9   :  { %v4314_v53 = vsub.f32 %v4288_v48, %v2168_v35  ;;  %v2189_v41 = vsel %vm223_vm2, %v2179_v14, 0.0 }
0x12da   :  { %2190 = vadd.xlane.f32.xlu0 %v2189_v41  ;;  %v2161_v63 = vpop.xlane.xlu0 %2160 }
0x12db   :  { %v2169_v7 = vmul.f32 0.03125, %v2161_v63  ;;  %v2180_v44 = vmul.f32 %v4314_v53, %v4314_v53 }
0x12dc   :  { %v2164_v29 = vpop.xlane.xlu1 %2163 }
0x12dd   :  { %v2175_v32 = vsub.f32 %v4295_v47, %v2169_v7  ;;  %v2170_v42 = vmul.f32 0.03125, %v2164_v29  ;;  %v2192_v13 = vsel %vm223_vm2, %v2180_v44, 0.0 }
0x12de   :  { %2193 = vadd.xlane.f32.xlu1 %v2192_v13 }
0x12df   :  { %v2176_v49 = vsub.f32 %v4298_v61, %v2170_v42  ;;  %v2181_v56 = vmul.f32 %v2175_v32, %v2175_v32 }
0x12e1   :  { %v2195_v60 = vsel %vm223_vm2, %v2181_v56, 0.0  ;;  %v2182_v9 = vmul.f32 %v2176_v49, %v2176_v49 }
0x12e2   :  { %2196 = vadd.xlane.f32.xlu0 %v2195_v60 }
0x12e3   :  { %v2198_v38 = vsel %vm223_vm2, %v2182_v9, 0.0 }
0x12e4   :  { %2199 = vadd.xlane.f32.xlu1 %v2198_v38  ;;  %v3186_v38 = vld [vmem:[%s4448_s4 + $0x38] sm:$0xff]  }
0x135f   :  { %v2185_v57 = vpop.xlane.xlu0 %2184 }
0x1360   :  { %v2201_v52 = vmul.f32 0.03125, %v2185_v57 }
0x1361   :  { %v2188_v19 = vpop.xlane.xlu1 %2187 }
0x1362   :  { %v2207_v26 = vadd.f32 1e-12, %v2201_v52  ;;  %v2202_v24 = vmul.f32 0.03125, %v2188_v19 }
0x1364   :  { %3331 = vrsqrt.f32 %v2207_v26  ;;  %v2208_v1 = vadd.f32 1e-12, %v2202_v24 }
0x1366   :  { %3333 = vrsqrt.f32 %v2208_v1 }
0x1367   :  { %v2191_v28 = vpop.xlane.xlu0 %2190 }
0x1368   :  { %v2203_v8 = vmul.f32 0.03125, %v2191_v28 }
0x136a   :  { %v2209_v22 = vadd.f32 1e-12, %v2203_v8 }
0x136b   :  { %v2194_v11 = vpop.xlane.xlu1 %2193 }
0x136c   :  { %3335 = vrsqrt.f32 %v2209_v22  ;;  %v2204_v27 = vmul.f32 0.03125, %v2194_v11 }
0x136e   :  { %v3332_v31 = vpop.eup %3331  ;;  %v2210_v50 = vadd.f32 1e-12, %v2204_v27 }
0x136f   :  { %v2219_v40 = vmul.f32 %v3332_v31, %v2171_v43  ;;  %v2197_v55 = vpop.xlane.xlu0 %2196 }
0x1370   :  { %v3334_v18 = vpop.eup %3333  ;;  %3337 = vrsqrt.f32 %v2210_v50  ;;  %v2205_v12 = vmul.f32 0.03125, %v2197_v55 }
0x1371   :  { %v2229_v62 = vmul.f32 %v2228_v39, %v2219_v40  ;;  %v2220_v6 = vmul.f32 %v3334_v18, %v2172_v4  ;;  %v2200_v59 = vpop.xlane.xlu1 %2199 }
0x1372   :  { %v2211_v17 = vadd.f32 1e-12, %v2205_v12  ;;  %v2206_v15 = vmul.f32 0.03125, %v2200_v59 }
0x1373   :  { %v2230_v20 = vmul.f32 %v2228_v39, %v2220_v6  ;;  %v2239_v54 = vadd.f32 %v2238_v5, %v2229_v62 }
0x1374   :  { %3339 = vrsqrt.f32 %v2211_v17  ;;  %v2212_v16 = vadd.f32 1e-12, %v2206_v15 }
0x1375   :  { %v2240_v2 = vadd.f32 %v2238_v5, %v2230_v20 }
0x1376   :  { %v3336_v34 = vpop.eup %3335  ;;  %3341 = vrsqrt.f32 %v2212_v16 }
0x1377   :  { %v2221_v43 = vmul.f32 %v3336_v34, %v4309_v51  ;;  %v2245_v30 = vpack.c.bf16 %v2240_v2, %v2239_v54 }
0x1379   :  { %3089 = vmatmul.mubr.msk.bf16.vlgmr.msra.gmra.mrb[88].mxu0 %vm223_vm2, %v2245_v30  ;;  %v2231_v4 = vmul.f32 %v2228_v39, %v2221_v43 }
0x137a   :  { %v3338_v21 = vpop.eup %3337  ;;  %3092 = vmatprep.mubr.msk.bf16.mxu0 %vm3382_vm0, %v3381_v0 }
0x137b   :  { %v2222_v10 = vmul.f32 %v3338_v21, %v4314_v53  ;;  %v2241_v63 = vadd.f32 %v2238_v5, %v2231_v4  ;;  %v3183_v53 = vld [vmem:[%s4448_s4 + $0x20] sm:$0xff]  }
0x137c   :  { %3101 = vmatpush3.bf16.msra.mxu1 %v3183_v53 }
0x137d   :  { %v2232_v35 = vmul.f32 %v2228_v39, %v2222_v10  ;;  %3102 = vmatprep.subr.bf16.mxu1 %v3381_v0 }
0x137e   :  { %v3340_v14 = vpop.eup %3339 }
0x137f   :  { %v2223_v41 = vmul.f32 %v3340_v14, %v2175_v32  ;;  %v2242_v7 = vadd.f32 %v2238_v5, %v2232_v35  ;;  %v3184_v32 = vld [vmem:[%s4448_s4 + $0x28] sm:$0xff]  }
0x1380   :  { %v3342_v44 = vpop.eup %3341  ;;  %3103 = vmatpush3.bf16.msra.mxu1 %v3184_v32 }
0x1381   :  { %v2224_v29 = vmul.f32 %v3342_v44, %v2176_v49  ;;  %v2246_v42 = vpack.c.bf16 %v2242_v7, %v2241_v63  ;;  %v2233_v51 = vmul.f32 %v2228_v39, %v2223_v41  ;;  %3104 = vmatprep.subr.bf16.mxu1 %v3381_v0  ;;  %v3185_v49 = vld [vmem:[%s4448_s4 + $0x30] sm:$0xff]  }
0x1383   :  { %3093 = vmatmul.mubr.msk.bf16.gmra.mrb[92].mxu0 %vm223_vm2, %v2246_v42  ;;  %v2234_v13 = vmul.f32 %v2228_v39, %v2224_v29  ;;  %v2243_v60 = vadd.f32 %v2238_v5, %v2233_v51 }
0x1384   :  { %3096 = vmatprep.mubr.msk.bf16.mxu0 %vm3382_vm0, %v3381_v0  ;;  %3105 = vmatpush3.bf16.msra.mxu1 %v3185_v49 }
0x1385   :  { %v2244_v56 = vadd.f32 %v2238_v5, %v2234_v13  ;;  %3106 = vmatprep.subr.bf16.mxu1 %v3381_v0 }
0x1387   :  { %v2247_v9 = vpack.c.bf16 %v2244_v56, %v2243_v60 }
0x1388   :  { %3107 = vmatpush3.bf16.msra.mxu1 %v3186_v38 }
0x138b   :  { %3097 = vmatmul.mubr.msk.bf16.gmra.mrb[96].mxu0 %vm223_vm2, %v2247_v9 }
0x144c   :  { %v2303_v3 = vpop.f32.mrb[88].mxu0 }
0x144d   :  { %v2304_v57 = vadd.f32 %v2303_v3, %v2251_v46  ;;  %v3090_v52 = vpop.f32.mrb[89].mxu0 }
0x144e   :  { %v2306_v19 = vpop.f32.mrb[90].mxu0 }
0x144f   :  { %v2326_v26 = vmul.f32 %v2304_v57, %v2304_v57  ;;  %v2307_v24 = vadd.f32 %v2306_v19, %v2251_v46  ;;  %v3091_v1 = vpop.f32.mrb[91].mxu0 }
0x1451   :  { %v2332_v28 = vmul.f32 %v2326_v26, %v2304_v57  ;;  %v2327_v8 = vmul.f32 %v2307_v24, %v2307_v24 }
0x1453   :  { %v2338_v22 = vmul.f32 0.044715, %v2332_v28  ;;  %v2333_v11 = vmul.f32 %v2327_v8, %v2307_v24 }
0x1455   :  { %v2344_v27 = vadd.f32 %v2338_v22, %v2304_v57  ;;  %v2339_v39 = vmul.f32 0.044715, %v2333_v11 }
0x1456   :  { %v2311_v31 = vpop.f32.mrb[92].mxu0 }
0x1457   :  { %v2350_v50 = vmul.f32 0.7978846, %v2344_v27  ;;  %v2345_v40 = vadd.f32 %v2339_v39, %v2307_v24  ;;  %v2312_v55 = vadd.f32 %v2311_v31, %v2251_v46  ;;  %v3094_v18 = vpop.f32.mrb[93].mxu0 }
0x1458   :  { %v2314_v12 = vpop.f32.mrb[94].mxu0 }
0x1459   :  { %3343 = vtanh.f32 %v2350_v50  ;;  %v2351_v33 = vmul.f32 0.7978846, %v2345_v40  ;;  %v2328_v5 = vmul.f32 %v2312_v55, %v2312_v55  ;;  %v2315_v62 = vadd.f32 %v2314_v12, %v2251_v46  ;;  %v3095_v6 = vpop.f32.mrb[95].mxu0 }
0x145b   :  { %3345 = vtanh.f32 %v2351_v33  ;;  %v2334_v59 = vmul.f32 %v2328_v5, %v2312_v55  ;;  %v2329_v17 = vmul.f32 %v2315_v62, %v2315_v62 }
0x145d   :  { %v2340_v15 = vmul.f32 0.044715, %v2334_v59  ;;  %v2335_v20 = vmul.f32 %v2329_v17, %v2315_v62 }
0x145e   :  { %v2319_v16 = vpop.f32.mrb[96].mxu0 }
0x145f   :  { %v2346_v54 = vadd.f32 %v2340_v15, %v2312_v55  ;;  %v2341_v2 = vmul.f32 0.044715, %v2335_v20  ;;  %v2320_v34 = vadd.f32 %v2319_v16, %v2251_v46  ;;  %v3098_v43 = vpop.f32.mrb[97].mxu0 }
0x1460   :  { %v2322_v30 = vpop.f32.mrb[98].mxu0 }
0x1461   :  { %v2352_v21 = vmul.f32 0.7978846, %v2346_v54  ;;  %v2347_v10 = vadd.f32 %v2341_v2, %v2315_v62  ;;  %v2330_v4 = vmul.f32 %v2320_v34, %v2320_v34  ;;  %v2323_v35 = vadd.f32 %v2322_v30, %v2251_v46  ;;  %v3099_v14 = vpop.f32.mrb[99].mxu0 }
0x1463   :  { %v3344_v41 = vpop.eup %3343  ;;  %3347 = vtanh.f32 %v2352_v21  ;;  %v2353_v63 = vmul.f32 0.7978846, %v2347_v10  ;;  %v2336_v7 = vmul.f32 %v2330_v4, %v2320_v34  ;;  %v2331_v44 = vmul.f32 %v2323_v35, %v2323_v35 }
0x1464   :  { %v2362_v29 = vadd.f32 1.0, %v3344_v41 }
0x1465   :  { %v3346_v42 = vpop.eup %3345  ;;  %3349 = vtanh.f32 %v2353_v63  ;;  %v2342_v51 = vmul.f32 0.044715, %v2336_v7  ;;  %v2337_v13 = vmul.f32 %v2331_v44, %v2323_v35 }
0x1466   :  { %v2368_v56 = vmul.f32 0.5, %v2362_v29  ;;  %v2363_v60 = vadd.f32 1.0, %v3346_v42 }
0x1467   :  { %v2348_v9 = vadd.f32 %v2342_v51, %v2320_v34  ;;  %v2343_v53 = vmul.f32 0.044715, %v2337_v13 }
0x1468   :  { %v2369_v32 = vmul.f32 0.5, %v2363_v60  ;;  %v2374_v3 = vmul.f32 %v2368_v56, %v2304_v57 }
0x1469   :  { %v2354_v49 = vmul.f32 0.7978846, %v2348_v9  ;;  %v2349_v38 = vadd.f32 %v2343_v53, %v2323_v35 }
0x146a   :  { %v2375_v46 = vmul.f32 %v2369_v32, %v2307_v24 }
0x146b   :  { %3351 = vtanh.f32 %v2354_v49  ;;  %v2355_v52 = vmul.f32 0.7978846, %v2349_v38 }
0x146c   :  { %v2380_v19 = vpack.c.bf16 %v2375_v46, %v2374_v3 }
0x146d   :  { %v3348_v26 = vpop.eup %3347  ;;  %3353 = vtanh.f32 %v2355_v52 }
0x146e   :  { %v2364_v1 = vadd.f32 1.0, %v3348_v26  ;;  %3109 = vmatmul.mubr.msk.bf16.vlgmr.msra.gmra.mrb[92].mxu1 %vm74_vm1, %v2380_v19 }
0x146f   :  { %v3350_v28 = vpop.eup %3349  ;;  %3112 = vmatprep.mubr.msk.bf16.mxu1 %vm3382_vm0, %v3381_v0 }
0x1470   :  { %v2370_v8 = vmul.f32 0.5, %v2364_v1  ;;  %v2365_v22 = vadd.f32 1.0, %v3350_v28 }
0x1472   :  { %v2371_v11 = vmul.f32 0.5, %v2365_v22  ;;  %v2376_v27 = vmul.f32 %v2370_v8, %v2312_v55  ;;  %v2386_v55 = vrot.slane %v4334_v45, %v1249_v37 }
0x1474   :  { %v2377_v39 = vmul.f32 %v2371_v11, %v2315_v62 }
0x1475   :  { %v3352_v31 = vpop.eup %3351 }
0x1476   :  { %v2366_v57 = vadd.f32 1.0, %v3352_v31  ;;  %v2381_v24 = vpack.c.bf16 %v2377_v39, %v2376_v27 }
0x1477   :  { %v3354_v50 = vpop.eup %3353 }
0x1478   :  { %v2372_v40 = vmul.f32 0.5, %v2366_v57  ;;  %v2367_v18 = vadd.f32 1.0, %v3354_v50  ;;  %3113 = vmatmul.mubr.msk.bf16.gmra.mrb[96].mxu1 %vm74_vm1, %v2381_v24 }
0x1479   :  { %3116 = vmatprep.mubr.msk.bf16.mxu1 %vm3382_vm0, %v3381_v0 }
0x147a   :  { %v2373_v12 = vmul.f32 0.5, %v2367_v18  ;;  %v2378_v33 = vmul.f32 %v2372_v40, %v2320_v34 }
0x147c   :  { %v2379_v5 = vmul.f32 %v2373_v12, %v2323_v35 }
0x147e   :  { %v2382_v6 = vpack.c.bf16 %v2379_v5, %v2378_v33 }
0x1480   :  { %3117 = vmatmul.mubr.msk.bf16.gmra.mrb[100].mxu1 %vm74_vm1, %v2382_v6 }
0x1541   :  { %v2454_v62 = vpop.f32.mrb[92].mxu1 }
0x1542   :  { %v2455_v59 = vadd.f32 %v2454_v62, %v2386_v55  ;;  %v3110_v17 = vpop.f32.mrb[93].mxu1 }
0x1543   :  { %v2457_v15 = vpop.f32.mrb[94].mxu1 }
0x1544   :  { %v2477_v20 = vadd.f32 %v2455_v59, %v4275_v25  ;;  %v2458_v16 = vadd.f32 %v2457_v15, %v2386_v55  ;;  %v3111_v54 = vpop.f32.mrb[95].mxu1 }
0x1546   :  { %v2478_v0 = vadd.f32 %v2458_v16, %v4278_v36  ;;  %v2485_v2 = vsel %vm223_vm2, %v2477_v20, 0.0 }
0x1547   :  { %2486 = vadd.xlane.f32.xlu0 %v2485_v2 }
0x1548   :  { %v2488_v34 = vsel %vm223_vm2, %v2478_v0, 0.0 }
0x1549   :  { %2489 = vadd.xlane.f32.xlu1 %v2488_v34  ;;  %v2719_v34 = vld [vmem:[%s4449_s6] ss:$0 sm:$0xff] }
0x154b   :  { %v2462_v43 = vpop.f32.mrb[96].mxu1 }
0x154c   :  { %v2463_v23 = vadd.f32 %v2462_v43, %v2386_v55  ;;  %v3114_v30 = vpop.f32.mrb[97].mxu1 }
0x154d   :  { %v2465_v37 = vpop.f32.mrb[98].mxu1  ;;  %v2720_v30 = vld [vmem:[%s4449_s6 + $0x1] ss:$0 sm:$0xff] }
0x154e   :  { %v2479_v45 = vadd.f32 %v2463_v23, %v4285_v58  ;;  %v2466_v21 = vadd.f32 %v2465_v37, %v2386_v55  ;;  %v3115_v10 = vpop.f32.mrb[99].mxu1 }
0x1550   :  { %v2480_v25 = vadd.f32 %v2466_v21, %v4288_v48  ;;  %v2491_v4 = vsel %vm223_vm2, %v2479_v45, 0.0 }
0x1551   :  { %2492 = vadd.xlane.f32.xlu0 %v2491_v4 }
0x1552   :  { %v2494_v36 = vsel %vm223_vm2, %v2480_v25, 0.0 }
0x1553   :  { %2495 = vadd.xlane.f32.xlu1 %v2494_v36  ;;  %v2470_v35 = vpop.f32.mrb[100].mxu1 }
0x1554   :  { %v2471_v14 = vadd.f32 %v2470_v35, %v2386_v55  ;;  %v3118_v41 = vpop.f32.mrb[101].mxu1 }
0x1555   :  { %v2473_v63 = vpop.f32.mrb[102].mxu1 }
0x1556   :  { %v2481_v7 = vadd.f32 %v2471_v14, %v4295_v47  ;;  %v2474_v44 = vadd.f32 %v2473_v63, %v2386_v55  ;;  %v3119_v29 = vpop.f32.mrb[103].mxu1 }
0x1558   :  { %v2482_v58 = vadd.f32 %v2474_v44, %v4298_v61  ;;  %v2497_v42 = vsel %vm223_vm2, %v2481_v7, 0.0 }
0x1559   :  { %2498 = vadd.xlane.f32.xlu0 %v2497_v42 }
0x155a   :  { %v2500_v48 = vsel %vm223_vm2, %v2482_v58, 0.0 }
0x155b   :  { %2501 = vadd.xlane.f32.xlu1 %v2500_v48 }
0x15d4   :  { %v2487_v51 = vpop.xlane.xlu0 %2486 }
0x15d5   :  { %v2503_v13 = vmul.f32 0.03125, %v2487_v51 }
0x15d6   :  { %v2490_v56 = vpop.xlane.xlu1 %2489 }
0x15d7   :  { %v2509_v60 = vsub.f32 %v2477_v20, %v2503_v13  ;;  %v2504_v9 = vmul.f32 0.03125, %v2490_v56 }
0x15d9   :  { %v2510_v53 = vsub.f32 %v2478_v0, %v2504_v9  ;;  %v2515_v32 = vmul.f32 %v2509_v60, %v2509_v60 }
0x15db   :  { %v2521_v49 = vsel %vm223_vm2, %v2515_v32, 0.0  ;;  %v2516_v47 = vmul.f32 %v2510_v53, %v2510_v53 }
0x15dc   :  { %2522 = vadd.xlane.f32.xlu0 %v2521_v49 }
0x15dd   :  { %v2524_v38 = vsel %vm223_vm2, %v2516_v47, 0.0 }
0x15de   :  { %v2493_v61 = vpop.xlane.xlu0 %2492  ;;  %2525 = vadd.xlane.f32.xlu1 %v2524_v38 }
0x15df   :  { %v2505_v3 = vmul.f32 0.03125, %v2493_v61 }
0x15e0   :  { %v2496_v46 = vpop.xlane.xlu1 %2495 }
0x15e1   :  { %v2511_v52 = vsub.f32 %v2479_v45, %v2505_v3  ;;  %v2506_v19 = vmul.f32 0.03125, %v2496_v46 }
0x15e3   :  { %v4393_v26 = vsub.f32 %v2480_v25, %v2506_v19  ;;  %v2517_v1 = vmul.f32 %v2511_v52, %v2511_v52 }
0x15e5   :  { %v2527_v28 = vsel %vm223_vm2, %v2517_v1, 0.0  ;;  %v2518_v8 = vmul.f32 %v4393_v26, %v4393_v26 }
0x15e6   :  { %2528 = vadd.xlane.f32.xlu0 %v2527_v28  ;;  %v2499_v22 = vpop.xlane.xlu0 %2498 }
0x15e7   :  { %v2507_v11 = vmul.f32 0.03125, %v2499_v22  ;;  %v2530_v27 = vsel %vm223_vm2, %v2518_v8, 0.0 }
0x15e8   :  { %2531 = vadd.xlane.f32.xlu1 %v2530_v27  ;;  %v2502_v39 = vpop.xlane.xlu1 %2501 }
0x15e9   :  { %v2513_v31 = vsub.f32 %v2481_v7, %v2507_v11  ;;  %v2508_v57 = vmul.f32 0.03125, %v2502_v39 }
0x15eb   :  { %v4399_v24 = vsub.f32 %v2482_v58, %v2508_v57  ;;  %v2519_v50 = vmul.f32 %v2513_v31, %v2513_v31 }
0x15ed   :  { %v2533_v40 = vsel %vm223_vm2, %v2519_v50, 0.0  ;;  %v2520_v18 = vmul.f32 %v4399_v24, %v4399_v24 }
0x15ee   :  { %2534 = vadd.xlane.f32.xlu0 %v2533_v40 }
0x15ef   :  { %v2536_v12 = vsel %vm223_vm2, %v2520_v18, 0.0 }
0x15f0   :  { %2537 = vadd.xlane.f32.xlu1 %v2536_v12 }
0x1669   :  { %v2523_v33 = vpop.xlane.xlu0 %2522 }
0x166a   :  { %v2539_v5 = vmul.f32 0.03125, %v2523_v33 }
0x166b   :  { %v2526_v6 = vpop.xlane.xlu1 %2525 }
0x166c   :  { %v2545_v55 = vadd.f32 1e-12, %v2539_v5  ;;  %v2540_v62 = vmul.f32 0.03125, %v2526_v6 }
0x166e   :  { %3355 = vrsqrt.f32 %v2545_v55  ;;  %v2546_v59 = vadd.f32 1e-12, %v2540_v62 }
0x1670   :  { %3357 = vrsqrt.f32 %v2546_v59 }
0x1673   :  { %v2529_v17 = vpop.xlane.xlu0 %2528 }
0x1674   :  { %v2541_v15 = vmul.f32 0.03125, %v2529_v17 }
0x1675   :  { %v2532_v20 = vpop.xlane.xlu1 %2531 }
0x1676   :  { %v2547_v16 = vadd.f32 1e-12, %v2541_v15  ;;  %v2542_v54 = vmul.f32 0.03125, %v2532_v20 }
0x1678   :  { %v3356_v0 = vpop.eup %3355  ;;  %3359 = vrsqrt.f32 %v2547_v16  ;;  %v2548_v2 = vadd.f32 1e-12, %v2542_v54 }
0x1679   :  { %v2557_v43 = vmul.f32 %v3356_v0, %v2509_v60 }
0x167a   :  { %v3358_v23 = vpop.eup %3357  ;;  %3361 = vrsqrt.f32 %v2548_v2 }
0x167b   :  { %v2535_v37 = vpop.xlane.xlu0 %2534  ;;  %v2567_v45 = vmul.f32 %v2719_v34, %v2557_v43  ;;  %v2558_v21 = vmul.f32 %v3358_v23, %v2510_v53 }
0x167c   :  { %v2543_v10 = vmul.f32 0.03125, %v2535_v37 }
0x167d   :  { %v2538_v25 = vpop.xlane.xlu1 %2537  ;;  %v2577_v4 = vadd.f32 %v2720_v30, %v2567_v45  ;;  %v2568_v36 = vmul.f32 %v2719_v34, %v2558_v21 }
0x167e   :  { %v2549_v35 = vadd.f32 1e-12, %v2543_v10  ;;  %v2544_v14 = vmul.f32 0.03125, %v2538_v25 }
0x167f   :  { %v2583_v41 = vmul.f32 %v2577_v4, %v2577_v4  ;;  %v2578_v63 = vadd.f32 %v2720_v30, %v2568_v36 }
0x1680   :  { %3363 = vrsqrt.f32 %v2549_v35  ;;  %v2550_v7 = vadd.f32 1e-12, %v2544_v14 }
0x1681   :  { %v2589_v44 = vsel %vm223_vm2, %v2583_v41, 0.0  ;;  %v2584_v29 = vmul.f32 %v2578_v63, %v2578_v63 }
0x1682   :  { %v3360_v58 = vpop.eup %3359  ;;  %3365 = vrsqrt.f32 %v2550_v7  ;;  %2590 = vadd.xlane.f32.xlu0 %v2589_v44 }
0x1683   :  { %v2592_v42 = vsel %vm223_vm2, %v2584_v29, 0.0  ;;  %v2559_v48 = vmul.f32 %v3360_v58, %v2511_v52 }
0x1684   :  { %v3362_v51 = vpop.eup %3361  ;;  %2593 = vadd.xlane.f32.xlu1 %v2592_v42 }
0x1685   :  { %v2569_v13 = vmul.f32 %v2719_v34, %v2559_v48  ;;  %v2560_v56 = vmul.f32 %v3362_v51, %v4393_v26 }
0x1687   :  { %v2579_v60 = vadd.f32 %v2720_v30, %v2569_v13  ;;  %v2570_v9 = vmul.f32 %v2719_v34, %v2560_v56 }
0x1689   :  { %v2585_v53 = vmul.f32 %v2579_v60, %v2579_v60  ;;  %v2580_v32 = vadd.f32 %v2720_v30, %v2570_v9 }
0x168a   :  { %v3364_v49 = vpop.eup %3363 }
0x168b   :  { %v2595_v47 = vsel %vm223_vm2, %v2585_v53, 0.0  ;;  %v2586_v38 = vmul.f32 %v2580_v32, %v2580_v32  ;;  %v2561_v61 = vmul.f32 %v3364_v49, %v2513_v31 }
0x168c   :  { %v3366_v3 = vpop.eup %3365  ;;  %2596 = vadd.xlane.f32.xlu0 %v2595_v47 }
0x168d   :  { %v2598_v46 = vsel %vm223_vm2, %v2586_v38, 0.0  ;;  %v2571_v19 = vmul.f32 %v2719_v34, %v2561_v61  ;;  %v2562_v52 = vmul.f32 %v3366_v3, %v4399_v24 }
0x168e   :  { %2599 = vadd.xlane.f32.xlu1 %v2598_v46 }
0x168f   :  { %v2581_v1 = vadd.f32 %v2720_v30, %v2571_v19  ;;  %v2572_v28 = vmul.f32 %v2719_v34, %v2562_v52 }
0x1691   :  { %v2587_v26 = vmul.f32 %v2581_v1, %v2581_v1  ;;  %v2582_v8 = vadd.f32 %v2720_v30, %v2572_v28 }
0x1693   :  { %v2601_v22 = vsel %vm223_vm2, %v2587_v26, 0.0  ;;  %v2588_v11 = vmul.f32 %v2582_v8, %v2582_v8 }
0x1694   :  { %2602 = vadd.xlane.f32.xlu0 %v2601_v22 }
0x1695   :  { %v2604_v27 = vsel %vm223_vm2, %v2588_v11, 0.0 }
0x1696   :  { %2605 = vadd.xlane.f32.xlu1 %v2604_v27 }
0x170f   :  { %v2591_v39 = vpop.xlane.xlu0 %2590 }
0x1710   :  { %v2607_v31 = vmax.f32 %v2591_v39, 1e-24 }
0x1711   :  { %v2594_v57 = vpop.xlane.xlu1 %2593 }
0x1712   :  { %3367 = vrsqrt.f32 %v2607_v31  ;;  %v2608_v50 = vmax.f32 %v2594_v57, 1e-24 }
0x1714   :  { %3369 = vrsqrt.f32 %v2608_v50 }
0x1719   :  { %v2597_v40 = vpop.xlane.xlu0 %2596 }
0x171a   :  { %v2609_v24 = vmax.f32 %v2597_v40, 1e-24 }
0x171b   :  { %v2600_v18 = vpop.xlane.xlu1 %2599 }
0x171c   :  { %v3368_v12 = vpop.eup %3367  ;;  %3371 = vrsqrt.f32 %v2609_v24  ;;  %v2610_v33 = vmax.f32 %v2600_v18, 1e-24 }
0x171d   :  { %v2619_v5 = vmul.f32 %v3368_v12, %v2577_v4 }
0x171e   :  { %v3370_v6 = vpop.eup %3369  ;;  %3373 = vrsqrt.f32 %v2610_v33 }
0x171f   :  { %2625 = vst.msk [vmem:[%s4450_s7] sm:$0xff] %vm223_vm2, %v2619_v5  ;;  %v2620_v55 = vmul.f32 %v3370_v6, %v2578_v63 }
0x1721   :  { %2626 = vst.msk [vmem:[%s4450_s7 + $0x8] sm:$0xff] %vm223_vm2, %v2620_v55  ;;  %v2603_v62 = vpop.xlane.xlu0 %2602 }
0x1722   :  { %v2611_v59 = vmax.f32 %v2603_v62, 1e-24 }
0x1723   :  { %v2606_v17 = vpop.xlane.xlu1 %2605 }
0x1724   :  { %3375 = vrsqrt.f32 %v2611_v59  ;;  %v2612_v15 = vmax.f32 %v2606_v17, 1e-24 }
0x1726   :  { %v3372_v20 = vpop.eup %3371  ;;  %3377 = vrsqrt.f32 %v2612_v15 }
0x1727   :  { %v2621_v16 = vmul.f32 %v3372_v20, %v2579_v60 }
0x1728   :  { %v3374_v54 = vpop.eup %3373 }
0x1729   :  { %2627 = vst.msk [vmem:[%s4450_s7 + $0x10] sm:$0xff] %vm223_vm2, %v2621_v16  ;;  %v2622_v0 = vmul.f32 %v3374_v54, %v2580_v32 }
0x172b   :  { %2628 = vst.msk [vmem:[%s4450_s7 + $0x18] sm:$0xff] %vm223_vm2, %v2622_v0 }
0x172e   :  { %v3376_v2 = vpop.eup %3375 }
0x172f   :  { %v2623_v34 = vmul.f32 %v3376_v2, %v2581_v1 }
0x1730   :  { %v3378_v43 = vpop.eup %3377 }
0x1731   :  { %2629 = vst.msk [vmem:[%s4450_s7 + $0x20] sm:$0xff] %vm223_vm2, %v2623_v34  ;;  %v2624_v23 = vmul.f32 %v3378_v43, %v2582_v8 }
0x1733   :  { %2630 = vst.msk [vmem:[%s4450_s7 + $0x28] sm:$0xff] %vm223_vm2, %v2624_v23 }

</bundles_post_ra>
